<compile_context>
chip_gen: v7x
topology: tpu7x:2x2x1
jax: 0.10.0
libtpu: 0.0.40
codegen_flags: <defaults>
</compile_context>

<pallas_src>
import functools
import math

import jax
import jax.numpy as jnp
from jax import lax
from jax.experimental import pallas as pl
from jax.experimental.pallas import tpu as pltpu


# -------------------------- tiling / VMEM budget helpers ---------------------

_DEF_BUDGET = 40 << 20       # target double-buffered working set per kernel
_MIN_VMEM_LIMIT = 32 << 20
_MAX_VMEM_LIMIT = 60 << 20   # stay under v7x's 64 MiB physical VMEM


def _tile_candidates(dim, cands=(512, 256, 128)):
    out = [c for c in cands if dim % c == 0]
    return out or [dim]


def _pick_tile(dim, cands):
    for c in cands:
        if dim % c == 0:
            return c
    return dim


def _compiler_params(sem, vmem_estimate):
    limit = int(min(max(int(vmem_estimate * 1.5), _MIN_VMEM_LIMIT), _MAX_VMEM_LIMIT))
    return pltpu.CompilerParams(dimension_semantics=sem, vmem_limit_bytes=limit)


def _proj_vmem(tm, tk, cout, n_outs, db=2):
    # 2x-buffered x tile + per output: 2x weight block, 2x output block, fp32 acc
    return (2 * db * tm * tk
            + n_outs * (2 * db * tk * cout + 2 * db * tm * cout + 4 * tm * cout)
            + 4 * 4 * cout)


def _pick_proj_tiles(M, K, cout, n_outs, budget=_DEF_BUDGET):
    tms, tks = _tile_candidates(M), _tile_candidates(K)
    for tm in tms:              # prefer large tm: fewer full-weight re-streams
        for tk in tks:
            need = _proj_vmem(tm, tk, cout, n_outs)
            if need <= budget:
                return tm, tk, need
    tm, tk = tms[-1], tks[-1]
    return tm, tk, _proj_vmem(tm, tk, cout, n_outs)


def _linear_vmem(tm, tn, tk, db=2):
    return 2 * db * (tm * tk + tk * tn + tm * tn) + 4 * tm * tn + 2 * 4 * tn


def _pick_linear_tiles(M, K, N, budget=_DEF_BUDGET):
    tms, tns, tks = _tile_candidates(M), _tile_candidates(N), _tile_candidates(K)
    for tm in tms:
        for tn in tns:
            for tk in tks:
                need = _linear_vmem(tm, tn, tk)
                if need <= budget:
                    return tm, tn, tk, need
    tm, tn, tk = tms[-1], tns[-1], tks[-1]
    return tm, tn, tk, _linear_vmem(tm, tn, tk)


def _attn_vmem(tq, lt, li, hbd, db=2):
    blocks = 2 * db * (2 * tq * hbd + 2 * lt * hbd + 2 * li * hbd)
    temps = 2 * 4 * tq * (lt + li)     # fp32 score/prob temporaries in flight
    return blocks + temps


# --------------------------------- kernels -----------------------------------


def _linear_kernel(x_ref, w_ref, b_ref, o_ref, acc_ref):
    """o = x @ W + b, tiled over (M, N, K) with fp32 accumulator (K last)."""
    @pl.when(pl.program_id(2) == 0)
    def _():
        acc_ref[...] = jnp.zeros_like(acc_ref)

    acc_ref[...] += jnp.dot(x_ref[...], w_ref[...],
                            preferred_element_type=jnp.float32)

    @pl.when(pl.program_id(2) == pl.num_programs(2) - 1)
    def _():
        o_ref[...] = (acc_ref[...] + b_ref[...]).astype(o_ref.dtype)


def _linear_rmsnorm_kernel(x_ref, w_ref, b_ref, g_ref, o_ref, acc_ref, *, eps):
    """o = RMSNorm(x @ W + b) * gamma, tiled over (M, K); full Cout per block."""
    @pl.when(pl.program_id(1) == 0)
    def _():
        acc_ref[...] = jnp.zeros_like(acc_ref)

    acc_ref[...] += jnp.dot(x_ref[...], w_ref[...],
                            preferred_element_type=jnp.float32)

    @pl.when(pl.program_id(1) == pl.num_programs(1) - 1)
    def _():
        y = acc_ref[...] + b_ref[...]
        ms = jnp.mean(y * y, axis=-1, keepdims=True)
        y = y * lax.rsqrt(ms + eps)
        o_ref[...] = (y * g_ref[...]).astype(o_ref.dtype)


def _proj_kv_kernel(x_ref, wk_ref, bk_ref, gk_ref, wv_ref, bv_ref,
                    k_ref, v_ref, acc_k, acc_v, *, eps):
    """Fused K/V projection sharing one activation tile:
         k = RMSNorm(x @ Wk + bk) * gk ;  v = x @ Wv + bv."""
    @pl.when(pl.program_id(1) == 0)
    def _():
        acc_k[...] = jnp.zeros_like(acc_k)
        acc_v[...] = jnp.zeros_like(acc_v)

    x = x_ref[...]
    acc_k[...] += jnp.dot(x, wk_ref[...], preferred_element_type=jnp.float32)
    acc_v[...] += jnp.dot(x, wv_ref[...], preferred_element_type=jnp.float32)

    @pl.when(pl.program_id(1) == pl.num_programs(1) - 1)
    def _():
        yk = acc_k[...] + bk_ref[...]
        ms = jnp.mean(yk * yk, axis=-1, keepdims=True)
        yk = yk * lax.rsqrt(ms + eps) * gk_ref[...]
        k_ref[...] = yk.astype(k_ref.dtype)
        v_ref[...] = (acc_v[...] + bv_ref[...]).astype(v_ref.dtype)


def _cross_attn_kernel(klens_ref, q_ref, kt_ref, vt_ref, ki_ref, vi_ref, o_ref,
                       *, heads_per_block, head_dim, img_len):
    """Fused image + text cross-attention for one (batch, head-pair, q-tile).

    1/sqrt(D) is pre-folded into norm_q's gamma, so q arrives pre-scaled.
    Writes  softmax(qK_img^T + img_mask) V_img + softmax(qK_txt^T + txt_mask) V_txt
    directly into the [B, L, H*D] output slab (heads chosen by BlockSpec).
    """
    b = pl.program_id(0)
    klen = klens_ref[b]

    q = q_ref[0]                     # (tq, hb*D) bf16
    kt, vt = kt_ref[0], vt_ref[0]    # (Lt,  hb*D)
    ki, vi = ki_ref[0], vi_ref[0]    # (Lip, hb*D)
    lt, li = kt.shape[0], ki.shape[0]

    # Additive (1, Lk) bias rows; hoisted out of the per-head loop.
    tmask = jnp.where(lax.broadcasted_iota(jnp.int32, (1, lt), 1) < klen,
                      0.0, -1e30).astype(jnp.float32)
    if img_len < li:
        imask = jnp.where(lax.broadcasted_iota(jnp.int32, (1, li), 1) < img_len,
                          0.0, -1e30).astype(jnp.float32)
    else:
        imask = None

    dn_qk = (((1,), (1,)), ((), ()))   # contract last dims: q (tq,D) x k (Lk,D)

    outs = []
    for h in range(heads_per_block):
        sl = slice(h * head_dim, (h + 1) * head_dim)
        qh = q[:, sl]

        # ---- image branch ------------------------------------------------
        si = lax.dot_general(qh, ki[:, sl], dn_qk,
                             preferred_element_type=jnp.float32)
        if imask is not None:
            si = si + imask
        mi = jnp.max(si, axis=-1, keepdims=True)
        pi = jnp.exp(si - mi)
        di = jnp.sum(pi, axis=-1, keepdims=True)
        oi = jnp.dot(pi.astype(vi.dtype), vi[:, sl],
                     preferred_element_type=jnp.float32)
        acc = oi * pl.reciprocal(di, approx=True)

        # ---- text branch ---------------------------------------------------
        st = lax.dot_general(qh, kt[:, sl], dn_qk,
                             preferred_element_type=jnp.float32)
        st = st + tmask
        mt = jnp.max(st, axis=-1, keepdims=True)
        pt = jnp.exp(st - mt)
        dt = jnp.sum(pt, axis=-1, keepdims=True)
        ot = jnp.dot(pt.astype(vt.dtype), vt[:, sl],
                     preferred_element_type=jnp.float32)
        acc = acc + ot * pl.reciprocal(dt, approx=True)

        outs.append(acc)

    o_ref[0] = jnp.concatenate(outs, axis=-1).astype(o_ref.dtype)


# ------------------------------- pallas wrappers ------------------------------


def linear(x2d, w, b):
    """y = x @ W + b with (M, N, K) tiling — no full-channel residency needed."""
    M, K = x2d.shape
    N = w.shape[1]
    tm, tn, tk, vmem = _pick_linear_tiles(M, K, N)
    return pl.pallas_call(
        _linear_kernel,
        out_shape=jax.ShapeDtypeStruct((M, N), x2d.dtype),
        grid_spec=pltpu.PrefetchScalarGridSpec(
            num_scalar_prefetch=0,
            grid=(M // tm, N // tn, K // tk),
            in_specs=[
                pl.BlockSpec((tm, tk), lambda i, j, k: (i, k)),
                pl.BlockSpec((tk, tn), lambda i, j, k: (k, j)),
                pl.BlockSpec((1, tn), lambda i, j, k: (0, j)),
            ],
            out_specs=pl.BlockSpec((tm, tn), lambda i, j, k: (i, j)),
            scratch_shapes=[pltpu.VMEM((tm, tn), jnp.float32)],
        ),
        compiler_params=_compiler_params(
            ("parallel", "parallel", "arbitrary"), vmem),
    )(x2d, w, b.reshape(1, N))


def linear_rmsnorm(x2d, w, b, g, eps):
    """y = RMSNorm(x @ W + b) * gamma; full Cout per block (norm needs it)."""
    M, Cin = x2d.shape
    Cout = w.shape[1]
    tm, tk, vmem = _pick_proj_tiles(M, Cin, Cout, n_outs=1)
    return pl.pallas_call(
        functools.partial(_linear_rmsnorm_kernel, eps=eps),
        out_shape=jax.ShapeDtypeStruct((M, Cout), x2d.dtype),
        grid_spec=pltpu.PrefetchScalarGridSpec(
            num_scalar_prefetch=0,
            grid=(M // tm, Cin // tk),
            in_specs=[
                pl.BlockSpec((tm, tk), lambda i, k: (i, k)),
                pl.BlockSpec((tk, Cout), lambda i, k: (k, 0)),
                pl.BlockSpec((1, Cout), lambda i, k: (0, 0)),
                pl.BlockSpec((1, Cout), lambda i, k: (0, 0)),
            ],
            out_specs=pl.BlockSpec((tm, Cout), lambda i, k: (i, 0)),
            scratch_shapes=[pltpu.VMEM((tm, Cout), jnp.float32)],
        ),
        compiler_params=_compiler_params(("parallel", "arbitrary"), vmem),
    )(x2d, w, b.reshape(1, Cout), g.reshape(1, Cout))


def proj_kv(x2d, wk, bk, gk, wv, bv, eps):
    """Fused K (with RMSNorm) and V projection sharing the same input tile."""
    M, Cin = x2d.shape
    Cout = wk.shape[1]
    tm, tk, vmem = _pick_proj_tiles(M, Cin, Cout, n_outs=2)
    return pl.pallas_call(
        functools.partial(_proj_kv_kernel, eps=eps),
        out_shape=(jax.ShapeDtypeStruct((M, Cout), x2d.dtype),
                   jax.ShapeDtypeStruct((M, Cout), x2d.dtype)),
        grid_spec=pltpu.PrefetchScalarGridSpec(
            num_scalar_prefetch=0,
            grid=(M // tm, Cin // tk),
            in_specs=[
                pl.BlockSpec((tm, tk), lambda i, k: (i, k)),
                pl.BlockSpec((tk, Cout), lambda i, k: (k, 0)),
                pl.BlockSpec((1, Cout), lambda i, k: (0, 0)),
                pl.BlockSpec((1, Cout), lambda i, k: (0, 0)),
                pl.BlockSpec((tk, Cout), lambda i, k: (k, 0)),
                pl.BlockSpec((1, Cout), lambda i, k: (0, 0)),
            ],
            out_specs=(
                pl.BlockSpec((tm, Cout), lambda i, k: (i, 0)),
                pl.BlockSpec((tm, Cout), lambda i, k: (i, 0)),
            ),
            scratch_shapes=[pltpu.VMEM((tm, Cout), jnp.float32),
                            pltpu.VMEM((tm, Cout), jnp.float32)],
        ),
        compiler_params=_compiler_params(("parallel", "arbitrary"), vmem),
    )(x2d, wk, bk.reshape(1, Cout), gk.reshape(1, Cout),
      wv, bv.reshape(1, Cout))


def fused_cross_attention(q, k_txt, v_txt, k_img, v_img, k_lens, num_heads,
                          img_len):
    """q/out: [B, L1, H*D]; k/v_txt: [B, Lt, H*D]; k/v_img: [B, Lip, H*D].

    One grid step per (batch, head-pair, q-tile); both branches' K/V stay
    resident per step; output is the summed img+txt attention already in
    [B, L1, H*D] layout (no transposes anywhere).
    """
    B, L1, C = q.shape
    D = C // num_heads
    Lt, Li = k_txt.shape[1], k_img.shape[1]
    hb = 2 if (num_heads % 2 == 0 and D % 128 == 0) else 1
    hbd = hb * D
    # Keep fp32 score/prob temporaries + vreg spill pressure in check.
    tq = _pick_tile(L1, (256, 128) if (Lt + Li) <= 1024 else (128,))
    vmem = _attn_vmem(tq, Lt, Li, hbd)

    grid_spec = pltpu.PrefetchScalarGridSpec(
        num_scalar_prefetch=1,
        grid=(B, num_heads // hb, L1 // tq),
        in_specs=[
            pl.BlockSpec((1, tq, hbd), lambda b, h, qi, lens: (b, qi, h)),
            pl.BlockSpec((1, Lt, hbd), lambda b, h, qi, lens: (b, 0, h)),
            pl.BlockSpec((1, Lt, hbd), lambda b, h, qi, lens: (b, 0, h)),
            pl.BlockSpec((1, Li, hbd), lambda b, h, qi, lens: (b, 0, h)),
            pl.BlockSpec((1, Li, hbd), lambda b, h, qi, lens: (b, 0, h)),
        ],
        out_specs=pl.BlockSpec((1, tq, hbd), lambda b, h, qi, lens: (b, qi, h)),
    )
    return pl.pallas_call(
        functools.partial(_cross_attn_kernel, heads_per_block=hb,
                          head_dim=D, img_len=img_len),
        out_shape=jax.ShapeDtypeStruct((B, L1, C), q.dtype),
        grid_spec=grid_spec,
        compiler_params=_compiler_params(
            ("parallel", "parallel", "parallel"), vmem),
    )(k_lens.astype(jnp.int32), q, k_txt, v_txt, k_img, v_img)


# ---------------------------- module forward (glue) ---------------------------


def init_params(key, dim):
    def lin(k):
        k1, k2 = jax.random.split(k)
        w = jax.random.normal(k1, (dim, dim), jnp.float32) / math.sqrt(dim)
        b = 0.02 * jax.random.normal(k2, (dim,), jnp.float32)
        return (w, b)
    keys = jax.random.split(key, 9)
    return {
        "q": lin(keys[0]), "k": lin(keys[1]), "v": lin(keys[2]), "o": lin(keys[3]),
        "k_img": lin(keys[4]), "v_img": lin(keys[5]),
        "norm_q": 1.0 + 0.1 * jax.random.normal(keys[6], (dim,), jnp.float32),
        "norm_k": 1.0 + 0.1 * jax.random.normal(keys[7], (dim,), jnp.float32),
        "norm_k_img": 1.0 + 0.1 * jax.random.normal(keys[8], (dim,), jnp.float32),
    }


def wan_i2v_cross_attention(params, x, context, context_lens, num_heads, eps=1e-6):
    """x: [B, L1, C], context: [B, L2, C] (first 257 tokens = image), context_lens: [B]."""
    B, L1, C = x.shape
    D = C // num_heads
    cdt = jnp.bfloat16
    f32 = jnp.float32

    IMG_LEN = 257
    L_img_pad = ((IMG_LEN + 127) // 128) * 128   # 384: lane-friendly key length
    context_img = context[:, :IMG_LEN]
    context_txt = context[:, IMG_LEN:]
    L_txt = context_txt.shape[1]
    # Pad image tokens before projection: padded rows give finite garbage K/V
    # that the attention kernel masks with the additive -1e30 bias row.
    context_img = jnp.pad(context_img, ((0, 0), (0, L_img_pad - IMG_LEN), (0, 0)))

    # bf16 MXU operands (fp32 accumulation inside kernels); biases/gammas fp32.
    xw = x.astype(cdt).reshape(B * L1, C)
    ct = context_txt.astype(cdt).reshape(B * L_txt, C)
    ci = context_img.astype(cdt).reshape(B * L_img_pad, C)

    wq, bq = params["q"][0].astype(cdt), params["q"][1].astype(f32)
    wk, bk = params["k"][0].astype(cdt), params["k"][1].astype(f32)
    wv, bv = params["v"][0].astype(cdt), params["v"][1].astype(f32)
    wki, bki = params["k_img"][0].astype(cdt), params["k_img"][1].astype(f32)
    wvi, bvi = params["v_img"][0].astype(cdt), params["v_img"][1].astype(f32)
    wo, bo = params["o"][0].astype(cdt), params["o"][1].astype(f32)
    # Fold the 1/sqrt(D) attention scale into norm_q's gamma (exact, free).
    gq = (params["norm_q"] * (1.0 / math.sqrt(D))).astype(f32)
    gk = params["norm_k"].astype(f32)
    gki = params["norm_k_img"].astype(f32)

    # Projections (fused per shared input; RMSNorm fused into the matmul).
    q = linear_rmsnorm(xw, wq, bq, gq, eps)
    k, v = proj_kv(ct, wk, bk, gk, wv, bv, eps)
    k_img, v_img = proj_kv(ci, wki, bki, gki, wvi, bvi, eps)

    q = q.reshape(B, L1, C)
    k, v = k.reshape(B, L_txt, C), v.reshape(B, L_txt, C)
    k_img = k_img.reshape(B, L_img_pad, C)
    v_img = v_img.reshape(B, L_img_pad, C)

    # Fused img + txt attention: output already summed, in [B, L1, C] layout.
    attn = fused_cross_attention(q, k, v, k_img, v_img,
                                 context_lens.astype(jnp.int32),
                                 num_heads, img_len=IMG_LEN)

    out = linear(attn.reshape(B * L1, C), wo, bo)
    return out.reshape(B, L1, C).astype(x.dtype)


# ------------------------------ pure-JAX reference ----------------------------


def _ref_forward(params, x, context, context_lens, num_heads, eps=1e-6):
    B, L1, C = x.shape
    d = C // num_heads
    ci, ct = context[:, :257], context[:, 257:]

    def lin(t, p):
        return t @ p[0] + p[1]

    def rms(t, g):
        ms = jnp.mean(t * t, axis=-1, keepdims=True)
        return t * lax.rsqrt(ms + eps) * g

    q = rms(lin(x, params["q"]), params["norm_q"])
    k = rms(lin(ct, params["k"]), params["norm_k"])
    v = lin(ct, params["v"])
    k_img = rms(lin(ci, params["k_img"]), params["norm_k_img"])
    v_img = lin(ci, params["v_img"])

    def heads(t):
        return t.reshape(B, -1, num_heads, d).transpose(0, 2, 1, 3)

    def attn(qh, kh, vh, lens):
        s = jnp.einsum("bhqd,bhkd->bhqk", qh, kh,
                       precision=lax.Precision.HIGHEST) / math.sqrt(d)
        kidx = jnp.arange(kh.shape[2])[None, None, None, :]
        s = jnp.where(kidx < lens[:, None, None, None], s, -jnp.inf)
        p = jax.nn.softmax(s, axis=-1)
        return jnp.einsum("bhqk,bhkd->bhqd", p, vh,
                          precision=lax.Precision.HIGHEST)

    img_lens = jnp.full((B,), 257, dtype=jnp.int32)
    ix = attn(heads(q), heads(k_img), heads(v_img), img_lens)
    tx = attn(heads(q), heads(k), heads(v), context_lens.astype(jnp.int32))
    merged = (tx + ix).transpose(0, 2, 1, 3).reshape(B, L1, C)
    return lin(merged, params["o"])


# ----------------------------------- main -------------------------------------


if __name__ == "__main__":
    key = jax.random.PRNGKey(0)
    # Small-but-representative shapes: head_dim = 128 (lane-aligned per-head
    # slices, 2 heads per attention block), image keys padded 257 -> 384.
    B, L1, C, H = 2, 512, 512, 4          # head_dim D = 128
    L_txt = 64
    L2 = 257 + L_txt

    kp, kx, kc = jax.random.split(key, 3)
    params = init_params(kp, C)
    x = jax.random.normal(kx, (B, L1, C), jnp.float32)
    context = jax.random.normal(kc, (B, L2, C), jnp.float32)
    context_lens = jnp.array([L_txt, 41], dtype=jnp.int32)

    out = wan_i2v_cross_attention(params, x, context, context_lens, H)
    out = jax.block_until_ready(out)

    ref = _ref_forward(params, x, context, context_lens, H)
    assert out.shape == (B, L1, C)

    out_f = out.astype(jnp.float32)
    max_err = float(jnp.max(jnp.abs(out_f - ref)))
    rel_err = float(jnp.linalg.norm(out_f - ref) / jnp.linalg.norm(ref))
    # bf16 end-to-end pipeline with fp32 accumulation vs fp32 HIGHEST reference.
    assert max_err < 1.5e-1 and rel_err < 3e-2, (max_err, rel_err)

    print("KERNEL_OK")
</pallas_src>

<mosaic_0001>
module attributes {stable_mosaic.version = 11 : i64} {
  func.func @_linear_rmsnorm_kernel(%arg0: i32, %arg1: i32, %arg2: memref<512x512xbf16, #tpu.memory_space<vmem>>, %arg3: memref<512x512xbf16, #tpu.memory_space<vmem>>, %arg4: memref<1x512xf32, #tpu.memory_space<vmem>>, %arg5: memref<1x512xf32, #tpu.memory_space<vmem>>, %arg6: memref<512x512xbf16, #tpu.memory_space<vmem>>, %arg7: memref<512x512xf32, #tpu.memory_space<vmem>>) attributes {dimension_semantics = [#tpu.dimension_semantics<parallel>, #tpu.dimension_semantics<arbitrary>], iteration_bounds = array<i64: 2, 1>, scalar_prefetch = 0 : i64, scratch_operands = 1 : i64, tpu.core_type = #tpu.core_type<tc>, window_params = [{transform_indices = @transform_0, window_bounds = array<i64: 512, 512>}, {transform_indices = @transform_1, window_bounds = array<i64: 512, 512>}, {pipeline_mode = #tpu.pipeline_mode<synchronous>, transform_indices = @transform_2, window_bounds = array<i64: 1, 512>}, {pipeline_mode = #tpu.pipeline_mode<synchronous>, transform_indices = @transform_3, window_bounds = array<i64: 1, 512>}, {transform_indices = @transform_4, window_bounds = array<i64: 512, 512>}]} {
    %c0_i32 = arith.constant 0 : i32
    %0 = arith.cmpi eq, %arg1, %c0_i32 : i32
    %1 = arith.extui %0 : i1 to i32
    %c0_i32_0 = arith.constant 0 : i32
    %2 = arith.cmpi ne, %1, %c0_i32_0 : i32
    scf.if %2 {
      %cst_10 = arith.constant 0.000000e+00 : f32
      %12 = vector.broadcast %cst_10 : f32 to vector<512x512xf32>
      %c0_11 = arith.constant 0 : index
      %c0_12 = arith.constant 0 : index
      %13 = vector.load %arg7[%c0_11, %c0_12] : memref<512x512xf32, #tpu.memory_space<vmem>>, vector<512x512xf32>
      tpu.vector_store %arg7[%c0_11, %c0_12], %12 {strides = array<i32>} : memref<512x512xf32, #tpu.memory_space<vmem>>, vector<512x512xf32>,
    } else {
    }
    %c0 = arith.constant 0 : index
    %c0_1 = arith.constant 0 : index
    %3 = vector.load %arg7[%c0, %c0_1] : memref<512x512xf32, #tpu.memory_space<vmem>>, vector<512x512xf32>
    %c0_2 = arith.constant 0 : index
    %c0_3 = arith.constant 0 : index
    %4 = vector.load %arg2[%c0_2, %c0_3] : memref<512x512xbf16, #tpu.memory_space<vmem>>, vector<512x512xbf16>
    %c0_4 = arith.constant 0 : index
    %c0_5 = arith.constant 0 : index
    %5 = vector.load %arg3[%c0_4, %c0_5] : memref<512x512xbf16, #tpu.memory_space<vmem>>, vector<512x512xbf16>
    %cst = arith.constant dense<0.000000e+00> : vector<512x512xf32>
    %6 = tpu.matmul %4, %5, %cst {dimension_numbers = #tpu.dot_dimension_numbers<[1], [0], [0], [1], [0, 0, 1, 1], [], []>} : vector<512x512xbf16>, vector<512x512xbf16>, vector<512x512xf32> -> vector<512x512xf32>
    %7 = arith.addf %3, %6 : vector<512x512xf32>
    %c0_6 = arith.constant 0 : index
    %c0_7 = arith.constant 0 : index
    %8 = vector.load %arg7[%c0_6, %c0_7] : memref<512x512xf32, #tpu.memory_space<vmem>>, vector<512x512xf32>
    tpu.vector_store %arg7[%c0_6, %c0_7], %7 {strides = array<i32>} : memref<512x512xf32, #tpu.memory_space<vmem>>, vector<512x512xf32>,
    %c0_i32_8 = arith.constant 0 : i32
    %9 = arith.cmpi eq, %arg1, %c0_i32_8 : i32
    %10 = arith.extui %9 : i1 to i32
    %c0_i32_9 = arith.constant 0 : i32
    %11 = arith.cmpi ne, %10, %c0_i32_9 : i32
    scf.if %11 {
      %c0_10 = arith.constant 0 : index
      %c0_11 = arith.constant 0 : index
      %12 = vector.load %arg7[%c0_10, %c0_11] : memref<512x512xf32, #tpu.memory_space<vmem>>, vector<512x512xf32>
      %c0_12 = arith.constant 0 : index
      %c0_13 = arith.constant 0 : index
      %13 = vector.load %arg4[%c0_12, %c0_13] : memref<1x512xf32, #tpu.memory_space<vmem>>, vector<1x512xf32>
      %14 = vector.broadcast %13 : vector<1x512xf32> to vector<512x512xf32>
      %15 = arith.addf %12, %14 : vector<512x512xf32>
      %16 = arith.mulf %15, %15 : vector<512x512xf32>
      %cst_14 = arith.constant dense<0.000000e+00> : vector<512xf32>
      %17 = vector.multi_reduction <add>, %16, %cst_14 [1] : vector<512x512xf32> to vector<512xf32>
      %18 = vector.shape_cast %17 : vector<512xf32> to vector<512x1xf32>
      %cst_15 = arith.constant 5.120000e+02 : f32
      %19 = vector.broadcast %cst_15 : f32 to vector<512x1xf32>
      %20 = arith.divf %18, %19 : vector<512x1xf32>
      %cst_16 = arith.constant 9.99999997E-7 : f32
      %21 = vector.broadcast %cst_16 : f32 to vector<512x1xf32>
      %22 = arith.addf %20, %21 : vector<512x1xf32>
      %23 = math.rsqrt %22 : vector<512x1xf32>
      %24 = vector.broadcast %23 : vector<512x1xf32> to vector<512x512xf32>
      %25 = arith.mulf %15, %24 : vector<512x512xf32>
      %c0_17 = arith.constant 0 : index
      %c0_18 = arith.constant 0 : index
      %26 = vector.load %arg5[%c0_17, %c0_18] : memref<1x512xf32, #tpu.memory_space<vmem>>, vector<1x512xf32>
      %27 = vector.broadcast %26 : vector<1x512xf32> to vector<512x512xf32>
      %28 = arith.mulf %25, %27 : vector<512x512xf32>
      %29 = arith.truncf %28 : vector<512x512xf32> to vector<512x512xbf16>
      %c0_19 = arith.constant 0 : index
      %c0_20 = arith.constant 0 : index
      %30 = vector.load %arg6[%c0_19, %c0_20] : memref<512x512xbf16, #tpu.memory_space<vmem>>, vector<512x512xbf16>
      tpu.vector_store %arg6[%c0_19, %c0_20], %29 {strides = array<i32>} : memref<512x512xbf16, #tpu.memory_space<vmem>>, vector<512x512xbf16>,
    } else {
    }
    return
  }
  func.func @transform_0(%arg0: i32, %arg1: i32) -> (i32, i32) {
    %c0_i32 = arith.constant 0 : i32
    return %arg0, %arg1 : i32, i32
  }
  func.func @transform_1(%arg0: i32, %arg1: i32) -> (i32, i32) {
    %c0_i32 = arith.constant 0 : i32
    %c0_i32_0 = arith.constant 0 : i32
    return %arg1, %c0_i32 : i32, i32
  }
  func.func @transform_2(%arg0: i32, %arg1: i32) -> (i32, i32) {
    %c0_i32 = arith.constant 0 : i32
    %c0_i32_0 = arith.constant 0 : i32
    %c0_i32_1 = arith.constant 0 : i32
    return %c0_i32, %c0_i32_0 : i32, i32
  }
  func.func @transform_3(%arg0: i32, %arg1: i32) -> (i32, i32) {
    %c0_i32 = arith.constant 0 : i32
    %c0_i32_0 = arith.constant 0 : i32
    %c0_i32_1 = arith.constant 0 : i32
    return %c0_i32, %c0_i32_0 : i32, i32
  }
  func.func @transform_4(%arg0: i32, %arg1: i32) -> (i32, i32) {
    %c0_i32 = arith.constant 0 : i32
    %c0_i32_0 = arith.constant 0 : i32
    return %arg0, %c0_i32 : i32, i32
  }
}

</mosaic_0001>

<bundles_post_ra>
// kernel: tpu_custom_call.1
= control target key start
LH: loop header
LB: loop body
LE: loop exit
PB: predicated region body
PF: predicated region fallthrough
CT: control target
= control target key end

     0   :  { %9 = vsyncpa [#allocation4], 0  ;;  %s11385_s0 = inlined_call_operand.hbm [shape: bf16[1024,512], index: 0, kind: input, shape index: {}]   ;;  %s11386_s1 = inlined_call_operand.hbm [shape: bf16[512,512], index: 1, kind: input, shape index: {}]   ;;  %s11387_s2 = inlined_call_operand.vmem [shape: f32[1,512], index: 2, kind: input, shape index: {}]   ;;  %s11388_s3 = inlined_call_operand.vmem [shape: f32[1,512], index: 3, kind: input, shape index: {}]   ;;  %s11389_s4 = inlined_call_operand.hbm [shape: bf16[1024,512], index: 4, kind: output, shape index: {}]  }
   0x1   :  { %11 = vsyncpa [#allocation4 + $0x1], 0 }
   0x2   :  { %12 = vsyncpa [#allocation7], 0 }
   0x3   :  { %13 = vsyncpa [#allocation5], 0 }
   0x4   :  { %15 = vsyncpa [#allocation5 + $0x1], 0  ;;  %s8642_s15 = smov 0   ;;  %s8644_s16 = smov 0  }
   0x5   :  { %s8646_s17 = smov 0   ;;  %s8648_s18 = smov 0  }
   0x6   :  { %s8650_s19 = smov 0   ;;  %s8652_s20 = smov 0  }
   0x7 LB: > { %s7084_s21 = sadd.s32 4294967295, %s8608_s20   ;;  %s7085_s22 = sadd.s32 4294967294, %s8608_s20   ;;  %s8608_s20 = sphi %s8652_s20, %s21_s20   ;;  %s8604_s19 = sphi %s8650_s19, %s12039_s19   ;;  %s8600_s18 = sphi %s8648_s18, %s12038_s18   ;;  %s8596_s17 = sphi %s8646_s17, %s12037_s17   ;;  %s8592_s16 = sphi %s8644_s16, %s12036_s16   ;;  %s8588_s15 = sphi %s8642_s15, %s12035_s15  }
   0x8   : > { %p55_p0 = scmp.ne.s32.totalorder %s8592_s16, %s8588_s15  ;;  %p8676_p1 = scmp.eq.s32.totalorder %s7084_s21, 0 }
   0x9   : > { %p8680_p2 = scmp.eq.s32.totalorder %s7084_s21, 1  ;;  %p153_p3 = scmp.eq.s32.totalorder %s7085_s22, 1 }
   0xa   : > { %s11598_s23 = scalar_select %p8676_p1, 1, 0 }
   0xb   : > { %s11599_s24 = scalar_select %p8680_p2, 1, 0 }
   0xc   : > { %p8686_p4 = por %p8676_p1, %p55_p0  ;;  %p7086_p5 = scmp.ge.s32.totalorder %s8608_s20, 1 }
   0xd   : > { %p8691_p6 = por %p153_p3, %p55_p0  ;;  %p160_p7 = scmp.lt.s32.totalorder %s8608_s20, 3 }
   0xe   : > { %s11600_s25 = scalar_select %p8686_p4, 1, 0 }
   0xf   : > { %s11601_s26 = scalar_select %p8691_p6, 1, 0 }
  0x10   : > { %p8696_p8 = pnand %p7086_p5, %p160_p7  ;;  %s8610_s28 = smov [#allocation6]  }
  0x11   : > { %s176_s29 = sshll.u32 %s8610_s28, 4  ;;  %s33_s5 = sadd.s32 1, %s8604_s19  ;;  %s177_s29 = int_to_ptr.vmem [resolvable:$true] %s176_s29 }
  0x12   : > { %s11602_s27 = scalar_select %p8696_p8, 1, 0 }
  0x13   : > { %p7883_p9 = pneg %p8696_p8  ;;  %s8464_s8 = scalar_lea.hbm %s11386_s1, 16384 }
  0x14   : > { %p8465_p12 = scmp.ne.s32.totalorder %s11386_s1, %s8464_s8  ;;  %p8471_p5 = scmp.lt.u32.totalorder %s8464_s8, %s11386_s1 }
  0x15   : > { %p8705_p11 = pnand %p7883_p9, %p8676_p1 }
  0x17   : > { %p8466_p13 = pneg %p8705_p11 }
  0x19   : > { %p8467_p0 = pnand %p8466_p13, %p8465_p12 }
  0x1b   : > { %p8468_p3 = pneg %p8467_p0 }
  0x1d   : > { %p8473_p7 = pnand %p8471_p5, %p8468_p3 }
  0x1f   : > { %8476 = shalt.err (!%p8473_p7)
}
  0x20   : > { %s8477_s13 = scalar_lea.vmem %s177_s29, 16384  ;;  %p8485_p1 = scmp.lt.s32.totalorder %s177_s29, %s177_s29 }
  0x21   : > { %p8478_p9 = scmp.ne.s32.totalorder %s177_s29, %s8477_s13  ;;  %p8486_p4 = scmp.lt.s32.totalorder %s8477_s13, %s8477_s13 }
  0x23   : > { %p8480_p10 = pnand %p8478_p9, %p8466_p13  ;;  %p8487_p8 = por %p8486_p4, %p8485_p1 }
  0x25   : > { %p8481_p6 = pneg %p8480_p10 }
  0x27   : > { %p8488_p2 = pnand %p8487_p8, %p8481_p6 }
  0x29   : > { %8491 = shalt.err (!%p8488_p2)
}
  0x2a   : > { %s8611_s14 = smov 256   ;;  %s8612_s21 = smov 16  }
  0x2b   : > { %7886 = dma.hbm_to_vmem [thread:$0]  (!%p8705_p11), %s11386_s1, 16384, %s177_s29, [#allocation7], %s8611_s14, %s8611_s14, %s8612_s21  }
  0x2c   : > { %p35_p1 = scmp.ge.s32.totalorder %s33_s5, 2  ;;  %s42_s6 = sadd.s32 1, %s8596_s17 }
  0x2d   : > { %p49_p2 = scmp.ne.s32.totalorder %s8596_s17, %s8592_s16  ;;  %p50_p4 = scmp.eq.s32.totalorder %s8608_s20, 0 }
  0x2e   : > { %s12041_s5 = smov (%p35_p1, %s33_s5), 0  ;;  %p11605_p8 = scmp.ne.s32.totalorder %s11599_s24, 0 }
  0x2f   : > { %p8735_p6 = por %p50_p4, %p49_p2  ;;  %s37_s8 = ssub.s32 %s8604_s19, %s12041_s5 }
  0x30   : > { %p8741_p10 = por %p11605_p8, %p49_p2  ;;  %p7896_p12 = scmp.lt.s32.totalorder %s8608_s20, 2 }
  0x31   : > { %p40_p11 = scmp.eq.s32.totalorder %s37_s8, 0  ;;  %s196_s29 = sand.u32 1, %s8596_s17  }
  0x32   : > { %s7089_s9 = sshll.u32 %s196_s29, 10  ;;  %s7488_s11 = sshll.u32 %s8604_s19, 14 }
  0x33   : > { %s8750_s10 = scalar_select %p40_p11, %s8596_s17, %s42_s6  }
  0x34   : > { %s8756_s22 = scalar_lea.hbm %s11385_s0, %s7488_s11  ;;  %s200_s24 = scalar_lea.vmem [#allocation3], %s7089_s9 }
  0x35   : > { %s210_s28 = sshll.u32 %s200_s24, 4  ;;  %p8762_p13 = pnand %p7896_p12, %p8735_p6  ;;  %s8758_s28 = int_to_ptr.vmem [resolvable:$true] %s210_s28 }
  0x36   : > { %s8766_s6 = scalar_lea.sflag [#allocation4], %s196_s29  ;;  %s8492_s12 = scalar_lea.hbm %s8756_s22, 16384 }
  0x37   : > { %p8493_p0 = scmp.ne.s32.totalorder %s8756_s22, %s8492_s12  ;;  %p8494_p3 = pneg %p8762_p13 }
  0x38   : > { %s8497_s7 = scalar_lea.hbm %s11385_s0, 32768  ;;  %p8498_p9 = scmp.lt.u32.totalorder %s8756_s22, %s11385_s0 }
  0x39   : > { %p8495_p5 = pnand %p8494_p3, %p8493_p0  ;;  %p8499_p1 = scmp.lt.u32.totalorder %s8497_s7, %s8492_s12 }
  0x3a   : > { %p8501_p4 = scmp.lt.u32.totalorder %s8492_s12, %s8756_s22 }
  0x3b   : > { %p8496_p7 = pneg %p8495_p5  ;;  %p8500_p2 = por %p8499_p1, %p8498_p9 }
  0x3d   : > { %p8502_p6 = por %p8501_p4, %p8500_p2 }
  0x3f   : > { %p8503_p8 = pnand %p8502_p6, %p8496_p7 }
  0x41   : > { %8506 = shalt.err (!%p8503_p8)
}
  0x42   : > { %s8507_s29 = scalar_lea.vmem %s8758_s28, 16384  ;;  %s8613_s9 = smov [#allocation3]  }
  0x43   : > { %p8508_p12 = scmp.ne.s32.totalorder %s8758_s28, %s8507_s29  ;;  %s8512_s11 = sshll.u32 %s8613_s9, 4  ;;  %s8513_s11 = int_to_ptr.vmem [resolvable:$false] %s8512_s11 }
  0x44   : > { %s8514_s13 = scalar_lea.vmem %s8513_s11, 32768  ;;  %p8515_p5 = scmp.lt.s32.totalorder %s8758_s28, %s8513_s11 }
  0x45   : > { %p8510_p11 = pnand %p8508_p12, %p8494_p3  ;;  %p8516_p9 = scmp.lt.s32.totalorder %s8514_s13, %s8507_s29 }
  0x47   : > { %p8511_p0 = pneg %p8510_p11  ;;  %p8517_p1 = por %p8516_p9, %p8515_p5 }
  0x49   : > { %p8518_p2 = pnand %p8517_p1, %p8511_p0 }
  0x4b   : > { %8521 = shalt.err (!%p8518_p2)
}
  0x4c   : > { %7890 = dma.hbm_to_vmem [thread:$0]  (!%p8762_p13), %s8756_s22, 16384, %s8758_s28, %s8766_s6, %s8611_s14, %s8611_s14, %s8612_s21  }
  0x4d   : > { %p11608_p3 = scmp.ne.s32.totalorder %s11602_s27, 0 }
  0x4f   : > { %222 = sbr.rel (%p11608_p3) target bundleno = 1124 (0x464), region = 36 }
  0x56   : > { %s8800_s12 = sand.u32 1, %s8592_s16   ;;  %p11609_p7 = scmp.ne.s32.totalorder %s11600_s25, 0 }
  0x57   : > { %s7094_s7 = sshll.u32 %s8800_s12, 10  ;;  %s225_s24 = scalar_lea.sflag [#allocation4], %s8800_s12 }
  0x58   : > { %s8806_s8 = scalar_lea.vmem [#allocation3], %s7094_s7 }
  0x59   : > { %8575 = dma.done.wait (%p11609_p7), %s225_s24, 16384  }
  0x5a   : > { %8577 = vsyncadd (%p11609_p7), %s225_s24, 4294950912  ;;  %p11610_p13 = scmp.ne.s32.totalorder %s11598_s23, 0 }
  0x5c   : > { %8579 = dma.done.wait (%p11610_p13), [#allocation7], 16384  }
  0x5d   : > { %8581 = vsyncadd (%p11610_p13), [#allocation7], 4294950912  ;;  %v7952_v0 = vld [vmem:[#allocation6 + $0x4] ss:$16 sps:$4 sm:$0xff]   ;;  %v7954_v1 = vld [vmem:[#allocation6 + $0xc] ss:$16 sps:$4 sm:$0xff]  }
  0x5e   : > { %2313 = vmatprep.subr.bf16.mxu0 %v7952_v0  ;;  %v7956_v2 = vld [vmem:[#allocation6] ss:$16 sps:$4 sm:$0xff]   ;;  %v7957_v3 = vld [vmem:[#allocation6 + $0x8] ss:$16 sps:$4 sm:$0xff]   ;;  %3019 = vmatprep.subr.bf16.mxu1 %v7954_v1  ;;  %v7958_v4 = vld [vmem:[#allocation6 + $0x24] ss:$16 sps:$4 sm:$0xff]  }
  0x5f   : > { %2314 = vmatpush1.bf16.msra.mxu0 %v7956_v2  ;;  %3020 = vmatpush1.bf16.msra.mxu1 %v7957_v3  ;;  %v7960_v5 = vld [vmem:[#allocation6 + $0x2c] ss:$16 sps:$4 sm:$0xff]   ;;  %v7962_v6 = vld [vmem:[#allocation6 + $0x20] ss:$16 sps:$4 sm:$0xff]   ;;  %v7963_v7 = vld [vmem:[#allocation6 + $0x28] ss:$16 sps:$4 sm:$0xff]  }
  0x60   : > { %2315 = vmatprep.subr.bf16.mxu0 %v7958_v4  ;;  %3021 = vmatprep.subr.bf16.mxu1 %v7960_v5  ;;  %v7964_v8 = vld [vmem:[#allocation6 + $0x44] ss:$16 sps:$4 sm:$0xff]   ;;  %v7966_v9 = vld [vmem:[#allocation6 + $0x4c] ss:$16 sps:$4 sm:$0xff]   ;;  %v7968_v10 = vld [vmem:[#allocation6 + $0x40] ss:$16 sps:$4 sm:$0xff]  }
  0x61   : > { %v7969_v11 = vld [vmem:[#allocation6 + $0x48] ss:$16 sps:$4 sm:$0xff]   ;;  %v7970_v12 = vld [vmem:[#allocation6 + $0x64] ss:$16 sps:$4 sm:$0xff]   ;;  %v7972_v13 = vld [vmem:[#allocation6 + $0x6c] ss:$16 sps:$4 sm:$0xff]  }
  0x62   : > { %v7974_v14 = vld [vmem:[#allocation6 + $0x60] ss:$16 sps:$4 sm:$0xff]   ;;  %v7975_v15 = vld [vmem:[#allocation6 + $0x68] ss:$16 sps:$4 sm:$0xff]   ;;  %v7976_v16 = vld [vmem:[#allocation6 + $0x84] ss:$16 sps:$4 sm:$0xff]  }
  0x63   : > { %2316 = vmatpush1.bf16.msra.mxu0 %v7962_v6  ;;  %3022 = vmatpush1.bf16.msra.mxu1 %v7963_v7  ;;  %v7978_v17 = vld [vmem:[#allocation6 + $0x8c] ss:$16 sps:$4 sm:$0xff]   ;;  %v7980_v18 = vld [vmem:[#allocation6 + $0x80] ss:$16 sps:$4 sm:$0xff]   ;;  %v7981_v19 = vld [vmem:[#allocation6 + $0x88] ss:$16 sps:$4 sm:$0xff]  }
  0x64   : > { %2317 = vmatprep.subr.bf16.mxu0 %v7964_v8  ;;  %3023 = vmatprep.subr.bf16.mxu1 %v7966_v9  ;;  %v7982_v20 = vld [vmem:[#allocation6 + $0xa4] ss:$16 sps:$4 sm:$0xff]   ;;  %v7984_v21 = vld [vmem:[#allocation6 + $0xac] ss:$16 sps:$4 sm:$0xff]   ;;  %v7986_v22 = vld [vmem:[#allocation6 + $0xa0] ss:$16 sps:$4 sm:$0xff]  }
  0x65   : > { %v7987_v23 = vld [vmem:[#allocation6 + $0xa8] ss:$16 sps:$4 sm:$0xff]   ;;  %v7988_v24 = vld [vmem:[#allocation6 + $0xc4] ss:$16 sps:$4 sm:$0xff]   ;;  %v7990_v25 = vld [vmem:[#allocation6 + $0xcc] ss:$16 sps:$4 sm:$0xff]  }
  0x66   : > { %v7992_v26 = vld [vmem:[#allocation6 + $0xc0] ss:$16 sps:$4 sm:$0xff]   ;;  %v7993_v27 = vld [vmem:[#allocation6 + $0xc8] ss:$16 sps:$4 sm:$0xff]   ;;  %v7994_v28 = vld [vmem:[#allocation6 + $0xe4] ss:$16 sps:$4 sm:$0xff]  }
  0x67   : > { %2318 = vmatpush1.bf16.msra.mxu0 %v7968_v10  ;;  %3024 = vmatpush1.bf16.msra.mxu1 %v7969_v11  ;;  %v7996_v29 = vld [vmem:[#allocation6 + $0xec] ss:$16 sps:$4 sm:$0xff]   ;;  %v7998_v30 = vld [vmem:[#allocation6 + $0xe0] ss:$16 sps:$4 sm:$0xff]   ;;  %v7999_v31 = vld [vmem:[#allocation6 + $0xe8] ss:$16 sps:$4 sm:$0xff]  }
  0x68   : > { %2319 = vmatprep.subr.bf16.mxu0 %v7970_v12  ;;  %3025 = vmatprep.subr.bf16.mxu1 %v7972_v13  ;;  %v8000_v32 = vld [vmem:[#allocation6 + $0x104] ss:$16 sps:$4 sm:$0xff]   ;;  %v8002_v33 = vld [vmem:[#allocation6 + $0x10c] ss:$16 sps:$4 sm:$0xff]   ;;  %v8004_v34 = vld [vmem:[#allocation6 + $0x100] ss:$16 sps:$4 sm:$0xff]  }
  0x69   : > { %v8005_v35 = vld [vmem:[#allocation6 + $0x108] ss:$16 sps:$4 sm:$0xff]   ;;  %v8006_v36 = vld [vmem:[#allocation6 + $0x124] ss:$16 sps:$4 sm:$0xff]   ;;  %v8008_v37 = vld [vmem:[#allocation6 + $0x12c] ss:$16 sps:$4 sm:$0xff]  }
  0x6a   : > { %v8010_v38 = vld [vmem:[#allocation6 + $0x120] ss:$16 sps:$4 sm:$0xff]   ;;  %v8011_v39 = vld [vmem:[#allocation6 + $0x128] ss:$16 sps:$4 sm:$0xff]   ;;  %v8012_v40 = vld [vmem:[#allocation6 + $0x144] ss:$16 sps:$4 sm:$0xff]  }
  0x6b   : > { %2320 = vmatpush1.bf16.msra.mxu0 %v7974_v14  ;;  %3026 = vmatpush1.bf16.msra.mxu1 %v7975_v15  ;;  %v8014_v41 = vld [vmem:[#allocation6 + $0x14c] ss:$16 sps:$4 sm:$0xff]   ;;  %v8016_v42 = vld [vmem:[#allocation6 + $0x140] ss:$16 sps:$4 sm:$0xff]   ;;  %v8017_v43 = vld [vmem:[#allocation6 + $0x148] ss:$16 sps:$4 sm:$0xff]  }
  0x6c   : > { %2321 = vmatprep.subr.bf16.mxu0 %v7976_v16  ;;  %3027 = vmatprep.subr.bf16.mxu1 %v7978_v17  ;;  %v8018_v44 = vld [vmem:[#allocation6 + $0x164] ss:$16 sps:$4 sm:$0xff]   ;;  %v8020_v45 = vld [vmem:[#allocation6 + $0x16c] ss:$16 sps:$4 sm:$0xff]   ;;  %v8022_v46 = vld [vmem:[#allocation6 + $0x160] ss:$16 sps:$4 sm:$0xff]  }
  0x6d   : > { %v8023_v47 = vld [vmem:[#allocation6 + $0x168] ss:$16 sps:$4 sm:$0xff]   ;;  %v8050_v48 = vld [vmem:[%s8806_s8 + $0x4] ss:$16 sps:$4 sm:$0xff]   ;;  %v8026_v50 = vld [vmem:[#allocation6 + $0x18c] ss:$16 sps:$4 sm:$0xff]  }
  0x6e   : > { %v8024_v49 = vld [vmem:[#allocation6 + $0x184] ss:$16 sps:$4 sm:$0xff]   ;;  %2345 = vmatprep.mubr.bf16.mxu0 %v8050_v48  ;;  %3051 = vmatprep.mubr.bf16.mxu1 %v8050_v48  ;;  %v8028_v51 = vld [vmem:[#allocation6 + $0x180] ss:$16 sps:$4 sm:$0xff]   ;;  %v8029_v52 = vld [vmem:[#allocation6 + $0x188] ss:$16 sps:$4 sm:$0xff]  }
  0x6f   : > { %2322 = vmatpush1.bf16.msra.mxu0 %v7980_v18  ;;  %3028 = vmatpush1.bf16.msra.mxu1 %v7981_v19  ;;  %v8030_v53 = vld [vmem:[#allocation6 + $0x1a4] ss:$16 sps:$4 sm:$0xff]   ;;  %v8032_v54 = vld [vmem:[#allocation6 + $0x1ac] ss:$16 sps:$4 sm:$0xff]   ;;  %v8034_v55 = vld [vmem:[#allocation6 + $0x1a0] ss:$16 sps:$4 sm:$0xff]  }
  0x70   : > { %2323 = vmatprep.subr.bf16.mxu0 %v7982_v20  ;;  %3029 = vmatprep.subr.bf16.mxu1 %v7984_v21  ;;  %v8035_v56 = vld [vmem:[#allocation6 + $0x1a8] ss:$16 sps:$4 sm:$0xff]   ;;  %v8036_v57 = vld [vmem:[#allocation6 + $0x1c4] ss:$16 sps:$4 sm:$0xff]   ;;  %v8038_v58 = vld [vmem:[#allocation6 + $0x1cc] ss:$16 sps:$4 sm:$0xff]  }
  0x71   : > { %v8040_v59 = vld [vmem:[#allocation6 + $0x1c0] ss:$16 sps:$4 sm:$0xff]   ;;  %v8041_v60 = vld [vmem:[#allocation6 + $0x1c8] ss:$16 sps:$4 sm:$0xff]   ;;  %v8042_v61 = vld [vmem:[#allocation6 + $0x1e4] ss:$16 sps:$4 sm:$0xff]  }
  0x72   : > { %v8044_v62 = vld [vmem:[#allocation6 + $0x1ec] ss:$16 sps:$4 sm:$0xff]   ;;  %v8046_v63 = vld [vmem:[#allocation6 + $0x1e0] ss:$16 sps:$4 sm:$0xff]   ;;  %v8047_v0 = vld [vmem:[#allocation6 + $0x1e8] ss:$16 sps:$4 sm:$0xff]  }
  0x73   : > { %2324 = vmatpush1.bf16.msra.mxu0 %v7986_v22  ;;  %3030 = vmatpush1.bf16.msra.mxu1 %v7987_v23  ;;  %v8053_v1 = vld [vmem:[#allocation6 + $0x204] ss:$16 sps:$4 sm:$0xff]   ;;  %v8056_v2 = vld [vmem:[#allocation6 + $0x20c] ss:$16 sps:$4 sm:$0xff]   ;;  %v8048_v3 = vld [vmem:[%s8806_s8] ss:$16 sps:$4 sm:$0xff]  }
  0x74   : > { %2325 = vmatprep.subr.bf16.mxu0 %v7988_v24  ;;  %3031 = vmatprep.subr.bf16.mxu1 %v7990_v25  ;;  %v8051_v4 = vld [vmem:[#allocation6 + $0x200] ss:$16 sps:$4 sm:$0xff]   ;;  %v8054_v5 = vld [vmem:[#allocation6 + $0x208] ss:$16 sps:$4 sm:$0xff]   ;;  %v8057_v6 = vld [vmem:[%s8806_s8 + $0x24] ss:$16 sps:$4 sm:$0xff]  }
  0x75   : > { %v8065_v7 = vld [vmem:[#allocation6 + $0x224] ss:$16 sps:$4 sm:$0xff]   ;;  %v8068_v8 = vld [vmem:[#allocation6 + $0x22c] ss:$16 sps:$4 sm:$0xff]   ;;  %v8063_v9 = vld [vmem:[#allocation6 + $0x220] ss:$16 sps:$4 sm:$0xff]  }
  0x76   : > { %v8066_v10 = vld [vmem:[#allocation6 + $0x228] ss:$16 sps:$4 sm:$0xff]   ;;  %v8077_v11 = vld [vmem:[#allocation6 + $0x244] ss:$16 sps:$4 sm:$0xff]   ;;  %v8080_v12 = vld [vmem:[#allocation6 + $0x24c] ss:$16 sps:$4 sm:$0xff]  }
  0x77   : > { %2326 = vmatpush1.bf16.msra.mxu0 %v7992_v26  ;;  %3032 = vmatpush1.bf16.msra.mxu1 %v7993_v27  ;;  %v8059_v13 = vld [vmem:[%s8806_s8 + $0x20] ss:$16 sps:$4 sm:$0xff]   ;;  %v8060_v14 = vld [vmem:[%s8806_s8 + $0x44] ss:$16 sps:$4 sm:$0xff]   ;;  %v8078_v16 = vld [vmem:[#allocation6 + $0x248] ss:$16 sps:$4 sm:$0xff]  }
  0x78   : > { %2327 = vmatprep.subr.bf16.mxu0 %v7994_v28  ;;  %3033 = vmatprep.subr.bf16.mxu1 %v7996_v29  ;;  %v8075_v15 = vld [vmem:[#allocation6 + $0x240] ss:$16 sps:$4 sm:$0xff]   ;;  %v8089_v17 = vld [vmem:[#allocation6 + $0x264] ss:$16 sps:$4 sm:$0xff]   ;;  %v8092_v18 = vld [vmem:[#allocation6 + $0x26c] ss:$16 sps:$4 sm:$0xff]  }
  0x79   : > { %v8087_v19 = vld [vmem:[#allocation6 + $0x260] ss:$16 sps:$4 sm:$0xff]   ;;  %v8090_v20 = vld [vmem:[#allocation6 + $0x268] ss:$16 sps:$4 sm:$0xff]   ;;  %v8101_v21 = vld [vmem:[#allocation6 + $0x284] ss:$16 sps:$4 sm:$0xff]  }
  0x7a   : > { %v8104_v22 = vld [vmem:[#allocation6 + $0x28c] ss:$16 sps:$4 sm:$0xff]   ;;  %v8062_v23 = vld [vmem:[%s8806_s8 + $0x40] ss:$16 sps:$4 sm:$0xff]   ;;  %v8069_v24 = vld [vmem:[%s8806_s8 + $0x64] ss:$16 sps:$4 sm:$0xff]  }
  0x7b   : > { %2328 = vmatpush1.bf16.msra.mxu0 %v7998_v30  ;;  %3034 = vmatpush1.bf16.msra.mxu1 %v7999_v31  ;;  %v8099_v25 = vld [vmem:[#allocation6 + $0x280] ss:$16 sps:$4 sm:$0xff]   ;;  %v8102_v26 = vld [vmem:[#allocation6 + $0x288] ss:$16 sps:$4 sm:$0xff]   ;;  %v8113_v27 = vld [vmem:[#allocation6 + $0x2a4] ss:$16 sps:$4 sm:$0xff]  }
  0x7c   : > { %2329 = vmatprep.subr.bf16.mxu0 %v8000_v32  ;;  %3035 = vmatprep.subr.bf16.mxu1 %v8002_v33  ;;  %v8116_v28 = vld [vmem:[#allocation6 + $0x2ac] ss:$16 sps:$4 sm:$0xff]   ;;  %v8111_v29 = vld [vmem:[#allocation6 + $0x2a0] ss:$16 sps:$4 sm:$0xff]   ;;  %v8114_v30 = vld [vmem:[#allocation6 + $0x2a8] ss:$16 sps:$4 sm:$0xff]  }
  0x7d   : > { %v8125_v31 = vld [vmem:[#allocation6 + $0x2c4] ss:$16 sps:$4 sm:$0xff]   ;;  %v8128_v32 = vld [vmem:[#allocation6 + $0x2cc] ss:$16 sps:$4 sm:$0xff]   ;;  %v8071_v33 = vld [vmem:[%s8806_s8 + $0x60] ss:$16 sps:$4 sm:$0xff]  }
  0x7e   : > { %v8164_v48 = vld [vmem:[#allocation6 + $0x32c] ss:$16 sps:$4 sm:$0xff]   ;;  %s9873_s21 = scalar_lea.vmem [#allocation8], %s7094_s7  ;;  %s7618_s22 = sshll.u32 %s8600_s18, 14 }
  0x7f   : > { %2330 = vmatpush1.bf16.msra.mxu0 %v8004_v34  ;;  %3036 = vmatpush1.bf16.msra.mxu1 %v8005_v35  ;;  %v8072_v34 = vld [vmem:[%s8806_s8 + $0x84] ss:$16 sps:$4 sm:$0xff]   ;;  %v8123_v35 = vld [vmem:[#allocation6 + $0x2c0] ss:$16 sps:$4 sm:$0xff]   ;;  %s6988_s28 = sshll.u32 %s9873_s21, 4  ;;  %s11332_s9 = scalar_lea.hbm %s11389_s4, %s7618_s22  ;;  %s11334_s28 = int_to_ptr.vmem [resolvable:$true] %s6988_s28 }
  0x80   : > { %2331 = vmatprep.subr.bf16.mxu0 %v8006_v36  ;;  %3037 = vmatprep.subr.bf16.mxu1 %v8008_v37  ;;  %v8126_v36 = vld [vmem:[#allocation6 + $0x2c8] ss:$16 sps:$4 sm:$0xff]   ;;  %v8137_v37 = vld [vmem:[#allocation6 + $0x2e4] ss:$16 sps:$4 sm:$0xff]   ;;  %s6974_s18 = scalar_lea.sflag [#allocation5], %s8800_s12  ;;  %s8522_s11 = scalar_lea.vmem %s11334_s28, 16384 }
  0x81   : > { %p8523_p4 = scmp.ne.s32.totalorder %s11334_s28, %s8522_s11  ;;  %s8614_s13 = smov [#allocation8]  }
  0x82   : > { %s8526_s7 = sshll.u32 %s8614_s13, 4  ;;  %s8527_s7 = int_to_ptr.vmem [resolvable:$false] %s8526_s7 }
  0x83   : > { %2332 = vmatpush1.bf16.msra.mxu0 %v8010_v38  ;;  %3038 = vmatpush1.bf16.msra.mxu1 %v8011_v39  ;;  %v8140_v38 = vld [vmem:[#allocation6 + $0x2ec] ss:$16 sps:$4 sm:$0xff]   ;;  %v8135_v39 = vld [vmem:[#allocation6 + $0x2e0] ss:$16 sps:$4 sm:$0xff]   ;;  %p8524_p6 = pnand %p8523_p4, %p8741_p10  ;;  %s8528_s24 = scalar_lea.vmem %s8527_s7, 32768 }
  0x84   : > { %2333 = vmatprep.subr.bf16.mxu0 %v8012_v40  ;;  %3039 = vmatprep.subr.bf16.mxu1 %v8014_v41  ;;  %v8074_v40 = vld [vmem:[%s8806_s8 + $0x80] ss:$16 sps:$4 sm:$0xff]   ;;  %v8138_v41 = vld [vmem:[#allocation6 + $0x2e8] ss:$16 sps:$4 sm:$0xff]   ;;  %p8529_p12 = scmp.lt.s32.totalorder %s11334_s28, %s8527_s7  ;;  %p8530_p11 = scmp.lt.s32.totalorder %s8528_s24, %s8522_s11 }
  0x85   : > { %p8525_p8 = pneg %p8524_p6 }
  0x86   : > { %p8531_p0 = por %p8530_p11, %p8529_p12 }
  0x87   : > { %2334 = vmatpush1.bf16.msra.mxu0 %v8016_v42  ;;  %3040 = vmatpush1.bf16.msra.mxu1 %v8017_v43  ;;  %v8081_v42 = vld [vmem:[%s8806_s8 + $0xa4] ss:$16 sps:$4 sm:$0xff]  }
  0x88   : > { %2335 = vmatprep.subr.bf16.mxu0 %v8018_v44  ;;  %3041 = vmatprep.subr.bf16.mxu1 %v8020_v45  ;;  %v8149_v43 = vld [vmem:[#allocation6 + $0x304] ss:$16 sps:$4 sm:$0xff]   ;;  %v8152_v44 = vld [vmem:[#allocation6 + $0x30c] ss:$16 sps:$4 sm:$0xff]   ;;  %v8147_v45 = vld [vmem:[#allocation6 + $0x300] ss:$16 sps:$4 sm:$0xff]   ;;  %p8532_p5 = pnand %p8531_p0, %p8525_p8 }
  0x8b   : > { %2336 = vmatpush1.bf16.msra.mxu0 %v8022_v46  ;;  %3042 = vmatpush1.bf16.msra.mxu1 %v8023_v47  ;;  %v8150_v46 = vld [vmem:[#allocation6 + $0x308] ss:$16 sps:$4 sm:$0xff]   ;;  %v8161_v47 = vld [vmem:[#allocation6 + $0x324] ss:$16 sps:$4 sm:$0xff]  }
  0x8c   : > { %2337 = vmatprep.subr.bf16.mxu0 %v8024_v49  ;;  %3043 = vmatprep.subr.bf16.mxu1 %v8026_v50  ;;  %v8159_v49 = vld [vmem:[#allocation6 + $0x320] ss:$16 sps:$4 sm:$0xff]   ;;  %v8162_v50 = vld [vmem:[#allocation6 + $0x328] ss:$16 sps:$4 sm:$0xff]  }
  0x8f   : > { %2338 = vmatpush1.bf16.msra.mxu0 %v8028_v51  ;;  %3044 = vmatpush1.bf16.msra.mxu1 %v8029_v52  ;;  %v8173_v51 = vld [vmem:[#allocation6 + $0x344] ss:$16 sps:$4 sm:$0xff]   ;;  %v8083_v52 = vld [vmem:[%s8806_s8 + $0xa0] ss:$16 sps:$4 sm:$0xff]  }
  0x90   : > { %2339 = vmatprep.subr.bf16.mxu0 %v8030_v53  ;;  %3045 = vmatprep.subr.bf16.mxu1 %v8032_v54  ;;  %v8176_v53 = vld [vmem:[#allocation6 + $0x34c] ss:$16 sps:$4 sm:$0xff]   ;;  %v8084_v54 = vld [vmem:[%s8806_s8 + $0xc4] ss:$16 sps:$4 sm:$0xff]  }
  0x93   : > { %2340 = vmatpush1.bf16.msra.mxu0 %v8034_v55  ;;  %3046 = vmatpush1.bf16.msra.mxu1 %v8035_v56  ;;  %v8171_v55 = vld [vmem:[#allocation6 + $0x340] ss:$16 sps:$4 sm:$0xff]   ;;  %v8174_v56 = vld [vmem:[#allocation6 + $0x348] ss:$16 sps:$4 sm:$0xff]  }
  0x94   : > { %2341 = vmatprep.subr.bf16.mxu0 %v8036_v57  ;;  %3047 = vmatprep.subr.bf16.mxu1 %v8038_v58  ;;  %v8086_v57 = vld [vmem:[%s8806_s8 + $0xc0] ss:$16 sps:$4 sm:$0xff]   ;;  %v8093_v58 = vld [vmem:[%s8806_s8 + $0xe4] ss:$16 sps:$4 sm:$0xff]  }
  0x97   : > { %2342 = vmatpush1.bf16.msra.mxu0 %v8040_v59  ;;  %3048 = vmatpush1.bf16.msra.mxu1 %v8041_v60  ;;  %v8183_v59 = vld [vmem:[#allocation6 + $0x360] ss:$16 sps:$4 sm:$0xff]   ;;  %v8185_v60 = vld [vmem:[#allocation6 + $0x364] ss:$16 sps:$4 sm:$0xff]  }
  0x98   : > { %2343 = vmatprep.subr.bf16.mxu0 %v8042_v61  ;;  %3049 = vmatprep.subr.bf16.mxu1 %v8044_v62  ;;  %v8186_v61 = vld [vmem:[#allocation6 + $0x368] ss:$16 sps:$4 sm:$0xff]   ;;  %v8188_v62 = vld [vmem:[#allocation6 + $0x36c] ss:$16 sps:$4 sm:$0xff]  }
  0x9b   : > { %2344 = vmatpush1.bf16.msra.mxu0 %v8046_v63  ;;  %3050 = vmatpush1.bf16.msra.mxu1 %v8047_v0  ;;  %v8095_v63 = vld [vmem:[%s8806_s8 + $0xe0] ss:$16 sps:$4 sm:$0xff]   ;;  %v8096_v0 = vld [vmem:[%s8806_s8 + $0x104] ss:$16 sps:$4 sm:$0xff]  }
  0x9c   : > { %2666 = vmatprep.subr.bf16.mxu0 %v8053_v1  ;;  %3372 = vmatprep.subr.bf16.mxu1 %v8056_v2  ;;  %v8098_v1 = vld [vmem:[%s8806_s8 + $0x100] ss:$16 sps:$4 sm:$0xff]   ;;  %v8105_v2 = vld [vmem:[%s8806_s8 + $0x124] ss:$16 sps:$4 sm:$0xff]  }
  0x9e   : > { %2346 = vmatmul.mubr.bf16.vlgmr.msra.gmra.mrb[0].mxu0 %v8048_v3  ;;  %3052 = vmatmul.mubr.bf16.vlgmr.msra.gmra.mrb[0].mxu1 %v8048_v3  ;;  %v8195_v3 = vld [vmem:[#allocation6 + $0x380] ss:$16 sps:$4 sm:$0xff]  }
  0x9f   : > { %2667 = vmatpush1.bf16.msra.mxu0 %v8051_v4  ;;  %3373 = vmatpush1.bf16.msra.mxu1 %v8054_v5  ;;  %v8197_v4 = vld [vmem:[#allocation6 + $0x384] ss:$16 sps:$4 sm:$0xff]   ;;  %v8198_v5 = vld [vmem:[#allocation6 + $0x388] ss:$16 sps:$4 sm:$0xff]  }
  0xa0   : > { %2355 = vmatprep.mubr.bf16.mxu0 %v8057_v6  ;;  %3061 = vmatprep.mubr.bf16.mxu1 %v8057_v6  ;;  %v8200_v6 = vld [vmem:[#allocation6 + $0x38c] ss:$16 sps:$4 sm:$0xff]  }
  0xa1   : > { %2668 = vmatprep.subr.bf16.mxu0 %v8065_v7  ;;  %3374 = vmatprep.subr.bf16.mxu1 %v8068_v8  ;;  %v8107_v7 = vld [vmem:[%s8806_s8 + $0x120] ss:$16 sps:$4 sm:$0xff]   ;;  %v8108_v8 = vld [vmem:[%s8806_s8 + $0x144] ss:$16 sps:$4 sm:$0xff]  }
  0xa3   : > { %2669 = vmatpush1.bf16.msra.mxu0 %v8063_v9  ;;  %3375 = vmatpush1.bf16.msra.mxu1 %v8066_v10  ;;  %v8110_v9 = vld [vmem:[%s8806_s8 + $0x140] ss:$16 sps:$4 sm:$0xff]   ;;  %v8117_v10 = vld [vmem:[%s8806_s8 + $0x164] ss:$16 sps:$4 sm:$0xff]  }
  0xa4   : > { %2670 = vmatprep.subr.bf16.mxu0 %v8077_v11  ;;  %3376 = vmatprep.subr.bf16.mxu1 %v8080_v12  ;;  %v8207_v11 = vld [vmem:[#allocation6 + $0x3a0] ss:$16 sps:$4 sm:$0xff]   ;;  %v8209_v12 = vld [vmem:[#allocation6 + $0x3a4] ss:$16 sps:$4 sm:$0xff]  }
  0xa6   : > { %2356 = vmatmul.mubr.bf16.gmra.mrb[4].mxu0 %v8059_v13  ;;  %3062 = vmatmul.mubr.bf16.gmra.mrb[4].mxu1 %v8059_v13  ;;  %v8210_v13 = vld [vmem:[#allocation6 + $0x3a8] ss:$16 sps:$4 sm:$0xff]  }
  0xa7   : > { %2365 = vmatprep.mubr.bf16.mxu0 %v8060_v14  ;;  %3071 = vmatprep.mubr.bf16.mxu1 %v8060_v14  ;;  %v8212_v14 = vld [vmem:[#allocation6 + $0x3ac] ss:$16 sps:$4 sm:$0xff]  }
  0xa8   : > { %2671 = vmatpush1.bf16.msra.mxu0 %v8075_v15  ;;  %3377 = vmatpush1.bf16.msra.mxu1 %v8078_v16  ;;  %v8119_v15 = vld [vmem:[%s8806_s8 + $0x160] ss:$16 sps:$4 sm:$0xff]   ;;  %v8120_v16 = vld [vmem:[%s8806_s8 + $0x184] ss:$16 sps:$4 sm:$0xff]  }
  0xa9   : > { %2672 = vmatprep.subr.bf16.mxu0 %v8089_v17  ;;  %3378 = vmatprep.subr.bf16.mxu1 %v8092_v18  ;;  %v8122_v17 = vld [vmem:[%s8806_s8 + $0x180] ss:$16 sps:$4 sm:$0xff]   ;;  %v8129_v18 = vld [vmem:[%s8806_s8 + $0x1a4] ss:$16 sps:$4 sm:$0xff]  }
  0xac   : > { %2673 = vmatpush1.bf16.msra.mxu0 %v8087_v19  ;;  %3379 = vmatpush1.bf16.msra.mxu1 %v8090_v20  ;;  %v8219_v19 = vld [vmem:[#allocation6 + $0x3c0] ss:$16 sps:$4 sm:$0xff]   ;;  %v8221_v20 = vld [vmem:[#allocation6 + $0x3c4] ss:$16 sps:$4 sm:$0xff]  }
  0xad   : > { %2674 = vmatprep.subr.bf16.mxu0 %v8101_v21  ;;  %3380 = vmatprep.subr.bf16.mxu1 %v8104_v22  ;;  %v8222_v21 = vld [vmem:[#allocation6 + $0x3c8] ss:$16 sps:$4 sm:$0xff]   ;;  %v8224_v22 = vld [vmem:[#allocation6 + $0x3cc] ss:$16 sps:$4 sm:$0xff]  }
  0xae   : > { %2366 = vmatmul.mubr.bf16.gmra.mrb[8].mxu0 %v8062_v23  ;;  %3072 = vmatmul.mubr.bf16.gmra.mrb[8].mxu1 %v8062_v23  ;;  %v8131_v23 = vld [vmem:[%s8806_s8 + $0x1a0] ss:$16 sps:$4 sm:$0xff]  }
  0xaf   : > { %2375 = vmatprep.mubr.bf16.mxu0 %v8069_v24  ;;  %3081 = vmatprep.mubr.bf16.mxu1 %v8069_v24  ;;  %v8132_v24 = vld [vmem:[%s8806_s8 + $0x1c4] ss:$16 sps:$4 sm:$0xff]  }
  0xb0   : > { %2675 = vmatpush1.bf16.msra.mxu0 %v8099_v25  ;;  %3381 = vmatpush1.bf16.msra.mxu1 %v8102_v26  ;;  %v8134_v25 = vld [vmem:[%s8806_s8 + $0x1c0] ss:$16 sps:$4 sm:$0xff]   ;;  %v8141_v26 = vld [vmem:[%s8806_s8 + $0x1e4] ss:$16 sps:$4 sm:$0xff]  }
  0xb1   : > { %2676 = vmatprep.subr.bf16.mxu0 %v8113_v27  ;;  %3382 = vmatprep.subr.bf16.mxu1 %v8116_v28  ;;  %v8231_v27 = vld [vmem:[#allocation6 + $0x3e0] ss:$16 sps:$4 sm:$0xff]   ;;  %v8233_v28 = vld [vmem:[#allocation6 + $0x3e4] ss:$16 sps:$4 sm:$0xff]  }
  0xb4   : > { %2677 = vmatpush1.bf16.msra.mxu0 %v8111_v29  ;;  %3383 = vmatpush1.bf16.msra.mxu1 %v8114_v30  ;;  %v8234_v29 = vld [vmem:[#allocation6 + $0x3e8] ss:$16 sps:$4 sm:$0xff]   ;;  %v8236_v30 = vld [vmem:[#allocation6 + $0x3ec] ss:$16 sps:$4 sm:$0xff]  }
  0xb5   : > { %2678 = vmatprep.subr.bf16.mxu0 %v8125_v31  ;;  %3384 = vmatprep.subr.bf16.mxu1 %v8128_v32  ;;  %v8143_v31 = vld [vmem:[%s8806_s8 + $0x1e0] ss:$16 sps:$4 sm:$0xff]   ;;  %v8144_v32 = vld [vmem:[%s8806_s8 + $0x204] ss:$16 sps:$4 sm:$0xff]  }
  0xb6   : > { %2376 = vmatmul.mubr.bf16.gmra.mrb[12].mxu0 %v8071_v33  ;;  %3082 = vmatmul.mubr.bf16.gmra.mrb[12].mxu1 %v8071_v33  ;;  %v8146_v33 = vld [vmem:[%s8806_s8 + $0x200] ss:$16 sps:$4 sm:$0xff]  }
  0xb7   : > { %2385 = vmatprep.mubr.bf16.mxu0 %v8072_v34  ;;  %3091 = vmatprep.mubr.bf16.mxu1 %v8072_v34  ;;  %v8153_v34 = vld [vmem:[%s8806_s8 + $0x224] ss:$16 sps:$4 sm:$0xff]  }
  0xb8   : > { %2679 = vmatpush1.bf16.msra.mxu0 %v8123_v35  ;;  %3385 = vmatpush1.bf16.msra.mxu1 %v8126_v36  ;;  %v8155_v35 = vld [vmem:[%s8806_s8 + $0x220] ss:$16 sps:$4 sm:$0xff]   ;;  %v8156_v36 = vld [vmem:[%s8806_s8 + $0x244] ss:$16 sps:$4 sm:$0xff]  }
  0xb9   : > { %2680 = vmatprep.subr.bf16.mxu0 %v8137_v37  ;;  %3386 = vmatprep.subr.bf16.mxu1 %v8140_v38  ;;  %v8158_v37 = vld [vmem:[%s8806_s8 + $0x240] ss:$16 sps:$4 sm:$0xff]   ;;  %v8165_v38 = vld [vmem:[%s8806_s8 + $0x264] ss:$16 sps:$4 sm:$0xff]  }
  0xbc   : > { %2681 = vmatpush1.bf16.msra.mxu0 %v8135_v39  ;;  %3387 = vmatpush1.bf16.msra.mxu1 %v8138_v41  ;;  %v8167_v39 = vld [vmem:[%s8806_s8 + $0x260] ss:$16 sps:$4 sm:$0xff]  }
  0xbd   : > { %2682 = vmatprep.subr.bf16.mxu0 %v8149_v43  ;;  %3388 = vmatprep.subr.bf16.mxu1 %v8152_v44  ;;  %v8170_v41 = vld [vmem:[%s8806_s8 + $0x280] ss:$16 sps:$4 sm:$0xff]   ;;  %v8180_v44 = vld [vmem:[%s8806_s8 + $0x2c4] ss:$16 sps:$4 sm:$0xff]  }
  0xbe   : > { %2386 = vmatmul.mubr.bf16.gmra.mrb[16].mxu0 %v8074_v40  ;;  %3092 = vmatmul.mubr.bf16.gmra.mrb[16].mxu1 %v8074_v40  ;;  %v8168_v40 = vld [vmem:[%s8806_s8 + $0x284] ss:$16 sps:$4 sm:$0xff]   ;;  %v8179_v43 = vld [vmem:[%s8806_s8 + $0x2a0] ss:$16 sps:$4 sm:$0xff]  }
  0xbf   : > { %2395 = vmatprep.mubr.bf16.mxu0 %v8081_v42  ;;  %3101 = vmatprep.mubr.bf16.mxu1 %v8081_v42  ;;  %v8177_v42 = vld [vmem:[%s8806_s8 + $0x2a4] ss:$16 sps:$4 sm:$0xff]  }
  0xc0   : > { %2683 = vmatpush1.bf16.msra.mxu0 %v8147_v45  ;;  %3389 = vmatpush1.bf16.msra.mxu1 %v8150_v46  ;;  %v8182_v45 = vld [vmem:[%s8806_s8 + $0x2c0] ss:$16 sps:$4 sm:$0xff]   ;;  %v8189_v46 = vld [vmem:[%s8806_s8 + $0x2e4] ss:$16 sps:$4 sm:$0xff]  }
  0xc1   : > { %2684 = vmatprep.subr.bf16.mxu0 %v8161_v47  ;;  %3390 = vmatprep.subr.bf16.mxu1 %v8164_v48  ;;  %v8191_v47 = vld [vmem:[%s8806_s8 + $0x2e0] ss:$16 sps:$4 sm:$0xff]   ;;  %v8192_v48 = vld [vmem:[%s8806_s8 + $0x304] ss:$16 sps:$4 sm:$0xff]  }
  0xc4   : > { %2685 = vmatpush1.bf16.msra.mxu0 %v8159_v49  ;;  %3391 = vmatpush1.bf16.msra.mxu1 %v8162_v50  ;;  %v8194_v49 = vld [vmem:[%s8806_s8 + $0x300] ss:$16 sps:$4 sm:$0xff]   ;;  %v8201_v50 = vld [vmem:[%s8806_s8 + $0x324] ss:$16 sps:$4 sm:$0xff]  }
  0xc5   : > { %2686 = vmatprep.subr.bf16.mxu0 %v8173_v51  ;;  %3392 = vmatprep.subr.bf16.mxu1 %v8176_v53  ;;  %v8203_v51 = vld [vmem:[%s8806_s8 + $0x320] ss:$16 sps:$4 sm:$0xff]  }
  0xc6   : > { %2396 = vmatmul.mubr.bf16.gmra.mrb[20].mxu0 %v8083_v52  ;;  %3102 = vmatmul.mubr.bf16.gmra.mrb[20].mxu1 %v8083_v52  ;;  %v8204_v52 = vld [vmem:[%s8806_s8 + $0x344] ss:$16 sps:$4 sm:$0xff]   ;;  %v8206_v53 = vld [vmem:[%s8806_s8 + $0x340] ss:$16 sps:$4 sm:$0xff]  }
  0xc7   : > { %2405 = vmatprep.mubr.bf16.mxu0 %v8084_v54  ;;  %3111 = vmatprep.mubr.bf16.mxu1 %v8084_v54  ;;  %v8213_v54 = vld [vmem:[%s8806_s8 + $0x364] ss:$16 sps:$4 sm:$0xff]  }
  0xc8   : > { %2687 = vmatpush1.bf16.msra.mxu0 %v8171_v55  ;;  %3393 = vmatpush1.bf16.msra.mxu1 %v8174_v56  ;;  %v8215_v55 = vld [vmem:[%s8806_s8 + $0x360] ss:$16 sps:$4 sm:$0xff]   ;;  %v8216_v56 = vld [vmem:[%s8806_s8 + $0x384] ss:$16 sps:$4 sm:$0xff]  }
  0xc9   : > { %2688 = vmatprep.subr.bf16.mxu0 %v8185_v60  ;;  %3394 = vmatprep.subr.bf16.mxu1 %v8188_v62  ;;  %v8228_v60 = vld [vmem:[%s8806_s8 + $0x3c4] ss:$16 sps:$4 sm:$0xff]  }
  0xca   : > { %v8237_v62 = vld [vmem:[%s8806_s8 + $0x3e4] ss:$16 sps:$4 sm:$0xff]  }
  0xcc   : > { %2689 = vmatpush1.bf16.msra.mxu0 %v8183_v59  ;;  %3395 = vmatpush1.bf16.msra.mxu1 %v8186_v61  ;;  %v8227_v59 = vld [vmem:[%s8806_s8 + $0x3a0] ss:$16 sps:$4 sm:$0xff]  }
  0xcd   : > { %2690 = vmatprep.subr.bf16.mxu0 %v8197_v4  ;;  %3396 = vmatprep.subr.bf16.mxu1 %v8200_v6  ;;  %v8230_v61 = vld [vmem:[%s8806_s8 + $0x3c0] ss:$16 sps:$4 sm:$0xff]   ;;  %v8246_v4 = vld [vmem:[%s8806_s8 + $0x4c] ss:$16 sps:$4 sm:$0xff]  }
  0xce   : > { %2406 = vmatmul.mubr.bf16.gmra.mrb[24].mxu0 %v8086_v57  ;;  %3112 = vmatmul.mubr.bf16.gmra.mrb[24].mxu1 %v8086_v57  ;;  %v8218_v57 = vld [vmem:[%s8806_s8 + $0x380] ss:$16 sps:$4 sm:$0xff]   ;;  %v8249_v6 = vld [vmem:[%s8806_s8 + $0x6c] ss:$16 sps:$4 sm:$0xff]  }
  0xcf   : > { %2415 = vmatprep.mubr.bf16.mxu0 %v8093_v58  ;;  %3121 = vmatprep.mubr.bf16.mxu1 %v8093_v58  ;;  %v8225_v58 = vld [vmem:[%s8806_s8 + $0x3a4] ss:$16 sps:$4 sm:$0xff]  }
  0xd0   : > { %2691 = vmatpush1.bf16.msra.mxu0 %v8195_v3  ;;  %3397 = vmatpush1.bf16.msra.mxu1 %v8198_v5  ;;  %v8245_v3 = vld [vmem:[%s8806_s8 + $0x28] ss:$16 sps:$4 sm:$0xff]  }
  0xd1   : > { %2692 = vmatprep.subr.bf16.mxu0 %v8209_v12  ;;  %3398 = vmatprep.subr.bf16.mxu1 %v8212_v14  ;;  %v8248_v5 = vld [vmem:[%s8806_s8 + $0x48] ss:$16 sps:$4 sm:$0xff]   ;;  %v8258_v12 = vld [vmem:[%s8806_s8 + $0xcc] ss:$16 sps:$4 sm:$0xff]  }
  0xd2   : > { %v8261_v14 = vld [vmem:[%s8806_s8 + $0xec] ss:$16 sps:$4 sm:$0xff]  }
  0xd4   : > { %2693 = vmatpush1.bf16.msra.mxu0 %v8207_v11  ;;  %3399 = vmatpush1.bf16.msra.mxu1 %v8210_v13  ;;  %v8257_v11 = vld [vmem:[%s8806_s8 + $0xa8] ss:$16 sps:$4 sm:$0xff]  }
  0xd5   : > { %2694 = vmatprep.subr.bf16.mxu0 %v8221_v20  ;;  %3400 = vmatprep.subr.bf16.mxu1 %v8224_v22  ;;  %v8260_v13 = vld [vmem:[%s8806_s8 + $0xc8] ss:$16 sps:$4 sm:$0xff]   ;;  %v8270_v20 = vld [vmem:[%s8806_s8 + $0x14c] ss:$16 sps:$4 sm:$0xff]  }
  0xd6   : > { %2416 = vmatmul.mubr.bf16.gmra.mrb[28].mxu0 %v8095_v63  ;;  %3122 = vmatmul.mubr.bf16.gmra.mrb[28].mxu1 %v8095_v63  ;;  %v8239_v63 = vld [vmem:[%s8806_s8 + $0x3e0] ss:$16 sps:$4 sm:$0xff]   ;;  %v8273_v22 = vld [vmem:[%s8806_s8 + $0x16c] ss:$16 sps:$4 sm:$0xff]  }
  0xd7   : > { %2425 = vmatprep.mubr.bf16.mxu0 %v8096_v0  ;;  %3131 = vmatprep.mubr.bf16.mxu1 %v8096_v0  ;;  %v8242_v0 = vld [vmem:[%s8806_s8 + $0xc] ss:$16 sps:$4 sm:$0xff]  }
  0xd8   : > { %2695 = vmatpush1.bf16.msra.mxu0 %v8219_v19  ;;  %3401 = vmatpush1.bf16.msra.mxu1 %v8222_v21  ;;  %v8269_v19 = vld [vmem:[%s8806_s8 + $0x128] ss:$16 sps:$4 sm:$0xff]  }
  0xd9   : > { %2696 = vmatprep.subr.bf16.mxu0 %v8233_v28  ;;  %3402 = vmatprep.subr.bf16.mxu1 %v8236_v30  ;;  %v8272_v21 = vld [vmem:[%s8806_s8 + $0x148] ss:$16 sps:$4 sm:$0xff]   ;;  %v8282_v28 = vld [vmem:[%s8806_s8 + $0x1cc] ss:$16 sps:$4 sm:$0xff]  }
  0xda   : > { %v8285_v30 = vld [vmem:[%s8806_s8 + $0x1ec] ss:$16 sps:$4 sm:$0xff]  }
  0xdc   : > { %2697 = vmatpush1.bf16.msra.mxu0 %v8231_v27  ;;  %3403 = vmatpush1.bf16.msra.mxu1 %v8234_v29  ;;  %v8281_v27 = vld [vmem:[%s8806_s8 + $0x1a8] ss:$16 sps:$4 sm:$0xff]  }
  0xdd   : > { %v8284_v29 = vld [vmem:[%s8806_s8 + $0x1c8] ss:$16 sps:$4 sm:$0xff]  }
  0xde   : > { %2426 = vmatmul.mubr.bf16.gmra.mrb[32].mxu0 %v8098_v1  ;;  %3132 = vmatmul.mubr.bf16.gmra.mrb[32].mxu1 %v8098_v1  ;;  %v8240_v1 = vld [vmem:[%s8806_s8 + $0x8] ss:$16 sps:$4 sm:$0xff]  }
  0xdf   : > { %2435 = vmatprep.mubr.bf16.mxu0 %v8105_v2  ;;  %3141 = vmatprep.mubr.bf16.mxu1 %v8105_v2  ;;  %v8243_v2 = vld [vmem:[%s8806_s8 + $0x2c] ss:$16 sps:$4 sm:$0xff]  }
  0xe6   : > { %2436 = vmatmul.mubr.bf16.gmra.mrb[36].mxu0 %v8107_v7  ;;  %3142 = vmatmul.mubr.bf16.gmra.mrb[36].mxu1 %v8107_v7  ;;  %v8251_v7 = vld [vmem:[%s8806_s8 + $0x68] ss:$16 sps:$4 sm:$0xff]  }
  0xe7   : > { %2445 = vmatprep.mubr.bf16.mxu0 %v8108_v8  ;;  %3151 = vmatprep.mubr.bf16.mxu1 %v8108_v8  ;;  %v8252_v8 = vld [vmem:[%s8806_s8 + $0x8c] ss:$16 sps:$4 sm:$0xff]  }
  0xee   : > { %2446 = vmatmul.mubr.bf16.gmra.mrb[40].mxu0 %v8110_v9  ;;  %3152 = vmatmul.mubr.bf16.gmra.mrb[40].mxu1 %v8110_v9  ;;  %v8254_v9 = vld [vmem:[%s8806_s8 + $0x88] ss:$16 sps:$4 sm:$0xff]  }
  0xef   : > { %2455 = vmatprep.mubr.bf16.mxu0 %v8117_v10  ;;  %3161 = vmatprep.mubr.bf16.mxu1 %v8117_v10  ;;  %v8255_v10 = vld [vmem:[%s8806_s8 + $0xac] ss:$16 sps:$4 sm:$0xff]  }
  0xf6   : > { %2456 = vmatmul.mubr.bf16.gmra.mrb[44].mxu0 %v8119_v15  ;;  %3162 = vmatmul.mubr.bf16.gmra.mrb[44].mxu1 %v8119_v15  ;;  %v8263_v15 = vld [vmem:[%s8806_s8 + $0xe8] ss:$16 sps:$4 sm:$0xff]  }
  0xf7   : > { %2465 = vmatprep.mubr.bf16.mxu0 %v8120_v16  ;;  %3171 = vmatprep.mubr.bf16.mxu1 %v8120_v16  ;;  %v8264_v16 = vld [vmem:[%s8806_s8 + $0x10c] ss:$16 sps:$4 sm:$0xff]  }
  0xfe   : > { %2466 = vmatmul.mubr.bf16.gmra.mrb[48].mxu0 %v8122_v17  ;;  %3172 = vmatmul.mubr.bf16.gmra.mrb[48].mxu1 %v8122_v17  ;;  %v8266_v17 = vld [vmem:[%s8806_s8 + $0x108] ss:$16 sps:$4 sm:$0xff]  }
  0xff   : > { %2475 = vmatprep.mubr.bf16.mxu0 %v8129_v18  ;;  %3181 = vmatprep.mubr.bf16.mxu1 %v8129_v18  ;;  %v8267_v18 = vld [vmem:[%s8806_s8 + $0x12c] ss:$16 sps:$4 sm:$0xff]  }
 0x106   : > { %2476 = vmatmul.mubr.bf16.gmra.mrb[52].mxu0 %v8131_v23  ;;  %3182 = vmatmul.mubr.bf16.gmra.mrb[52].mxu1 %v8131_v23  ;;  %v8275_v23 = vld [vmem:[%s8806_s8 + $0x168] ss:$16 sps:$4 sm:$0xff]  }
 0x107   : > { %2485 = vmatprep.mubr.bf16.mxu0 %v8132_v24  ;;  %3191 = vmatprep.mubr.bf16.mxu1 %v8132_v24  ;;  %v8276_v24 = vld [vmem:[%s8806_s8 + $0x18c] ss:$16 sps:$4 sm:$0xff]  }
 0x10e   : > { %2486 = vmatmul.mubr.bf16.gmra.mrb[56].mxu0 %v8134_v25  ;;  %3192 = vmatmul.mubr.bf16.gmra.mrb[56].mxu1 %v8134_v25  ;;  %v8278_v25 = vld [vmem:[%s8806_s8 + $0x188] ss:$16 sps:$4 sm:$0xff]  }
 0x10f   : > { %2495 = vmatprep.mubr.bf16.mxu0 %v8141_v26  ;;  %3201 = vmatprep.mubr.bf16.mxu1 %v8141_v26  ;;  %v8279_v26 = vld [vmem:[%s8806_s8 + $0x1ac] ss:$16 sps:$4 sm:$0xff]  }
 0x116   : > { %2496 = vmatmul.mubr.bf16.gmra.mrb[60].mxu0 %v8143_v31  ;;  %3202 = vmatmul.mubr.bf16.gmra.mrb[60].mxu1 %v8143_v31  ;;  %v8287_v31 = vld [vmem:[%s8806_s8 + $0x1e8] ss:$16 sps:$4 sm:$0xff]  }
 0x117   : > { %2505 = vmatprep.mubr.bf16.mxu0 %v8144_v32  ;;  %3211 = vmatprep.mubr.bf16.mxu1 %v8144_v32  ;;  %v8288_v32 = vld [vmem:[%s8806_s8 + $0x20c] ss:$16 sps:$4 sm:$0xff]  }
 0x11e   : > { %2506 = vmatmul.mubr.bf16.gmra.mrb[64].mxu0 %v8146_v33  ;;  %3212 = vmatmul.mubr.bf16.gmra.mrb[64].mxu1 %v8146_v33  ;;  %v8290_v33 = vld [vmem:[%s8806_s8 + $0x208] ss:$16 sps:$4 sm:$0xff]  }
 0x11f   : > { %2515 = vmatprep.mubr.bf16.mxu0 %v8153_v34  ;;  %3221 = vmatprep.mubr.bf16.mxu1 %v8153_v34  ;;  %v8291_v34 = vld [vmem:[%s8806_s8 + $0x22c] ss:$16 sps:$4 sm:$0xff]  }
 0x126   : > { %2516 = vmatmul.mubr.bf16.gmra.mrb[68].mxu0 %v8155_v35  ;;  %3222 = vmatmul.mubr.bf16.gmra.mrb[68].mxu1 %v8155_v35  ;;  %v8293_v35 = vld [vmem:[%s8806_s8 + $0x228] ss:$16 sps:$4 sm:$0xff]  }
 0x127   : > { %2525 = vmatprep.mubr.bf16.mxu0 %v8156_v36  ;;  %3231 = vmatprep.mubr.bf16.mxu1 %v8156_v36  ;;  %v8294_v36 = vld [vmem:[%s8806_s8 + $0x24c] ss:$16 sps:$4 sm:$0xff]  }
 0x12e   : > { %2526 = vmatmul.mubr.bf16.gmra.mrb[72].mxu0 %v8158_v37  ;;  %3232 = vmatmul.mubr.bf16.gmra.mrb[72].mxu1 %v8158_v37  ;;  %v8296_v37 = vld [vmem:[%s8806_s8 + $0x248] ss:$16 sps:$4 sm:$0xff]  }
 0x12f   : > { %2535 = vmatprep.mubr.bf16.mxu0 %v8165_v38  ;;  %3241 = vmatprep.mubr.bf16.mxu1 %v8165_v38  ;;  %v8297_v38 = vld [vmem:[%s8806_s8 + $0x26c] ss:$16 sps:$4 sm:$0xff]  }
 0x136   : > { %2536 = vmatmul.mubr.bf16.gmra.mrb[76].mxu0 %v8167_v39  ;;  %3242 = vmatmul.mubr.bf16.gmra.mrb[76].mxu1 %v8167_v39  ;;  %v8299_v39 = vld [vmem:[%s8806_s8 + $0x268] ss:$16 sps:$4 sm:$0xff]  }
 0x137   : > { %2545 = vmatprep.mubr.bf16.mxu0 %v8168_v40  ;;  %3251 = vmatprep.mubr.bf16.mxu1 %v8168_v40  ;;  %v8300_v40 = vld [vmem:[%s8806_s8 + $0x28c] ss:$16 sps:$4 sm:$0xff]  }
 0x13e   : > { %2546 = vmatmul.mubr.bf16.gmra.mrb[80].mxu0 %v8170_v41  ;;  %3252 = vmatmul.mubr.bf16.gmra.mrb[80].mxu1 %v8170_v41  ;;  %v8302_v41 = vld [vmem:[%s8806_s8 + $0x288] ss:$16 sps:$4 sm:$0xff]  }
 0x13f   : > { %2555 = vmatprep.mubr.bf16.mxu0 %v8177_v42  ;;  %3261 = vmatprep.mubr.bf16.mxu1 %v8177_v42  ;;  %v8303_v42 = vld [vmem:[%s8806_s8 + $0x2ac] ss:$16 sps:$4 sm:$0xff]  }
 0x146   : > { %2556 = vmatmul.mubr.bf16.gmra.mrb[84].mxu0 %v8179_v43  ;;  %3262 = vmatmul.mubr.bf16.gmra.mrb[84].mxu1 %v8179_v43  ;;  %v8305_v43 = vld [vmem:[%s8806_s8 + $0x2a8] ss:$16 sps:$4 sm:$0xff]  }
 0x147   : > { %2565 = vmatprep.mubr.bf16.mxu0 %v8180_v44  ;;  %3271 = vmatprep.mubr.bf16.mxu1 %v8180_v44  ;;  %v8306_v44 = vld [vmem:[%s8806_s8 + $0x2cc] ss:$16 sps:$4 sm:$0xff]  }
 0x14e   : > { %2566 = vmatmul.mubr.bf16.gmra.mrb[88].mxu0 %v8182_v45  ;;  %3272 = vmatmul.mubr.bf16.gmra.mrb[88].mxu1 %v8182_v45  ;;  %v8308_v45 = vld [vmem:[%s8806_s8 + $0x2c8] ss:$16 sps:$4 sm:$0xff]  }
 0x14f   : > { %2575 = vmatprep.mubr.bf16.mxu0 %v8189_v46  ;;  %3281 = vmatprep.mubr.bf16.mxu1 %v8189_v46  ;;  %v8309_v46 = vld [vmem:[%s8806_s8 + $0x2ec] ss:$16 sps:$4 sm:$0xff]  }
 0x156   : > { %2576 = vmatmul.mubr.bf16.gmra.mrb[92].mxu0 %v8191_v47  ;;  %3282 = vmatmul.mubr.bf16.gmra.mrb[92].mxu1 %v8191_v47  ;;  %v8311_v47 = vld [vmem:[%s8806_s8 + $0x2e8] ss:$16 sps:$4 sm:$0xff]  }
 0x157   : > { %2585 = vmatprep.mubr.bf16.mxu0 %v8192_v48  ;;  %3291 = vmatprep.mubr.bf16.mxu1 %v8192_v48  ;;  %v8312_v48 = vld [vmem:[%s8806_s8 + $0x30c] ss:$16 sps:$4 sm:$0xff]  }
 0x15e   : > { %2586 = vmatmul.mubr.bf16.gmra.mrb[96].mxu0 %v8194_v49  ;;  %3292 = vmatmul.mubr.bf16.gmra.mrb[96].mxu1 %v8194_v49  ;;  %v8314_v49 = vld [vmem:[%s8806_s8 + $0x308] ss:$16 sps:$4 sm:$0xff]  }
 0x15f   : > { %2595 = vmatprep.mubr.bf16.mxu0 %v8201_v50  ;;  %3301 = vmatprep.mubr.bf16.mxu1 %v8201_v50  ;;  %v8315_v50 = vld [vmem:[%s8806_s8 + $0x32c] ss:$16 sps:$4 sm:$0xff]  }
 0x166   : > { %2596 = vmatmul.mubr.bf16.gmra.mrb[100].mxu0 %v8203_v51  ;;  %3302 = vmatmul.mubr.bf16.gmra.mrb[100].mxu1 %v8203_v51  ;;  %v8317_v51 = vld [vmem:[%s8806_s8 + $0x328] ss:$16 sps:$4 sm:$0xff]  }
 0x167   : > { %2605 = vmatprep.mubr.bf16.mxu0 %v8204_v52  ;;  %3311 = vmatprep.mubr.bf16.mxu1 %v8204_v52  ;;  %v4498_v52 = vlaneseq }
 0x16e   : > { %2606 = vmatmul.mubr.bf16.gmra.mrb[104].mxu0 %v8206_v53  ;;  %3312 = vmatmul.mubr.bf16.gmra.mrb[104].mxu1 %v8206_v53  ;;  %v8318_v53 = vld [vmem:[%s8806_s8 + $0x34c] ss:$16 sps:$4 sm:$0xff]  }
 0x16f   : > { %2615 = vmatprep.mubr.bf16.mxu0 %v8213_v54  ;;  %3321 = vmatprep.mubr.bf16.mxu1 %v8213_v54  ;;  %v8933_v54 = vshrl.u32 %v4498_v52, 7 }
 0x176   : > { %2616 = vmatmul.mubr.bf16.gmra.mrb[108].mxu0 %v8215_v55  ;;  %3322 = vmatmul.mubr.bf16.gmra.mrb[108].mxu1 %v8215_v55  ;;  %v8320_v55 = vld [vmem:[%s8806_s8 + $0x348] ss:$16 sps:$4 sm:$0xff]  }
 0x177   : > { %2625 = vmatprep.mubr.bf16.mxu0 %v8216_v56  ;;  %3331 = vmatprep.mubr.bf16.mxu1 %v8216_v56  ;;  %v11397_v56 = vsub.s32 0, %v8933_v54 }
 0x17e   : > { %2626 = vmatmul.mubr.bf16.gmra.mrb[112].mxu0 %v8218_v57  ;;  %3332 = vmatmul.mubr.bf16.gmra.mrb[112].mxu1 %v8218_v57  ;;  %v4496_v57 = vld [vmem:[%s11387_s2] sm:$0xf] }
 0x17f   : > { %2635 = vmatprep.mubr.bf16.mxu0 %v8225_v58  ;;  %3341 = vmatprep.mubr.bf16.mxu1 %v8225_v58  ;;  %v11395_v58 = vsub.s32 2, %v8933_v54 }
 0x186   : > { %2636 = vmatmul.mubr.bf16.gmra.mrb[116].mxu0 %v8227_v59  ;;  %3342 = vmatmul.mubr.bf16.gmra.mrb[116].mxu1 %v8227_v59  ;;  %v11396_v59 = vsub.s32 1, %v8933_v54 }
 0x187   : > { %2645 = vmatprep.mubr.bf16.mxu0 %v8228_v60  ;;  %3351 = vmatprep.mubr.bf16.mxu1 %v8228_v60  ;;  %v8321_v60 = vld [vmem:[%s8806_s8 + $0x36c] ss:$16 sps:$4 sm:$0xff]  }
 0x18e   : > { %2646 = vmatmul.mubr.bf16.gmra.mrb[120].mxu0 %v8230_v61  ;;  %3352 = vmatmul.mubr.bf16.gmra.mrb[120].mxu1 %v8230_v61  ;;  %v11394_v61 = vsub.s32 3, %v8933_v54 }
 0x18f   : > { %2655 = vmatprep.mubr.bf16.mxu0 %v8237_v62  ;;  %3361 = vmatprep.mubr.bf16.mxu1 %v8237_v62  ;;  %v8946_v62 = vrot.slane %v4496_v57, %v11397_v56 }
 0x196   : > { %2656 = vmatmul.mubr.bf16.gmra.mrb[124].mxu0 %v8239_v63  ;;  %3362 = vmatmul.mubr.bf16.gmra.mrb[124].mxu1 %v8239_v63  ;;  %v8950_v63 = vrot.slane %v4496_v57, %v11395_v58 }
 0x197   : > { %2698 = vmatprep.mubr.bf16.mxu0 %v8242_v0  ;;  %3404 = vmatprep.mubr.bf16.mxu1 %v8242_v0  ;;  %v8954_v0 = vrot.slane %v4496_v57, %v11396_v59 }
 0x19e   : > { %2699 = vmatmul.mubr.bf16.vlgmr.msra.gmra.mrb[0].mxu0 %v8240_v1  ;;  %3405 = vmatmul.mubr.bf16.vlgmr.msra.gmra.mrb[0].mxu1 %v8240_v1 }
 0x19f   : > { %2708 = vmatprep.mubr.bf16.mxu0 %v8243_v2  ;;  %3414 = vmatprep.mubr.bf16.mxu1 %v8243_v2 }
 0x1a6   : > { %2709 = vmatmul.mubr.bf16.gmra.mrb[4].mxu0 %v8245_v3  ;;  %3415 = vmatmul.mubr.bf16.gmra.mrb[4].mxu1 %v8245_v3  ;;  %v8958_v3 = vrot.slane %v4496_v57, %v11394_v61 }
 0x1a7   : > { %2718 = vmatprep.mubr.bf16.mxu0 %v8246_v4  ;;  %3424 = vmatprep.mubr.bf16.mxu1 %v8246_v4 }
 0x1ae   : > { %2719 = vmatmul.mubr.bf16.gmra.mrb[8].mxu0 %v8248_v5  ;;  %3425 = vmatmul.mubr.bf16.gmra.mrb[8].mxu1 %v8248_v5 }
 0x1af   : > { %2728 = vmatprep.mubr.bf16.mxu0 %v8249_v6  ;;  %3434 = vmatprep.mubr.bf16.mxu1 %v8249_v6 }
 0x1b6   : > { %2729 = vmatmul.mubr.bf16.gmra.mrb[12].mxu0 %v8251_v7  ;;  %3435 = vmatmul.mubr.bf16.gmra.mrb[12].mxu1 %v8251_v7  ;;  %v8323_v7 = vld [vmem:[%s8806_s8 + $0x368] ss:$16 sps:$4 sm:$0xff]  }
 0x1b7   : > { %2738 = vmatprep.mubr.bf16.mxu0 %v8252_v8  ;;  %3444 = vmatprep.mubr.bf16.mxu1 %v8252_v8 }
 0x1be   : > { %2739 = vmatmul.mubr.bf16.gmra.mrb[16].mxu0 %v8254_v9  ;;  %3445 = vmatmul.mubr.bf16.gmra.mrb[16].mxu1 %v8254_v9 }
 0x1bf   : > { %2748 = vmatprep.mubr.bf16.mxu0 %v8255_v10  ;;  %3454 = vmatprep.mubr.bf16.mxu1 %v8255_v10 }
 0x1c6   : > { %2749 = vmatmul.mubr.bf16.gmra.mrb[20].mxu0 %v8257_v11  ;;  %3455 = vmatmul.mubr.bf16.gmra.mrb[20].mxu1 %v8257_v11 }
 0x1c7   : > { %2758 = vmatprep.mubr.bf16.mxu0 %v8258_v12  ;;  %3464 = vmatprep.mubr.bf16.mxu1 %v8258_v12  ;;  %v8324_v12 = vld [vmem:[%s8806_s8 + $0x38c] ss:$16 sps:$4 sm:$0xff]  }
 0x1ce   : > { %2759 = vmatmul.mubr.bf16.gmra.mrb[24].mxu0 %v8260_v13  ;;  %3465 = vmatmul.mubr.bf16.gmra.mrb[24].mxu1 %v8260_v13 }
 0x1cf   : > { %2768 = vmatprep.mubr.bf16.mxu0 %v8261_v14  ;;  %3474 = vmatprep.mubr.bf16.mxu1 %v8261_v14 }
 0x1d6   : > { %2769 = vmatmul.mubr.bf16.gmra.mrb[28].mxu0 %v8263_v15  ;;  %3475 = vmatmul.mubr.bf16.gmra.mrb[28].mxu1 %v8263_v15 }
 0x1d7   : > { %2778 = vmatprep.mubr.bf16.mxu0 %v8264_v16  ;;  %3484 = vmatprep.mubr.bf16.mxu1 %v8264_v16 }
 0x1de   : > { %2779 = vmatmul.mubr.bf16.gmra.mrb[32].mxu0 %v8266_v17  ;;  %3485 = vmatmul.mubr.bf16.gmra.mrb[32].mxu1 %v8266_v17 }
 0x1df   : > { %2788 = vmatprep.mubr.bf16.mxu0 %v8267_v18  ;;  %3494 = vmatprep.mubr.bf16.mxu1 %v8267_v18 }
 0x1e6   : > { %2789 = vmatmul.mubr.bf16.gmra.mrb[36].mxu0 %v8269_v19  ;;  %3495 = vmatmul.mubr.bf16.gmra.mrb[36].mxu1 %v8269_v19 }
 0x1e7   : > { %2798 = vmatprep.mubr.bf16.mxu0 %v8270_v20  ;;  %3504 = vmatprep.mubr.bf16.mxu1 %v8270_v20 }
 0x1ee   : > { %2799 = vmatmul.mubr.bf16.gmra.mrb[40].mxu0 %v8272_v21  ;;  %3505 = vmatmul.mubr.bf16.gmra.mrb[40].mxu1 %v8272_v21 }
 0x1ef   : > { %2808 = vmatprep.mubr.bf16.mxu0 %v8273_v22  ;;  %3514 = vmatprep.mubr.bf16.mxu1 %v8273_v22 }
 0x1f6   : > { %2809 = vmatmul.mubr.bf16.gmra.mrb[44].mxu0 %v8275_v23  ;;  %3515 = vmatmul.mubr.bf16.gmra.mrb[44].mxu1 %v8275_v23 }
 0x1f7   : > { %2818 = vmatprep.mubr.bf16.mxu0 %v8276_v24  ;;  %3524 = vmatprep.mubr.bf16.mxu1 %v8276_v24 }
 0x1fe   : > { %2819 = vmatmul.mubr.bf16.gmra.mrb[48].mxu0 %v8278_v25  ;;  %3525 = vmatmul.mubr.bf16.gmra.mrb[48].mxu1 %v8278_v25 }
 0x1ff   : > { %2828 = vmatprep.mubr.bf16.mxu0 %v8279_v26  ;;  %3534 = vmatprep.mubr.bf16.mxu1 %v8279_v26 }
 0x206   : > { %2829 = vmatmul.mubr.bf16.gmra.mrb[52].mxu0 %v8281_v27  ;;  %3535 = vmatmul.mubr.bf16.gmra.mrb[52].mxu1 %v8281_v27 }
 0x207   : > { %2838 = vmatprep.mubr.bf16.mxu0 %v8282_v28  ;;  %3544 = vmatprep.mubr.bf16.mxu1 %v8282_v28 }
 0x20e   : > { %2839 = vmatmul.mubr.bf16.gmra.mrb[56].mxu0 %v8284_v29  ;;  %3545 = vmatmul.mubr.bf16.gmra.mrb[56].mxu1 %v8284_v29 }
 0x20f   : > { %2848 = vmatprep.mubr.bf16.mxu0 %v8285_v30  ;;  %3554 = vmatprep.mubr.bf16.mxu1 %v8285_v30 }
 0x216   : > { %2849 = vmatmul.mubr.bf16.gmra.mrb[60].mxu0 %v8287_v31  ;;  %3555 = vmatmul.mubr.bf16.gmra.mrb[60].mxu1 %v8287_v31 }
 0x217   : > { %2858 = vmatprep.mubr.bf16.mxu0 %v8288_v32  ;;  %3564 = vmatprep.mubr.bf16.mxu1 %v8288_v32 }
 0x21e   : > { %2859 = vmatmul.mubr.bf16.gmra.mrb[64].mxu0 %v8290_v33  ;;  %3565 = vmatmul.mubr.bf16.gmra.mrb[64].mxu1 %v8290_v33 }
 0x21f   : > { %2868 = vmatprep.mubr.bf16.mxu0 %v8291_v34  ;;  %3574 = vmatprep.mubr.bf16.mxu1 %v8291_v34 }
 0x226   : > { %2869 = vmatmul.mubr.bf16.gmra.mrb[68].mxu0 %v8293_v35  ;;  %3575 = vmatmul.mubr.bf16.gmra.mrb[68].mxu1 %v8293_v35 }
 0x227   : > { %2878 = vmatprep.mubr.bf16.mxu0 %v8294_v36  ;;  %3584 = vmatprep.mubr.bf16.mxu1 %v8294_v36  ;;  %v8326_v36 = vld [vmem:[%s8806_s8 + $0x388] ss:$16 sps:$4 sm:$0xff]  }
 0x22e   : > { %2879 = vmatmul.mubr.bf16.gmra.mrb[72].mxu0 %v8296_v37  ;;  %3585 = vmatmul.mubr.bf16.gmra.mrb[72].mxu1 %v8296_v37 }
 0x22f   : > { %2888 = vmatprep.mubr.bf16.mxu0 %v8297_v38  ;;  %3594 = vmatprep.mubr.bf16.mxu1 %v8297_v38 }
 0x236   : > { %2889 = vmatmul.mubr.bf16.gmra.mrb[76].mxu0 %v8299_v39  ;;  %3595 = vmatmul.mubr.bf16.gmra.mrb[76].mxu1 %v8299_v39 }
 0x237   : > { %2898 = vmatprep.mubr.bf16.mxu0 %v8300_v40  ;;  %3604 = vmatprep.mubr.bf16.mxu1 %v8300_v40 }
 0x23e   : > { %2899 = vmatmul.mubr.bf16.gmra.mrb[80].mxu0 %v8302_v41  ;;  %3605 = vmatmul.mubr.bf16.gmra.mrb[80].mxu1 %v8302_v41 }
 0x23f   : > { %2908 = vmatprep.mubr.bf16.mxu0 %v8303_v42  ;;  %3614 = vmatprep.mubr.bf16.mxu1 %v8303_v42  ;;  %v8327_v42 = vld [vmem:[%s8806_s8 + $0x3ac] ss:$16 sps:$4 sm:$0xff]  }
 0x246   : > { %2909 = vmatmul.mubr.bf16.gmra.mrb[84].mxu0 %v8305_v43  ;;  %3615 = vmatmul.mubr.bf16.gmra.mrb[84].mxu1 %v8305_v43 }
 0x247   : > { %2918 = vmatprep.mubr.bf16.mxu0 %v8306_v44  ;;  %3624 = vmatprep.mubr.bf16.mxu1 %v8306_v44 }
 0x24e   : > { %2919 = vmatmul.mubr.bf16.gmra.mrb[88].mxu0 %v8308_v45  ;;  %3625 = vmatmul.mubr.bf16.gmra.mrb[88].mxu1 %v8308_v45 }
 0x24f   : > { %2928 = vmatprep.mubr.bf16.mxu0 %v8309_v46  ;;  %3634 = vmatprep.mubr.bf16.mxu1 %v8309_v46 }
 0x256   : > { %2929 = vmatmul.mubr.bf16.gmra.mrb[92].mxu0 %v8311_v47  ;;  %3635 = vmatmul.mubr.bf16.gmra.mrb[92].mxu1 %v8311_v47 }
 0x257   : > { %2938 = vmatprep.mubr.bf16.mxu0 %v8312_v48  ;;  %3644 = vmatprep.mubr.bf16.mxu1 %v8312_v48 }
 0x25e   : > { %2939 = vmatmul.mubr.bf16.gmra.mrb[96].mxu0 %v8314_v49  ;;  %3645 = vmatmul.mubr.bf16.gmra.mrb[96].mxu1 %v8314_v49 }
 0x25f   : > { %2948 = vmatprep.mubr.bf16.mxu0 %v8315_v50  ;;  %3654 = vmatprep.mubr.bf16.mxu1 %v8315_v50 }
 0x266   : > { %2949 = vmatmul.mubr.bf16.gmra.mrb[100].mxu0 %v8317_v51  ;;  %3655 = vmatmul.mubr.bf16.gmra.mrb[100].mxu1 %v8317_v51 }
 0x267   : > { %2958 = vmatprep.mubr.bf16.mxu0 %v8318_v53  ;;  %3664 = vmatprep.mubr.bf16.mxu1 %v8318_v53 }
 0x26e   : > { %2959 = vmatmul.mubr.bf16.gmra.mrb[104].mxu0 %v8320_v55  ;;  %3665 = vmatmul.mubr.bf16.gmra.mrb[104].mxu1 %v8320_v55 }
 0x26f   : > { %2968 = vmatprep.mubr.bf16.mxu0 %v8321_v60  ;;  %3674 = vmatprep.mubr.bf16.mxu1 %v8321_v60 }
 0x271   : > { %v2700_v1 = vpop.f32.mrb[0].mxu0  ;;  %v3406_v2 = vpop.f32.mrb[0].mxu1 }
 0x272   : > { %v8961_v4 = vadd.f32 %v8946_v62, %v2700_v1  ;;  %v2702_v5 = vpop.f32.mrb[1].mxu0  ;;  %v3408_v6 = vpop.f32.mrb[1].mxu1  ;;  %v8965_v8 = vadd.f32 %v8950_v63, %v3406_v2 }
 0x273   : > { %v8968_v9 = vadd.f32 %v8954_v0, %v2702_v5  ;;  %v2704_v10 = vpop.f32.mrb[2].mxu0  ;;  %v3410_v11 = vpop.f32.mrb[2].mxu1  ;;  %v8979_v18 = vadd.f32 %v8958_v3, %v3408_v6 }
 0x274   : > { %v4774_v13 = vmul.f32 %v8961_v4, %v8961_v4  ;;  %v8974_v14 = vadd.f32 %v8946_v62, %v2704_v10  ;;  %v2706_v15 = vpop.f32.mrb[3].mxu0  ;;  %v3412_v16 = vpop.f32.mrb[3].mxu1  ;;  %v8982_v19 = vadd.f32 %v8950_v63, %v3410_v11  ;;  %v4776_v22 = vmul.f32 %v8965_v8, %v8965_v8 }
 0x275   : > { %v4775_v17 = vmul.f32 %v8968_v9, %v8968_v9  ;;  %v8985_v20 = vadd.f32 %v8954_v0, %v2706_v15  ;;  %v8994_v25 = vadd.f32 %v8958_v3, %v3412_v16  ;;  %v4777_v30 = vmul.f32 %v8979_v18, %v8979_v18 }
 0x276   : > { %v4778_v21 = vmul.f32 %v8974_v14, %v8974_v14  ;;  %2969 = vmatmul.mubr.bf16.gmra.mrb[108].mxu0 %v8323_v7  ;;  %3675 = vmatmul.mubr.bf16.gmra.mrb[108].mxu1 %v8323_v7  ;;  %v4780_v26 = vmul.f32 %v8982_v19, %v8982_v19 }
 0x277   : > { %v4779_v23 = vmul.f32 %v8985_v20, %v8985_v20  ;;  %2978 = vmatprep.mubr.bf16.mxu0 %v8324_v12  ;;  %3684 = vmatprep.mubr.bf16.mxu1 %v8324_v12  ;;  %v5030_v24 = vadd.f32 %v4775_v17, %v4774_v13  ;;  %v4781_v43 = vmul.f32 %v8994_v25, %v8994_v25  ;;  %v8329_v17 = vld [vmem:[%s8806_s8 + $0x3a8] ss:$16 sps:$4 sm:$0xff]  }
 0x279   : > { %v5035_v27 = vadd.f32 %v4779_v23, %v4778_v21  ;;  %v2710_v28 = vpop.f32.mrb[4].mxu0  ;;  %v3416_v29 = vpop.f32.mrb[4].mxu1  ;;  %v5031_v31 = vadd.f32 %v5030_v24, %v4776_v22 }
 0x27a   : > { %v9001_v32 = vadd.f32 %v8946_v62, %v2710_v28  ;;  %v9004_v33 = vadd.f32 %v8950_v63, %v3416_v29  ;;  %v2712_v34 = vpop.f32.mrb[5].mxu0  ;;  %v3418_v35 = vpop.f32.mrb[5].mxu1 }
 0x27b   : > { %v9008_v37 = vadd.f32 %v8954_v0, %v2712_v34  ;;  %v2714_v38 = vpop.f32.mrb[6].mxu0  ;;  %v3420_v39 = vpop.f32.mrb[6].mxu1  ;;  %v5032_v40 = vadd.f32 %v5031_v31, %v4777_v30  ;;  %v5036_v41 = vadd.f32 %v5035_v27, %v4780_v26  ;;  %v9021_v49 = vadd.f32 %v8958_v3, %v3418_v35  ;;  %v8330_v27 = vld [vmem:[%s8806_s8 + $0x3cc] ss:$16 sps:$4 sm:$0xff]  }
 0x27c   : > { %v4782_v44 = vmul.f32 %v9001_v32, %v9001_v32  ;;  %v9016_v45 = vadd.f32 %v8946_v62, %v2714_v38  ;;  %v2716_v46 = vpop.f32.mrb[7].mxu0  ;;  %v3422_v47 = vpop.f32.mrb[7].mxu1  ;;  %v9024_v50 = vadd.f32 %v8950_v63, %v3420_v39  ;;  %v4784_v52 = vmul.f32 %v9004_v33, %v9004_v33 }
 0x27d   : > { %v4783_v48 = vmul.f32 %v9008_v37, %v9008_v37  ;;  %v9027_v51 = vadd.f32 %v8954_v0, %v2716_v46  ;;  %5033 = vadd.xlane.f32.xlu0 %v5032_v40  ;;  %v5037_v57 = vadd.f32 %v5036_v41, %v4781_v43  ;;  %v9036_v1 = vadd.f32 %v8958_v3, %v3422_v47 }
 0x27e   : > { %v4786_v53 = vmul.f32 %v9016_v45, %v9016_v45  ;;  %2979 = vmatmul.mubr.bf16.gmra.mrb[112].mxu0 %v8326_v36  ;;  %3685 = vmatmul.mubr.bf16.gmra.mrb[112].mxu1 %v8326_v36  ;;  %v4788_v2 = vmul.f32 %v9024_v50, %v9024_v50  ;;  %v4785_v10 = vmul.f32 %v9021_v49, %v9021_v49 }
 0x27f   : > { %v4787_v55 = vmul.f32 %v9027_v51, %v9027_v51  ;;  %2988 = vmatprep.mubr.bf16.mxu0 %v8327_v42  ;;  %3694 = vmatprep.mubr.bf16.mxu1 %v8327_v42  ;;  %v5040_v60 = vadd.f32 %v4783_v48, %v4782_v44  ;;  %v4789_v28 = vmul.f32 %v9036_v1, %v9036_v1 }
 0x281   : > { %v5045_v5 = vadd.f32 %v4787_v55, %v4786_v53  ;;  %v3426_v6 = vpop.f32.mrb[8].mxu1  ;;  %5038 = vadd.xlane.f32.xlu0 %v5037_v57  ;;  %v2720_v7 = vpop.f32.mrb[8].mxu0  ;;  %v5041_v11 = vadd.f32 %v5040_v60, %v4784_v52 }
 0x282   : > { %v9043_v12 = vadd.f32 %v8950_v63, %v3426_v6  ;;  %v9046_v13 = vadd.f32 %v8946_v62, %v2720_v7  ;;  %v2722_v15 = vpop.f32.mrb[9].mxu0  ;;  %v3428_v16 = vpop.f32.mrb[9].mxu1  ;;  %v8332_v6 = vld [vmem:[%s8806_s8 + $0x3c8] ss:$16 sps:$4 sm:$0xff]  }
 0x283   : > { %v9050_v21 = vadd.f32 %v8954_v0, %v2722_v15  ;;  %v2724_v22 = vpop.f32.mrb[10].mxu0  ;;  %v3430_v23 = vpop.f32.mrb[10].mxu1  ;;  %v5042_v24 = vadd.f32 %v5041_v11, %v4785_v10  ;;  %v5046_v26 = vadd.f32 %v5045_v5, %v4788_v2  ;;  %v9063_v36 = vadd.f32 %v8958_v3, %v3428_v16 }
 0x284   : > { %v4790_v29 = vmul.f32 %v9046_v13, %v9046_v13  ;;  %v9058_v30 = vadd.f32 %v8946_v62, %v2724_v22  ;;  %v2726_v31 = vpop.f32.mrb[11].mxu0  ;;  %v3432_v34 = vpop.f32.mrb[11].mxu1  ;;  %v9066_v38 = vadd.f32 %v8950_v63, %v3430_v23  ;;  %v4792_v40 = vmul.f32 %v9043_v12, %v9043_v12  ;;  %v8333_v22 = vld [vmem:[%s8806_s8 + $0x3ec] ss:$16 sps:$4 sm:$0xff]  }
 0x285   : > { %v4791_v35 = vmul.f32 %v9050_v21, %v9050_v21  ;;  %v9069_v39 = vadd.f32 %v8954_v0, %v2726_v31  ;;  %5043 = vadd.xlane.f32.xlu1 %v5042_v24  ;;  %v5047_v44 = vadd.f32 %v5046_v26, %v4789_v28  ;;  %v9078_v46 = vadd.f32 %v8958_v3, %v3432_v34 }
 0x286   : > { %v4794_v41 = vmul.f32 %v9058_v30, %v9058_v30  ;;  %2989 = vmatmul.mubr.bf16.gmra.mrb[116].mxu0 %v8329_v17  ;;  %3695 = vmatmul.mubr.bf16.gmra.mrb[116].mxu1 %v8329_v17  ;;  %v4793_v47 = vmul.f32 %v9063_v36, %v9063_v36  ;;  %v4796_v48 = vmul.f32 %v9066_v38, %v9066_v38 }
 0x287   : > { %v5050_v42 = vadd.f32 %v4791_v35, %v4790_v29  ;;  %v4795_v43 = vmul.f32 %v9069_v39, %v9069_v39  ;;  %2998 = vmatprep.mubr.bf16.mxu0 %v8330_v27  ;;  %3704 = vmatprep.mubr.bf16.mxu1 %v8330_v27  ;;  %v4797_v23 = vmul.f32 %v9078_v46, %v9078_v46 }
 0x289   : > { %v5055_v52 = vadd.f32 %v4795_v43, %v4794_v41  ;;  %v3436_v53 = vpop.f32.mrb[12].mxu1  ;;  %5048 = vadd.xlane.f32.xlu1 %v5047_v44  ;;  %v2730_v55 = vpop.f32.mrb[12].mxu0  ;;  %v5051_v57 = vadd.f32 %v5050_v42, %v4792_v40 }
 0x28a   : > { %v9085_v60 = vadd.f32 %v8946_v62, %v2730_v55  ;;  %v2732_v2 = vpop.f32.mrb[13].mxu0  ;;  %v3438_v5 = vpop.f32.mrb[13].mxu1  ;;  %v9089_v7 = vadd.f32 %v8950_v63, %v3436_v53 }
 0x28b   : > { %v9092_v10 = vadd.f32 %v8954_v0, %v2732_v2  ;;  %v2734_v11 = vpop.f32.mrb[14].mxu0  ;;  %v3440_v15 = vpop.f32.mrb[14].mxu1  ;;  %v5052_v16 = vadd.f32 %v5051_v57, %v4793_v47  ;;  %v5056_v17 = vadd.f32 %v5055_v52, %v4796_v48  ;;  %v9105_v31 = vadd.f32 %v8958_v3, %v3438_v5 }
 0x28c   : > { %v4798_v24 = vmul.f32 %v9085_v60, %v9085_v60  ;;  %v9100_v26 = vadd.f32 %v8946_v62, %v2734_v11  ;;  %v2736_v27 = vpop.f32.mrb[15].mxu0  ;;  %v3442_v28 = vpop.f32.mrb[15].mxu1  ;;  %v9108_v34 = vadd.f32 %v8950_v63, %v3440_v15  ;;  %v4800_v42 = vmul.f32 %v9089_v7, %v9089_v7  ;;  %v8335_v15 = vld [vmem:[%s8806_s8 + $0x3e8] ss:$16 sps:$4 sm:$0xff]  }
 0x28d   : > { %v4799_v29 = vmul.f32 %v9092_v10, %v9092_v10  ;;  %v9111_v35 = vadd.f32 %v8954_v0, %v2736_v27  ;;  %5053 = vadd.xlane.f32.xlu0 %v5052_v16  ;;  %v5057_v41 = vadd.f32 %v5056_v17, %v4797_v23  ;;  %v9120_v47 = vadd.f32 %v8958_v3, %v3442_v28 }
 0x28e   : > { %11611 = vst [vmem:[#allocation12_spill] sm:$0xff] %v9108_v34  ;;  %v4802_v40 = vmul.f32 %v9100_v26, %v9100_v26  ;;  %2999 = vmatmul.mubr.bf16.gmra.mrb[120].mxu0 %v8332_v6  ;;  %3705 = vmatmul.mubr.bf16.gmra.mrb[120].mxu1 %v8332_v6  ;;  %v4801_v48 = vmul.f32 %v9105_v31, %v9105_v31 }
 0x28f   : > { %v5060_v43 = vadd.f32 %v4799_v29, %v4798_v24  ;;  %v4803_v44 = vmul.f32 %v9111_v35, %v9111_v35  ;;  %3008 = vmatprep.mubr.bf16.mxu0 %v8333_v22  ;;  %3714 = vmatprep.mubr.bf16.mxu1 %v8333_v22  ;;  %11612 = vst [vmem:[#allocation13_spill] sm:$0xff] %v9120_v47 }
 0x290   : > { %5058 = vadd.xlane.f32.xlu1 %v5057_v41  ;;  %v4804_v52 = vmul.f32 %v9108_v34, %v9108_v34  ;;  %v4805_v28 = vmul.f32 %v9120_v47, %v9120_v47 }
 0x291   : > { %v5065_v53 = vadd.f32 %v4803_v44, %v4802_v40  ;;  %v2740_v55 = vpop.f32.mrb[16].mxu0  ;;  %v3446_v57 = vpop.f32.mrb[16].mxu1  ;;  %v5061_v2 = vadd.f32 %v5060_v43, %v4800_v42 }
 0x292   : > { %v9127_v5 = vadd.f32 %v8946_v62, %v2740_v55  ;;  %v2742_v6 = vpop.f32.mrb[17].mxu0  ;;  %v3448_v11 = vpop.f32.mrb[17].mxu1  ;;  %v9131_v16 = vadd.f32 %v8950_v63, %v3446_v57 }
 0x293   : > { %v9134_v17 = vadd.f32 %v8954_v0, %v2742_v6  ;;  %v2744_v22 = vpop.f32.mrb[18].mxu0  ;;  %v3450_v23 = vpop.f32.mrb[18].mxu1  ;;  %v5062_v24 = vadd.f32 %v5061_v2, %v4801_v48  ;;  %v5066_v27 = vadd.f32 %v5065_v53, %v4804_v52  ;;  %v9146_v44 = vadd.f32 %v8958_v3, %v3448_v11 }
 0x294   : > { %11613 = vst [vmem:[#allocation14_spill] sm:$0xff] %v9127_v5  ;;  %11614 = vst [vmem:[#allocation15_spill] sm:$0xff] %v9131_v16  ;;  %v4806_v29 = vmul.f32 %v9127_v5, %v9127_v5  ;;  %v9141_v40 = vadd.f32 %v8946_v62, %v2744_v22  ;;  %v2746_v41 = vpop.f32.mrb[19].mxu0  ;;  %v3452_v42 = vpop.f32.mrb[19].mxu1  ;;  %v9149_v48 = vadd.f32 %v8950_v63, %v3450_v23 }
 0x295   : > { %11615 = vst [vmem:[#allocation16_spill] sm:$0xff] %v9134_v17  ;;  %v4807_v43 = vmul.f32 %v9134_v17, %v9134_v17  ;;  %11617 = vst [vmem:[#allocation18_spill] sm:$0xff] %v9146_v44  ;;  %v9152_v52 = vadd.f32 %v8954_v0, %v2746_v41  ;;  %5063 = vadd.xlane.f32.xlu0 %v5062_v24  ;;  %v5067_v55 = vadd.f32 %v5066_v27, %v4805_v28 }
 0x296   : > { %11616 = vst [vmem:[#allocation17_spill] sm:$0xff] %v9141_v40  ;;  %11618 = vst [vmem:[#allocation19_spill] sm:$0xff] %v9149_v48  ;;  %v4810_v53 = vmul.f32 %v9141_v40, %v9141_v40  ;;  %3009 = vmatmul.mubr.bf16.gmra.mrb[124].mxu0 %v8335_v15  ;;  %3715 = vmatmul.mubr.bf16.gmra.mrb[124].mxu1 %v8335_v15  ;;  %v4808_v57 = vmul.f32 %v9131_v16, %v9131_v16 }
 0x297   : > { %11619 = vst [vmem:[#allocation20_spill] sm:$0xff] %v9152_v52  ;;  %v5070_v2 = vadd.f32 %v4807_v43, %v4806_v29  ;;  %v4811_v6 = vmul.f32 %v9152_v52, %v9152_v52  ;;  %v9161_v11 = vadd.f32 %v8958_v3, %v3452_v42  ;;  %5068 = vadd.xlane.f32.xlu1 %v5067_v55 }
 0x298   : > { %v4809_v22 = vmul.f32 %v9146_v44, %v9146_v44  ;;  %v4812_v23 = vmul.f32 %v9149_v48, %v9149_v48 }
 0x299   : > { %11620 = vst [vmem:[#allocation21_spill] sm:$0xff] %v9161_v11  ;;  %v5075_v24 = vadd.f32 %v4811_v6, %v4810_v53  ;;  %v2750_v15 = vpop.f32.mrb[20].mxu0  ;;  %v3456_v27 = vpop.f32.mrb[20].mxu1  ;;  %v5071_v28 = vadd.f32 %v5070_v2, %v4808_v57  ;;  %v4813_v53 = vmul.f32 %v9161_v11, %v9161_v11 }
 0x29a   : > { %v9168_v41 = vadd.f32 %v8946_v62, %v2750_v15  ;;  %v2752_v29 = vpop.f32.mrb[21].mxu0  ;;  %v3458_v43 = vpop.f32.mrb[21].mxu1  ;;  %v9171_v61 = vadd.f32 %v8950_v63, %v3456_v27 }
 0x29b   : > { %v9174_v42 = vadd.f32 %v8954_v0, %v2752_v29  ;;  %v2754_v55 = vpop.f32.mrb[22].mxu0  ;;  %v3460_v58 = vpop.f32.mrb[22].mxu1  ;;  %v5072_v59 = vadd.f32 %v5071_v28, %v4809_v22  ;;  %v5076_v56 = vadd.f32 %v5075_v24, %v4812_v23  ;;  %v9186_v29 = vadd.f32 %v8958_v3, %v3458_v43 }
 0x29c   : > { %11621 = vst [vmem:[#allocation22_spill] sm:$0xff] %v9168_v41  ;;  %11622 = vst [vmem:[#allocation23_spill] sm:$0xff] %v9171_v61  ;;  %v4814_v57 = vmul.f32 %v9168_v41, %v9168_v41  ;;  %v9181_v2 = vadd.f32 %v8946_v62, %v2754_v55  ;;  %v2756_v6 = vpop.f32.mrb[23].mxu0  ;;  %v3462_v15 = vpop.f32.mrb[23].mxu1  ;;  %v9189_v22 = vadd.f32 %v8950_v63, %v3460_v58 }
 0x29d   : > { %11623 = vst [vmem:[#allocation24_spill] sm:$0xff] %v9174_v42  ;;  %v4815_v27 = vmul.f32 %v9174_v42, %v9174_v42  ;;  %11625 = vst [vmem:[#allocation26_spill] sm:$0xff] %v9186_v29  ;;  %v9192_v23 = vadd.f32 %v8954_v0, %v2756_v6  ;;  %5073 = vadd.xlane.f32.xlu0 %v5072_v59  ;;  %v5077_v28 = vadd.f32 %v5076_v56, %v4813_v53 }
 0x29e   : > { %11624 = vst [vmem:[#allocation25_spill] sm:$0xff] %v9181_v2  ;;  %11626 = vst [vmem:[#allocation27_spill] sm:$0xff] %v9189_v22  ;;  %v4818_v24 = vmul.f32 %v9181_v2, %v9181_v2  ;;  %v4816_v55 = vmul.f32 %v9171_v61, %v9171_v61  ;;  %v9201_v43 = vadd.f32 %v8958_v3, %v3462_v15 }
 0x29f   : > { %11627 = vst [vmem:[#allocation28_spill] sm:$0xff] %v9192_v23  ;;  %v5080_v41 = vadd.f32 %v4815_v27, %v4814_v57  ;;  %v4819_v42 = vmul.f32 %v9192_v23, %v9192_v23  ;;  %5078 = vadd.xlane.f32.xlu1 %v5077_v28  ;;  %v4817_v58 = vmul.f32 %v9186_v29, %v9186_v29 }
 0x2a0   : > { %11628 = vst [vmem:[#allocation29_spill] sm:$0xff] %v9201_v43  ;;  %v4820_v59 = vmul.f32 %v9189_v22, %v9189_v22 }
 0x2a1   : > { %v5085_v6 = vadd.f32 %v4819_v42, %v4818_v24  ;;  %v2760_v2 = vpop.f32.mrb[24].mxu0  ;;  %v3466_v56 = vpop.f32.mrb[24].mxu1  ;;  %v5081_v53 = vadd.f32 %v5080_v41, %v4816_v55  ;;  %v4821_v42 = vmul.f32 %v9201_v43, %v9201_v43 }
 0x2a2   : > { %v9208_v61 = vadd.f32 %v8946_v62, %v2760_v2  ;;  %v2762_v57 = vpop.f32.mrb[25].mxu0  ;;  %v3468_v27 = vpop.f32.mrb[25].mxu1  ;;  %v9211_v23 = vadd.f32 %v8950_v63, %v3466_v56 }
 0x2a3   : > { %v9214_v15 = vadd.f32 %v8954_v0, %v2762_v57  ;;  %v2764_v28 = vpop.f32.mrb[26].mxu0  ;;  %v3470_v29 = vpop.f32.mrb[26].mxu1  ;;  %v5082_v11 = vadd.f32 %v5081_v53, %v4817_v58  ;;  %v5086_v48 = vadd.f32 %v5085_v6, %v4820_v59  ;;  %v9226_v57 = vadd.f32 %v8958_v3, %v3468_v27 }
 0x2a4   : > { %11629 = vst [vmem:[#allocation30_spill] sm:$0xff] %v9208_v61  ;;  %11630 = vst [vmem:[#allocation31_spill] sm:$0xff] %v9211_v23  ;;  %v4822_v41 = vmul.f32 %v9208_v61, %v9208_v61  ;;  %v9221_v2 = vadd.f32 %v8946_v62, %v2764_v28  ;;  %v2766_v24 = vpop.f32.mrb[27].mxu0  ;;  %v3472_v55 = vpop.f32.mrb[27].mxu1  ;;  %v9229_v58 = vadd.f32 %v8950_v63, %v3470_v29 }
 0x2a5   : > { %11631 = vst [vmem:[#allocation32_spill] sm:$0xff] %v9214_v15  ;;  %v4823_v56 = vmul.f32 %v9214_v15, %v9214_v15  ;;  %11633 = vst [vmem:[#allocation34_spill] sm:$0xff] %v9226_v57  ;;  %v9232_v59 = vadd.f32 %v8954_v0, %v2766_v24  ;;  %5083 = vadd.xlane.f32.xlu0 %v5082_v11  ;;  %v5087_v53 = vadd.f32 %v5086_v48, %v4821_v42 }
 0x2a6   : > { %11632 = vst [vmem:[#allocation33_spill] sm:$0xff] %v9221_v2  ;;  %11634 = vst [vmem:[#allocation35_spill] sm:$0xff] %v9229_v58  ;;  %v4826_v6 = vmul.f32 %v9221_v2, %v9221_v2  ;;  %v4824_v28 = vmul.f32 %v9211_v23, %v9211_v23  ;;  %v9241_v27 = vadd.f32 %v8958_v3, %v3472_v55 }
 0x2a7   : > { %11635 = vst [vmem:[#allocation36_spill] sm:$0xff] %v9232_v59  ;;  %v5090_v61 = vadd.f32 %v4823_v56, %v4822_v41  ;;  %v4827_v15 = vmul.f32 %v9232_v59, %v9232_v59  ;;  %5088 = vadd.xlane.f32.xlu1 %v5087_v53  ;;  %v4825_v29 = vmul.f32 %v9226_v57, %v9226_v57 }
 0x2a8   : > { %11636 = vst [vmem:[#allocation37_spill] sm:$0xff] %v9241_v27  ;;  %v4828_v11 = vmul.f32 %v9229_v58, %v9229_v58 }
 0x2a9   : > { %v5095_v24 = vadd.f32 %v4827_v15, %v4826_v6  ;;  %v2770_v2 = vpop.f32.mrb[28].mxu0  ;;  %v3476_v48 = vpop.f32.mrb[28].mxu1  ;;  %v5091_v42 = vadd.f32 %v5090_v61, %v4824_v28  ;;  %v4829_v15 = vmul.f32 %v9241_v27, %v9241_v27 }
 0x2aa   : > { %v9248_v23 = vadd.f32 %v8946_v62, %v2770_v2  ;;  %v2772_v41 = vpop.f32.mrb[29].mxu0  ;;  %v3478_v56 = vpop.f32.mrb[29].mxu1  ;;  %v9251_v59 = vadd.f32 %v8950_v63, %v3476_v48 }
 0x2ab   : > { %v9254_v55 = vadd.f32 %v8954_v0, %v2772_v41  ;;  %v2774_v53 = vpop.f32.mrb[30].mxu0  ;;  %v3480_v57 = vpop.f32.mrb[30].mxu1  ;;  %v5092_v43 = vadd.f32 %v5091_v42, %v4825_v29  ;;  %v5096_v22 = vadd.f32 %v5095_v24, %v4828_v11  ;;  %v9266_v41 = vadd.f32 %v8958_v3, %v3478_v56 }
 0x2ac   : > { %11637 = vst [vmem:[#allocation38_spill] sm:$0xff] %v9248_v23  ;;  %11638 = vst [vmem:[#allocation39_spill] sm:$0xff] %v9251_v59  ;;  %v4830_v61 = vmul.f32 %v9248_v23, %v9248_v23  ;;  %v9261_v2 = vadd.f32 %v8946_v62, %v2774_v53  ;;  %v2776_v6 = vpop.f32.mrb[31].mxu0  ;;  %v3482_v28 = vpop.f32.mrb[31].mxu1  ;;  %v9269_v29 = vadd.f32 %v8950_v63, %v3480_v57 }
 0x2ad   : > { %11639 = vst [vmem:[#allocation40_spill] sm:$0xff] %v9254_v55  ;;  %v4831_v48 = vmul.f32 %v9254_v55, %v9254_v55  ;;  %11641 = vst [vmem:[#allocation42_spill] sm:$0xff] %v9266_v41  ;;  %v9272_v11 = vadd.f32 %v8954_v0, %v2776_v6  ;;  %5093 = vadd.xlane.f32.xlu0 %v5092_v43  ;;  %v5097_v42 = vadd.f32 %v5096_v22, %v4829_v15 }
 0x2ae   : > { %11640 = vst [vmem:[#allocation41_spill] sm:$0xff] %v9261_v2  ;;  %11642 = vst [vmem:[#allocation43_spill] sm:$0xff] %v9269_v29  ;;  %v4834_v24 = vmul.f32 %v9261_v2, %v9261_v2  ;;  %v4832_v53 = vmul.f32 %v9251_v59, %v9251_v59  ;;  %v9281_v56 = vadd.f32 %v8958_v3, %v3482_v28 }
 0x2af   : > { %11643 = vst [vmem:[#allocation44_spill] sm:$0xff] %v9272_v11  ;;  %v5100_v23 = vadd.f32 %v4831_v48, %v4830_v61  ;;  %v4835_v55 = vmul.f32 %v9272_v11, %v9272_v11  ;;  %5098 = vadd.xlane.f32.xlu1 %v5097_v42  ;;  %v4833_v57 = vmul.f32 %v9266_v41, %v9266_v41 }
 0x2b0   : > { %11644 = vst [vmem:[#allocation45_spill] sm:$0xff] %v9281_v56  ;;  %v4836_v43 = vmul.f32 %v9269_v29, %v9269_v29 }
 0x2b1   : > { %v5105_v6 = vadd.f32 %v4835_v55, %v4834_v24  ;;  %v2780_v2 = vpop.f32.mrb[32].mxu0  ;;  %v3486_v22 = vpop.f32.mrb[32].mxu1  ;;  %v5101_v15 = vadd.f32 %v5100_v23, %v4832_v53  ;;  %v4837_v55 = vmul.f32 %v9281_v56, %v9281_v56 }
 0x2b2   : > { %v9288_v59 = vadd.f32 %v8946_v62, %v2780_v2  ;;  %v2782_v61 = vpop.f32.mrb[33].mxu0  ;;  %v3488_v48 = vpop.f32.mrb[33].mxu1  ;;  %v9291_v11 = vadd.f32 %v8950_v63, %v3486_v22 }
 0x2b3   : > { %v9294_v28 = vadd.f32 %v8954_v0, %v2782_v61  ;;  %v2784_v42 = vpop.f32.mrb[34].mxu0  ;;  %v3490_v41 = vpop.f32.mrb[34].mxu1  ;;  %v5102_v27 = vadd.f32 %v5101_v15, %v4833_v57  ;;  %v5106_v58 = vadd.f32 %v5105_v6, %v4836_v43  ;;  %v9306_v61 = vadd.f32 %v8958_v3, %v3488_v48 }
 0x2b4   : > { %11645 = vst [vmem:[#allocation46_spill] sm:$0xff] %v9288_v59  ;;  %11646 = vst [vmem:[#allocation47_spill] sm:$0xff] %v9291_v11  ;;  %v4838_v23 = vmul.f32 %v9288_v59, %v9288_v59  ;;  %v9301_v2 = vadd.f32 %v8946_v62, %v2784_v42  ;;  %v2786_v24 = vpop.f32.mrb[35].mxu0  ;;  %v3492_v53 = vpop.f32.mrb[35].mxu1  ;;  %v9309_v57 = vadd.f32 %v8950_v63, %v3490_v41 }
 0x2b5   : > { %11647 = vst [vmem:[#allocation48_spill] sm:$0xff] %v9294_v28  ;;  %v4839_v22 = vmul.f32 %v9294_v28, %v9294_v28  ;;  %11649 = vst [vmem:[#allocation50_spill] sm:$0xff] %v9306_v61  ;;  %v9312_v43 = vadd.f32 %v8954_v0, %v2786_v24  ;;  %5103 = vadd.xlane.f32.xlu0 %v5102_v27  ;;  %v5107_v15 = vadd.f32 %v5106_v58, %v4837_v55 }
 0x2b6   : > { %11648 = vst [vmem:[#allocation49_spill] sm:$0xff] %v9301_v2  ;;  %11650 = vst [vmem:[#allocation51_spill] sm:$0xff] %v9309_v57  ;;  %v4842_v6 = vmul.f32 %v9301_v2, %v9301_v2  ;;  %v4840_v42 = vmul.f32 %v9291_v11, %v9291_v11  ;;  %v9321_v48 = vadd.f32 %v8958_v3, %v3492_v53 }
 0x2b7   : > { %11651 = vst [vmem:[#allocation52_spill] sm:$0xff] %v9312_v43  ;;  %v5110_v59 = vadd.f32 %v4839_v22, %v4838_v23  ;;  %v4843_v28 = vmul.f32 %v9312_v43, %v9312_v43  ;;  %5108 = vadd.xlane.f32.xlu1 %v5107_v15  ;;  %v4841_v41 = vmul.f32 %v9306_v61, %v9306_v61 }
 0x2b8   : > { %11652 = vst [vmem:[#allocation53_spill] sm:$0xff] %v9321_v48  ;;  %v4844_v27 = vmul.f32 %v9309_v57, %v9309_v57 }
 0x2b9   : > { %v5115_v24 = vadd.f32 %v4843_v28, %v4842_v6  ;;  %v2790_v2 = vpop.f32.mrb[36].mxu0  ;;  %v3496_v58 = vpop.f32.mrb[36].mxu1  ;;  %v5111_v55 = vadd.f32 %v5110_v59, %v4840_v42  ;;  %v4845_v28 = vmul.f32 %v9321_v48, %v9321_v48 }
 0x2ba   : > { %v9328_v11 = vadd.f32 %v8946_v62, %v2790_v2  ;;  %v2792_v23 = vpop.f32.mrb[37].mxu0  ;;  %v3498_v22 = vpop.f32.mrb[37].mxu1  ;;  %v9331_v43 = vadd.f32 %v8950_v63, %v3496_v58 }
 0x2bb   : > { %v9334_v53 = vadd.f32 %v8954_v0, %v2792_v23  ;;  %v2794_v15 = vpop.f32.mrb[38].mxu0  ;;  %v3500_v61 = vpop.f32.mrb[38].mxu1  ;;  %v5112_v56 = vadd.f32 %v5111_v55, %v4841_v41  ;;  %v5116_v29 = vadd.f32 %v5115_v24, %v4844_v27  ;;  %v9346_v23 = vadd.f32 %v8958_v3, %v3498_v22 }
 0x2bc   : > { %11653 = vst [vmem:[#allocation54_spill] sm:$0xff] %v9328_v11  ;;  %11654 = vst [vmem:[#allocation55_spill] sm:$0xff] %v9331_v43  ;;  %v4846_v59 = vmul.f32 %v9328_v11, %v9328_v11  ;;  %v9341_v2 = vadd.f32 %v8946_v62, %v2794_v15  ;;  %v2796_v6 = vpop.f32.mrb[39].mxu0  ;;  %v3502_v42 = vpop.f32.mrb[39].mxu1  ;;  %v9349_v41 = vadd.f32 %v8950_v63, %v3500_v61 }
 0x2bd   : > { %11655 = vst [vmem:[#allocation56_spill] sm:$0xff] %v9334_v53  ;;  %v4847_v58 = vmul.f32 %v9334_v53, %v9334_v53  ;;  %11657 = vst [vmem:[#allocation58_spill] sm:$0xff] %v9346_v23  ;;  %v9352_v27 = vadd.f32 %v8954_v0, %v2796_v6  ;;  %5113 = vadd.xlane.f32.xlu0 %v5112_v56  ;;  %v5117_v55 = vadd.f32 %v5116_v29, %v4845_v28 }
 0x2be   : > { %11656 = vst [vmem:[#allocation57_spill] sm:$0xff] %v9341_v2  ;;  %11658 = vst [vmem:[#allocation59_spill] sm:$0xff] %v9349_v41  ;;  %v4850_v24 = vmul.f32 %v9341_v2, %v9341_v2  ;;  %v4848_v15 = vmul.f32 %v9331_v43, %v9331_v43  ;;  %v9361_v22 = vadd.f32 %v8958_v3, %v3502_v42 }
 0x2bf   : > { %11659 = vst [vmem:[#allocation60_spill] sm:$0xff] %v9352_v27  ;;  %v5120_v11 = vadd.f32 %v4847_v58, %v4846_v59  ;;  %v4851_v53 = vmul.f32 %v9352_v27, %v9352_v27  ;;  %5118 = vadd.xlane.f32.xlu1 %v5117_v55  ;;  %v4849_v61 = vmul.f32 %v9346_v23, %v9346_v23 }
 0x2c0   : > { %11660 = vst [vmem:[#allocation61_spill] sm:$0xff] %v9361_v22  ;;  %v4852_v56 = vmul.f32 %v9349_v41, %v9349_v41 }
 0x2c1   : > { %v5125_v6 = vadd.f32 %v4851_v53, %v4850_v24  ;;  %v2800_v2 = vpop.f32.mrb[40].mxu0  ;;  %v3506_v29 = vpop.f32.mrb[40].mxu1  ;;  %v5121_v28 = vadd.f32 %v5120_v11, %v4848_v15  ;;  %v4853_v53 = vmul.f32 %v9361_v22, %v9361_v22 }
 0x2c2   : > { %v9368_v43 = vadd.f32 %v8946_v62, %v2800_v2  ;;  %v2802_v59 = vpop.f32.mrb[41].mxu0  ;;  %v3508_v58 = vpop.f32.mrb[41].mxu1  ;;  %v9371_v27 = vadd.f32 %v8950_v63, %v3506_v29 }
 0x2c3   : > { %v9374_v42 = vadd.f32 %v8954_v0, %v2802_v59  ;;  %v2804_v55 = vpop.f32.mrb[42].mxu0  ;;  %v3510_v23 = vpop.f32.mrb[42].mxu1  ;;  %v5122_v48 = vadd.f32 %v5121_v28, %v4849_v61  ;;  %v5126_v57 = vadd.f32 %v5125_v6, %v4852_v56  ;;  %v9386_v59 = vadd.f32 %v8958_v3, %v3508_v58 }
 0x2c4   : > { %11661 = vst [vmem:[#allocation62_spill] sm:$0xff] %v9368_v43  ;;  %11662 = vst [vmem:[#allocation63_spill] sm:$0xff] %v9371_v27  ;;  %v4854_v11 = vmul.f32 %v9368_v43, %v9368_v43  ;;  %v9381_v2 = vadd.f32 %v8946_v62, %v2804_v55  ;;  %v2806_v24 = vpop.f32.mrb[43].mxu0  ;;  %v3512_v15 = vpop.f32.mrb[43].mxu1  ;;  %v9389_v61 = vadd.f32 %v8950_v63, %v3510_v23 }
 0x2c5   : > { %11663 = vst [vmem:[#allocation64_spill] sm:$0xff] %v9374_v42  ;;  %v4855_v29 = vmul.f32 %v9374_v42, %v9374_v42  ;;  %11665 = vst [vmem:[#allocation66_spill] sm:$0xff] %v9386_v59  ;;  %v9392_v56 = vadd.f32 %v8954_v0, %v2806_v24  ;;  %5123 = vadd.xlane.f32.xlu0 %v5122_v48  ;;  %v5127_v28 = vadd.f32 %v5126_v57, %v4853_v53 }
 0x2c6   : > { %11664 = vst [vmem:[#allocation65_spill] sm:$0xff] %v9381_v2  ;;  %11666 = vst [vmem:[#allocation67_spill] sm:$0xff] %v9389_v61  ;;  %v4858_v6 = vmul.f32 %v9381_v2, %v9381_v2  ;;  %v4856_v55 = vmul.f32 %v9371_v27, %v9371_v27  ;;  %v9401_v58 = vadd.f32 %v8958_v3, %v3512_v15 }
 0x2c7   : > { %11667 = vst [vmem:[#allocation68_spill] sm:$0xff] %v9392_v56  ;;  %v5130_v43 = vadd.f32 %v4855_v29, %v4854_v11  ;;  %v4859_v42 = vmul.f32 %v9392_v56, %v9392_v56  ;;  %5128 = vadd.xlane.f32.xlu1 %v5127_v28  ;;  %v4857_v23 = vmul.f32 %v9386_v59, %v9386_v59 }
 0x2c8   : > { %11668 = vst [vmem:[#allocation69_spill] sm:$0xff] %v9401_v58  ;;  %v4860_v48 = vmul.f32 %v9389_v61, %v9389_v61 }
 0x2c9   : > { %v5135_v24 = vadd.f32 %v4859_v42, %v4858_v6  ;;  %v2810_v2 = vpop.f32.mrb[44].mxu0  ;;  %v3516_v57 = vpop.f32.mrb[44].mxu1  ;;  %v5131_v53 = vadd.f32 %v5130_v43, %v4856_v55  ;;  %v4861_v42 = vmul.f32 %v9401_v58, %v9401_v58 }
 0x2ca   : > { %v9408_v27 = vadd.f32 %v8946_v62, %v2810_v2  ;;  %v2812_v11 = vpop.f32.mrb[45].mxu0  ;;  %v3518_v29 = vpop.f32.mrb[45].mxu1  ;;  %v9411_v56 = vadd.f32 %v8950_v63, %v3516_v57 }
 0x2cb   : > { %v9414_v15 = vadd.f32 %v8954_v0, %v2812_v11  ;;  %v2814_v28 = vpop.f32.mrb[46].mxu0  ;;  %v3520_v59 = vpop.f32.mrb[46].mxu1  ;;  %v5132_v22 = vadd.f32 %v5131_v53, %v4857_v23  ;;  %v5136_v41 = vadd.f32 %v5135_v24, %v4860_v48  ;;  %v9426_v11 = vadd.f32 %v8958_v3, %v3518_v29 }
 0x2cc   : > { %11669 = vst [vmem:[#allocation70_spill] sm:$0xff] %v9408_v27  ;;  %11670 = vst [vmem:[#allocation71_spill] sm:$0xff] %v9411_v56  ;;  %v4862_v43 = vmul.f32 %v9408_v27, %v9408_v27  ;;  %v9421_v2 = vadd.f32 %v8946_v62, %v2814_v28  ;;  %v2816_v6 = vpop.f32.mrb[47].mxu0  ;;  %v3522_v55 = vpop.f32.mrb[47].mxu1  ;;  %v9429_v23 = vadd.f32 %v8950_v63, %v3520_v59 }
 0x2cd   : > { %11671 = vst [vmem:[#allocation72_spill] sm:$0xff] %v9414_v15  ;;  %v4863_v57 = vmul.f32 %v9414_v15, %v9414_v15  ;;  %11673 = vst [vmem:[#allocation74_spill] sm:$0xff] %v9426_v11  ;;  %v9432_v48 = vadd.f32 %v8954_v0, %v2816_v6  ;;  %5133 = vadd.xlane.f32.xlu0 %v5132_v22  ;;  %v5137_v53 = vadd.f32 %v5136_v41, %v4861_v42 }
 0x2ce   : > { %11672 = vst [vmem:[#allocation73_spill] sm:$0xff] %v9421_v2  ;;  %11674 = vst [vmem:[#allocation75_spill] sm:$0xff] %v9429_v23  ;;  %v4866_v24 = vmul.f32 %v9421_v2, %v9421_v2  ;;  %v4864_v28 = vmul.f32 %v9411_v56, %v9411_v56  ;;  %v9441_v29 = vadd.f32 %v8958_v3, %v3522_v55 }
 0x2cf   : > { %11675 = vst [vmem:[#allocation76_spill] sm:$0xff] %v9432_v48  ;;  %v5140_v27 = vadd.f32 %v4863_v57, %v4862_v43  ;;  %v4867_v15 = vmul.f32 %v9432_v48, %v9432_v48  ;;  %5138 = vadd.xlane.f32.xlu1 %v5137_v53  ;;  %v4865_v59 = vmul.f32 %v9426_v11, %v9426_v11 }
 0x2d0   : > { %11676 = vst [vmem:[#allocation77_spill] sm:$0xff] %v9441_v29  ;;  %v4868_v22 = vmul.f32 %v9429_v23, %v9429_v23 }
 0x2d1   : > { %v5145_v6 = vadd.f32 %v4867_v15, %v4866_v24  ;;  %v2820_v2 = vpop.f32.mrb[48].mxu0  ;;  %v3526_v41 = vpop.f32.mrb[48].mxu1  ;;  %v5141_v42 = vadd.f32 %v5140_v27, %v4864_v28  ;;  %v4869_v15 = vmul.f32 %v9441_v29, %v9441_v29 }
 0x2d2   : > { %v9448_v56 = vadd.f32 %v8946_v62, %v2820_v2  ;;  %v2822_v43 = vpop.f32.mrb[49].mxu0  ;;  %v3528_v57 = vpop.f32.mrb[49].mxu1  ;;  %v9451_v48 = vadd.f32 %v8950_v63, %v3526_v41 }
 0x2d3   : > { %v9454_v55 = vadd.f32 %v8954_v0, %v2822_v43  ;;  %v2824_v53 = vpop.f32.mrb[50].mxu0  ;;  %v3530_v11 = vpop.f32.mrb[50].mxu1  ;;  %v5142_v58 = vadd.f32 %v5141_v42, %v4865_v59  ;;  %v5146_v61 = vadd.f32 %v5145_v6, %v4868_v22  ;;  %v9466_v43 = vadd.f32 %v8958_v3, %v3528_v57 }
 0x2d4   : > { %11677 = vst [vmem:[#allocation78_spill] sm:$0xff] %v9448_v56  ;;  %11678 = vst [vmem:[#allocation79_spill] sm:$0xff] %v9451_v48  ;;  %v4870_v27 = vmul.f32 %v9448_v56, %v9448_v56  ;;  %v9461_v2 = vadd.f32 %v8946_v62, %v2824_v53  ;;  %v2826_v24 = vpop.f32.mrb[51].mxu0  ;;  %v3532_v28 = vpop.f32.mrb[51].mxu1  ;;  %v9469_v59 = vadd.f32 %v8950_v63, %v3530_v11 }
 0x2d5   : > { %11679 = vst [vmem:[#allocation80_spill] sm:$0xff] %v9454_v55  ;;  %v4871_v41 = vmul.f32 %v9454_v55, %v9454_v55  ;;  %11681 = vst [vmem:[#allocation82_spill] sm:$0xff] %v9466_v43  ;;  %v9472_v22 = vadd.f32 %v8954_v0, %v2826_v24  ;;  %5143 = vadd.xlane.f32.xlu0 %v5142_v58  ;;  %v5147_v42 = vadd.f32 %v5146_v61, %v4869_v15 }
 0x2d6   : > { %11680 = vst [vmem:[#allocation81_spill] sm:$0xff] %v9461_v2  ;;  %11682 = vst [vmem:[#allocation83_spill] sm:$0xff] %v9469_v59  ;;  %v4874_v6 = vmul.f32 %v9461_v2, %v9461_v2  ;;  %v4872_v53 = vmul.f32 %v9451_v48, %v9451_v48  ;;  %v9481_v57 = vadd.f32 %v8958_v3, %v3532_v28 }
 0x2d7   : > { %11683 = vst [vmem:[#allocation84_spill] sm:$0xff] %v9472_v22  ;;  %v5150_v56 = vadd.f32 %v4871_v41, %v4870_v27  ;;  %v4875_v55 = vmul.f32 %v9472_v22, %v9472_v22  ;;  %5148 = vadd.xlane.f32.xlu1 %v5147_v42  ;;  %v4873_v11 = vmul.f32 %v9466_v43, %v9466_v43 }
 0x2d8   : > { %11684 = vst [vmem:[#allocation85_spill] sm:$0xff] %v9481_v57  ;;  %v4876_v58 = vmul.f32 %v9469_v59, %v9469_v59 }
 0x2d9   : > { %v5155_v24 = vadd.f32 %v4875_v55, %v4874_v6  ;;  %v2830_v2 = vpop.f32.mrb[52].mxu0  ;;  %v3536_v61 = vpop.f32.mrb[52].mxu1  ;;  %v5151_v15 = vadd.f32 %v5150_v56, %v4872_v53  ;;  %v4877_v55 = vmul.f32 %v9481_v57, %v9481_v57 }
 0x2da   : > { %v9488_v48 = vadd.f32 %v8946_v62, %v2830_v2  ;;  %v2832_v27 = vpop.f32.mrb[53].mxu0  ;;  %v3538_v41 = vpop.f32.mrb[53].mxu1  ;;  %v9491_v22 = vadd.f32 %v8950_v63, %v3536_v61 }
 0x2db   : > { %v9494_v28 = vadd.f32 %v8954_v0, %v2832_v27  ;;  %v2834_v42 = vpop.f32.mrb[54].mxu0  ;;  %v3540_v43 = vpop.f32.mrb[54].mxu1  ;;  %v5152_v29 = vadd.f32 %v5151_v15, %v4873_v11  ;;  %v5156_v23 = vadd.f32 %v5155_v24, %v4876_v58  ;;  %v9506_v27 = vadd.f32 %v8958_v3, %v3538_v41 }
 0x2dc   : > { %11685 = vst [vmem:[#allocation86_spill] sm:$0xff] %v9488_v48  ;;  %11686 = vst [vmem:[#allocation87_spill] sm:$0xff] %v9491_v22  ;;  %v4878_v56 = vmul.f32 %v9488_v48, %v9488_v48  ;;  %v9501_v2 = vadd.f32 %v8946_v62, %v2834_v42  ;;  %v2836_v6 = vpop.f32.mrb[55].mxu0  ;;  %v3542_v53 = vpop.f32.mrb[55].mxu1  ;;  %v9509_v11 = vadd.f32 %v8950_v63, %v3540_v43 }
 0x2dd   : > { %11687 = vst [vmem:[#allocation88_spill] sm:$0xff] %v9494_v28  ;;  %v4879_v61 = vmul.f32 %v9494_v28, %v9494_v28  ;;  %11689 = vst [vmem:[#allocation90_spill] sm:$0xff] %v9506_v27  ;;  %v9512_v58 = vadd.f32 %v8954_v0, %v2836_v6  ;;  %5153 = vadd.xlane.f32.xlu0 %v5152_v29  ;;  %v5157_v15 = vadd.f32 %v5156_v23, %v4877_v55 }
 0x2de   : > { %11688 = vst [vmem:[#allocation89_spill] sm:$0xff] %v9501_v2  ;;  %11690 = vst [vmem:[#allocation91_spill] sm:$0xff] %v9509_v11  ;;  %v4882_v24 = vmul.f32 %v9501_v2, %v9501_v2  ;;  %v4880_v42 = vmul.f32 %v9491_v22, %v9491_v22  ;;  %v9521_v41 = vadd.f32 %v8958_v3, %v3542_v53 }
 0x2df   : > { %11691 = vst [vmem:[#allocation92_spill] sm:$0xff] %v9512_v58  ;;  %v5160_v48 = vadd.f32 %v4879_v61, %v4878_v56  ;;  %v4883_v28 = vmul.f32 %v9512_v58, %v9512_v58  ;;  %5158 = vadd.xlane.f32.xlu1 %v5157_v15  ;;  %v4881_v43 = vmul.f32 %v9506_v27, %v9506_v27 }
 0x2e0   : > { %11692 = vst [vmem:[#allocation93_spill] sm:$0xff] %v9521_v41  ;;  %v4884_v29 = vmul.f32 %v9509_v11, %v9509_v11 }
 0x2e1   : > { %v5165_v6 = vadd.f32 %v4883_v28, %v4882_v24  ;;  %v2840_v2 = vpop.f32.mrb[56].mxu0  ;;  %v3546_v23 = vpop.f32.mrb[56].mxu1  ;;  %v5161_v55 = vadd.f32 %v5160_v48, %v4880_v42  ;;  %v4885_v28 = vmul.f32 %v9521_v41, %v9521_v41 }
 0x2e2   : > { %v9528_v22 = vadd.f32 %v8946_v62, %v2840_v2  ;;  %v2842_v56 = vpop.f32.mrb[57].mxu0  ;;  %v3548_v61 = vpop.f32.mrb[57].mxu1  ;;  %v9531_v58 = vadd.f32 %v8950_v63, %v3546_v23 }
 0x2e3   : > { %v9534_v53 = vadd.f32 %v8954_v0, %v2842_v56  ;;  %v2844_v15 = vpop.f32.mrb[58].mxu0  ;;  %v3550_v27 = vpop.f32.mrb[58].mxu1  ;;  %v5162_v57 = vadd.f32 %v5161_v55, %v4881_v43  ;;  %v5166_v59 = vadd.f32 %v5165_v6, %v4884_v29  ;;  %v9546_v56 = vadd.f32 %v8958_v3, %v3548_v61 }
 0x2e4   : > { %11693 = vst [vmem:[#allocation94_spill] sm:$0xff] %v9528_v22  ;;  %11694 = vst [vmem:[#allocation95_spill] sm:$0xff] %v9531_v58  ;;  %v4886_v48 = vmul.f32 %v9528_v22, %v9528_v22  ;;  %v9541_v2 = vadd.f32 %v8946_v62, %v2844_v15  ;;  %v2846_v24 = vpop.f32.mrb[59].mxu0  ;;  %v3552_v42 = vpop.f32.mrb[59].mxu1  ;;  %v9549_v43 = vadd.f32 %v8950_v63, %v3550_v27 }
 0x2e5   : > { %11695 = vst [vmem:[#allocation96_spill] sm:$0xff] %v9534_v53  ;;  %v4887_v23 = vmul.f32 %v9534_v53, %v9534_v53  ;;  %11697 = vst [vmem:[#allocation98_spill] sm:$0xff] %v9546_v56  ;;  %v9552_v29 = vadd.f32 %v8954_v0, %v2846_v24  ;;  %5163 = vadd.xlane.f32.xlu0 %v5162_v57  ;;  %v5167_v55 = vadd.f32 %v5166_v59, %v4885_v28 }
 0x2e6   : > { %11696 = vst [vmem:[#allocation97_spill] sm:$0xff] %v9541_v2  ;;  %11698 = vst [vmem:[#allocation99_spill] sm:$0xff] %v9549_v43  ;;  %v4890_v6 = vmul.f32 %v9541_v2, %v9541_v2  ;;  %v4888_v15 = vmul.f32 %v9531_v58, %v9531_v58  ;;  %v9561_v61 = vadd.f32 %v8958_v3, %v3552_v42 }
 0x2e7   : > { %11699 = vst [vmem:[#allocation100_spill] sm:$0xff] %v9552_v29  ;;  %v5170_v22 = vadd.f32 %v4887_v23, %v4886_v48  ;;  %v4891_v53 = vmul.f32 %v9552_v29, %v9552_v29  ;;  %5168 = vadd.xlane.f32.xlu1 %v5167_v55  ;;  %v4889_v27 = vmul.f32 %v9546_v56, %v9546_v56 }
 0x2e8   : > { %11700 = vst [vmem:[#allocation101_spill] sm:$0xff] %v9561_v61  ;;  %v4892_v57 = vmul.f32 %v9549_v43, %v9549_v43 }
 0x2e9   : > { %v5175_v24 = vadd.f32 %v4891_v53, %v4890_v6  ;;  %v2850_v2 = vpop.f32.mrb[60].mxu0  ;;  %v3556_v59 = vpop.f32.mrb[60].mxu1  ;;  %v5171_v28 = vadd.f32 %v5170_v22, %v4888_v15  ;;  %v4893_v53 = vmul.f32 %v9561_v61, %v9561_v61 }
 0x2ea   : > { %v9568_v58 = vadd.f32 %v8946_v62, %v2850_v2  ;;  %v2852_v48 = vpop.f32.mrb[61].mxu0  ;;  %v3558_v23 = vpop.f32.mrb[61].mxu1  ;;  %v9571_v29 = vadd.f32 %v8950_v63, %v3556_v59 }
 0x2eb   : > { %v9574_v42 = vadd.f32 %v8954_v0, %v2852_v48  ;;  %v2854_v55 = vpop.f32.mrb[62].mxu0  ;;  %v3560_v56 = vpop.f32.mrb[62].mxu1  ;;  %v5172_v41 = vadd.f32 %v5171_v28, %v4889_v27  ;;  %v5176_v11 = vadd.f32 %v5175_v24, %v4892_v57  ;;  %v9586_v48 = vadd.f32 %v8958_v3, %v3558_v23 }
 0x2ec   : > { %11701 = vst [vmem:[#allocation102_spill] sm:$0xff] %v9568_v58  ;;  %11702 = vst [vmem:[#allocation103_spill] sm:$0xff] %v9571_v29  ;;  %v4894_v22 = vmul.f32 %v9568_v58, %v9568_v58  ;;  %v9581_v2 = vadd.f32 %v8946_v62, %v2854_v55  ;;  %v2856_v6 = vpop.f32.mrb[63].mxu0  ;;  %v3562_v15 = vpop.f32.mrb[63].mxu1  ;;  %v9589_v27 = vadd.f32 %v8950_v63, %v3560_v56 }
 0x2ed   : > { %11703 = vst [vmem:[#allocation104_spill] sm:$0xff] %v9574_v42  ;;  %v4895_v59 = vmul.f32 %v9574_v42, %v9574_v42  ;;  %11705 = vst [vmem:[#allocation106_spill] sm:$0xff] %v9586_v48  ;;  %v9592_v57 = vadd.f32 %v8954_v0, %v2856_v6  ;;  %5173 = vadd.xlane.f32.xlu0 %v5172_v41  ;;  %v5177_v28 = vadd.f32 %v5176_v11, %v4893_v53 }
 0x2ee   : > { %11704 = vst [vmem:[#allocation105_spill] sm:$0xff] %v9581_v2  ;;  %11706 = vst [vmem:[#allocation107_spill] sm:$0xff] %v9589_v27  ;;  %v4898_v24 = vmul.f32 %v9581_v2, %v9581_v2  ;;  %v4896_v55 = vmul.f32 %v9571_v29, %v9571_v29  ;;  %v9601_v23 = vadd.f32 %v8958_v3, %v3562_v15 }
 0x2ef   : > { %11707 = vst [vmem:[#allocation108_spill] sm:$0xff] %v9592_v57  ;;  %v5180_v58 = vadd.f32 %v4895_v59, %v4894_v22  ;;  %v4899_v42 = vmul.f32 %v9592_v57, %v9592_v57  ;;  %5178 = vadd.xlane.f32.xlu1 %v5177_v28  ;;  %v4897_v56 = vmul.f32 %v9586_v48, %v9586_v48 }
 0x2f0   : > { %11708 = vst [vmem:[#allocation109_spill] sm:$0xff] %v9601_v23  ;;  %v4900_v41 = vmul.f32 %v9589_v27, %v9589_v27 }
 0x2f1   : > { %v5185_v6 = vadd.f32 %v4899_v42, %v4898_v24  ;;  %v2860_v2 = vpop.f32.mrb[64].mxu0  ;;  %v3566_v11 = vpop.f32.mrb[64].mxu1  ;;  %v5181_v53 = vadd.f32 %v5180_v58, %v4896_v55  ;;  %v4901_v42 = vmul.f32 %v9601_v23, %v9601_v23 }
 0x2f2   : > { %v9608_v29 = vadd.f32 %v8946_v62, %v2860_v2  ;;  %v2862_v22 = vpop.f32.mrb[65].mxu0  ;;  %v3568_v59 = vpop.f32.mrb[65].mxu1  ;;  %v9611_v57 = vadd.f32 %v8950_v63, %v3566_v11 }
 0x2f3   : > { %v9614_v15 = vadd.f32 %v8954_v0, %v2862_v22  ;;  %v2864_v28 = vpop.f32.mrb[66].mxu0  ;;  %v3570_v48 = vpop.f32.mrb[66].mxu1  ;;  %v5182_v61 = vadd.f32 %v5181_v53, %v4897_v56  ;;  %v5186_v43 = vadd.f32 %v5185_v6, %v4900_v41  ;;  %v9626_v22 = vadd.f32 %v8958_v3, %v3568_v59 }
 0x2f4   : > { %11709 = vst [vmem:[#allocation110_spill] sm:$0xff] %v9608_v29  ;;  %11710 = vst [vmem:[#allocation111_spill] sm:$0xff] %v9611_v57  ;;  %v4902_v58 = vmul.f32 %v9608_v29, %v9608_v29  ;;  %v9621_v2 = vadd.f32 %v8946_v62, %v2864_v28  ;;  %v2866_v24 = vpop.f32.mrb[67].mxu0  ;;  %v3572_v55 = vpop.f32.mrb[67].mxu1  ;;  %v9629_v56 = vadd.f32 %v8950_v63, %v3570_v48 }
 0x2f5   : > { %11711 = vst [vmem:[#allocation112_spill] sm:$0xff] %v9614_v15  ;;  %v4903_v11 = vmul.f32 %v9614_v15, %v9614_v15  ;;  %11713 = vst [vmem:[#allocation114_spill] sm:$0xff] %v9626_v22  ;;  %v9632_v41 = vadd.f32 %v8954_v0, %v2866_v24  ;;  %5183 = vadd.xlane.f32.xlu0 %v5182_v61  ;;  %v5187_v53 = vadd.f32 %v5186_v43, %v4901_v42 }
 0x2f6   : > { %11712 = vst [vmem:[#allocation113_spill] sm:$0xff] %v9621_v2  ;;  %11714 = vst [vmem:[#allocation115_spill] sm:$0xff] %v9629_v56  ;;  %v4906_v6 = vmul.f32 %v9621_v2, %v9621_v2  ;;  %v4904_v28 = vmul.f32 %v9611_v57, %v9611_v57  ;;  %v9641_v59 = vadd.f32 %v8958_v3, %v3572_v55 }
 0x2f7   : > { %11715 = vst [vmem:[#allocation116_spill] sm:$0xff] %v9632_v41  ;;  %v5190_v29 = vadd.f32 %v4903_v11, %v4902_v58  ;;  %v4907_v15 = vmul.f32 %v9632_v41, %v9632_v41  ;;  %5188 = vadd.xlane.f32.xlu1 %v5187_v53  ;;  %v4905_v48 = vmul.f32 %v9626_v22, %v9626_v22 }
 0x2f8   : > { %11716 = vst [vmem:[#allocation117_spill] sm:$0xff] %v9641_v59  ;;  %v4908_v61 = vmul.f32 %v9629_v56, %v9629_v56 }
 0x2f9   : > { %v5195_v24 = vadd.f32 %v4907_v15, %v4906_v6  ;;  %v2870_v2 = vpop.f32.mrb[68].mxu0  ;;  %v3576_v43 = vpop.f32.mrb[68].mxu1  ;;  %v5191_v42 = vadd.f32 %v5190_v29, %v4904_v28  ;;  %v4909_v15 = vmul.f32 %v9641_v59, %v9641_v59 }
 0x2fa   : > { %v9648_v57 = vadd.f32 %v8946_v62, %v2870_v2  ;;  %v2872_v58 = vpop.f32.mrb[69].mxu0  ;;  %v3578_v11 = vpop.f32.mrb[69].mxu1  ;;  %v9651_v41 = vadd.f32 %v8950_v63, %v3576_v43 }
 0x2fb   : > { %v9654_v55 = vadd.f32 %v8954_v0, %v2872_v58  ;;  %v2874_v53 = vpop.f32.mrb[70].mxu0  ;;  %v3580_v22 = vpop.f32.mrb[70].mxu1  ;;  %v5192_v23 = vadd.f32 %v5191_v42, %v4905_v48  ;;  %v5196_v27 = vadd.f32 %v5195_v24, %v4908_v61  ;;  %v9666_v58 = vadd.f32 %v8958_v3, %v3578_v11 }
 0x2fc   : > { %11717 = vst [vmem:[#allocation118_spill] sm:$0xff] %v9648_v57  ;;  %11718 = vst [vmem:[#allocation119_spill] sm:$0xff] %v9651_v41  ;;  %v4910_v29 = vmul.f32 %v9648_v57, %v9648_v57  ;;  %v9661_v2 = vadd.f32 %v8946_v62, %v2874_v53  ;;  %v2876_v6 = vpop.f32.mrb[71].mxu0  ;;  %v3582_v28 = vpop.f32.mrb[71].mxu1  ;;  %v9669_v48 = vadd.f32 %v8950_v63, %v3580_v22 }
 0x2fd   : > { %11719 = vst [vmem:[#allocation120_spill] sm:$0xff] %v9654_v55  ;;  %v4911_v43 = vmul.f32 %v9654_v55, %v9654_v55  ;;  %11721 = vst [vmem:[#allocation122_spill] sm:$0xff] %v9666_v58  ;;  %v9672_v61 = vadd.f32 %v8954_v0, %v2876_v6  ;;  %5193 = vadd.xlane.f32.xlu0 %v5192_v23  ;;  %v5197_v42 = vadd.f32 %v5196_v27, %v4909_v15 }
 0x2fe   : > { %11720 = vst [vmem:[#allocation121_spill] sm:$0xff] %v9661_v2  ;;  %11722 = vst [vmem:[#allocation123_spill] sm:$0xff] %v9669_v48  ;;  %v4914_v24 = vmul.f32 %v9661_v2, %v9661_v2  ;;  %v4912_v53 = vmul.f32 %v9651_v41, %v9651_v41  ;;  %v9681_v11 = vadd.f32 %v8958_v3, %v3582_v28 }
 0x2ff   : > { %11723 = vst [vmem:[#allocation124_spill] sm:$0xff] %v9672_v61  ;;  %v5200_v57 = vadd.f32 %v4911_v43, %v4910_v29  ;;  %v4915_v55 = vmul.f32 %v9672_v61, %v9672_v61  ;;  %5198 = vadd.xlane.f32.xlu1 %v5197_v42  ;;  %v4913_v22 = vmul.f32 %v9666_v58, %v9666_v58 }
 0x300   : > { %11724 = vst [vmem:[#allocation125_spill] sm:$0xff] %v9681_v11  ;;  %v4916_v23 = vmul.f32 %v9669_v48, %v9669_v48 }
 0x301   : > { %v5205_v6 = vadd.f32 %v4915_v55, %v4914_v24  ;;  %v2880_v2 = vpop.f32.mrb[72].mxu0  ;;  %v3586_v27 = vpop.f32.mrb[72].mxu1  ;;  %v5201_v15 = vadd.f32 %v5200_v57, %v4912_v53  ;;  %v4917_v55 = vmul.f32 %v9681_v11, %v9681_v11 }
 0x302   : > { %v9688_v41 = vadd.f32 %v8946_v62, %v2880_v2  ;;  %v2882_v29 = vpop.f32.mrb[73].mxu0  ;;  %v3588_v43 = vpop.f32.mrb[73].mxu1  ;;  %v9691_v61 = vadd.f32 %v8950_v63, %v3586_v27 }
 0x303   : > { %v9694_v28 = vadd.f32 %v8954_v0, %v2882_v29  ;;  %v2884_v42 = vpop.f32.mrb[74].mxu0  ;;  %v3590_v58 = vpop.f32.mrb[74].mxu1  ;;  %v5202_v59 = vadd.f32 %v5201_v15, %v4913_v22  ;;  %v5206_v56 = vadd.f32 %v5205_v6, %v4916_v23  ;;  %v9706_v29 = vadd.f32 %v8958_v3, %v3588_v43 }
 0x304   : > { %11725 = vst [vmem:[#allocation126_spill] sm:$0xff] %v9688_v41  ;;  %11726 = vst [vmem:[#allocation127_spill] sm:$0xff] %v9691_v61  ;;  %v4918_v57 = vmul.f32 %v9688_v41, %v9688_v41  ;;  %v9701_v2 = vadd.f32 %v8946_v62, %v2884_v42  ;;  %v2886_v24 = vpop.f32.mrb[75].mxu0  ;;  %v3592_v53 = vpop.f32.mrb[75].mxu1  ;;  %v9709_v22 = vadd.f32 %v8950_v63, %v3590_v58 }
 0x305   : > { %11727 = vst [vmem:[#allocation128_spill] sm:$0xff] %v9694_v28  ;;  %v4919_v27 = vmul.f32 %v9694_v28, %v9694_v28  ;;  %11729 = vst [vmem:[#allocation130_spill] sm:$0xff] %v9706_v29  ;;  %v9712_v23 = vadd.f32 %v8954_v0, %v2886_v24  ;;  %5203 = vadd.xlane.f32.xlu0 %v5202_v59  ;;  %v5207_v15 = vadd.f32 %v5206_v56, %v4917_v55 }
 0x306   : > { %11728 = vst [vmem:[#allocation129_spill] sm:$0xff] %v9701_v2  ;;  %11730 = vst [vmem:[#allocation131_spill] sm:$0xff] %v9709_v22  ;;  %v4922_v6 = vmul.f32 %v9701_v2, %v9701_v2  ;;  %v4920_v42 = vmul.f32 %v9691_v61, %v9691_v61  ;;  %v9721_v43 = vadd.f32 %v8958_v3, %v3592_v53 }
 0x307   : > { %11731 = vst [vmem:[#allocation132_spill] sm:$0xff] %v9712_v23  ;;  %v5210_v41 = vadd.f32 %v4919_v27, %v4918_v57  ;;  %v4923_v28 = vmul.f32 %v9712_v23, %v9712_v23  ;;  %5208 = vadd.xlane.f32.xlu1 %v5207_v15  ;;  %v4921_v58 = vmul.f32 %v9706_v29, %v9706_v29 }
 0x308   : > { %11732 = vst [vmem:[#allocation133_spill] sm:$0xff] %v9721_v43  ;;  %v4924_v59 = vmul.f32 %v9709_v22, %v9709_v22  ;;  %v4925_v29 = vmul.f32 %v9721_v43, %v9721_v43 }
 0x309   : > { %v5215_v24 = vadd.f32 %v4923_v28, %v4922_v6  ;;  %v2890_v2 = vpop.f32.mrb[76].mxu0  ;;  %v3596_v56 = vpop.f32.mrb[76].mxu1  ;;  %v5211_v55 = vadd.f32 %v5210_v41, %v4920_v42  ;;  %v5799_v42 = vld [vmem:[%s11388_s3] sm:$0xf] }
 0x30a   : > { %v9728_v61 = vadd.f32 %v8946_v62, %v2890_v2  ;;  %v3598_v57 = vpop.f32.mrb[77].mxu1  ;;  %v5034_v27 = vpop.xlane.xlu0 %5033  ;;  %v9735_v28 = vadd.f32 %v8950_v63, %v3596_v56 }
 0x30b   : > { %v5351_v23 = vmul.f32 0.001953125, %v5034_v27  ;;  %v2892_v11 = vpop.f32.mrb[77].mxu0  ;;  %v3600_v53 = vpop.f32.mrb[78].mxu1  ;;  %v5212_v48 = vadd.f32 %v5211_v55, %v4921_v58  ;;  %v5216_v15 = vadd.f32 %v5215_v24, %v4924_v59  ;;  %v9747_v55 = vadd.f32 %v8958_v3, %v3598_v57 }
 0x30c   : > { %11733 = vst [vmem:[#allocation134_spill] sm:$0xff] %v9728_v61  ;;  %v4926_v22 = vmul.f32 %v9728_v61, %v9728_v61  ;;  %11734 = vst [vmem:[#allocation135_spill] sm:$0xff] %v9735_v28  ;;  %v9738_v41 = vadd.f32 %v8954_v0, %v2892_v11  ;;  %v2894_v2 = vpop.f32.mrb[78].mxu0  ;;  %v3602_v6 = vpop.f32.mrb[79].mxu1 }
 0x30d   : > { %v5415_v58 = vadd.f32 1e-06, %v5351_v23  ;;  %v9744_v59 = vadd.f32 %v8946_v62, %v2894_v2  ;;  %v2896_v24 = vpop.f32.mrb[79].mxu0  ;;  %5213 = vadd.xlane.f32.xlu0 %v5212_v48  ;;  %11737 = vst [vmem:[#allocation138_spill] sm:$0xff] %v9747_v55  ;;  %v5217_v61 = vadd.f32 %v5216_v15, %v4925_v29  ;;  %v11739_v2 = vsub.s32 0, %v8933_v54 }
 0x30e   : > { %11735 = vst [vmem:[#allocation136_spill] sm:$0xff] %v9738_v41  ;;  %v4927_v56 = vmul.f32 %v9738_v41, %v9738_v41  ;;  %v9752_v11 = vadd.f32 %v8954_v0, %v2896_v24  ;;  %v5039_v27 = vpop.xlane.xlu0 %5038  ;;  %v4928_v48 = vmul.f32 %v9735_v28, %v9735_v28  ;;  %v11740_v24 = vsub.s32 1, %v8933_v54 }
 0x30f   : > { %11736 = vst [vmem:[#allocation137_spill] sm:$0xff] %v9744_v59  ;;  %8336 = vrsqrt.f32 %v5415_v58  ;;  %v4930_v23 = vmul.f32 %v9744_v59, %v9744_v59  ;;  %v5352_v43 = vmul.f32 0.001953125, %v5039_v27  ;;  %v9758_v52 = vrot.slane %v5799_v42, %v11739_v2  ;;  %5218 = vadd.xlane.f32.xlu1 %v5217_v61 }
 0x310   : > { %11738 = vst [vmem:[#allocation139_spill] sm:$0xff] %v9752_v11  ;;  %v5220_v57 = vadd.f32 %v4927_v56, %v4926_v22  ;;  %v4931_v41 = vmul.f32 %v9752_v11, %v9752_v11  ;;  %v9766_v29 = vrot.slane %v5799_v42, %v11740_v24  ;;  %v11741_v15 = vsub.s32 2, %v8933_v54 }
 0x311   : > { %v11742_v27 = vsub.s32 3, %v8933_v54  ;;  %v5416_v59 = vadd.f32 1e-06, %v5352_v43  ;;  %v2900_v40 = vpop.f32.mrb[80].mxu0  ;;  %v3606_v28 = vpop.f32.mrb[80].mxu1  ;;  %v4929_v22 = vmul.f32 %v9747_v55, %v9747_v55  ;;  %v9779_v61 = vadd.f32 %v8950_v63, %v3600_v53 }
 0x312   : > { %v9770_v58 = vrot.slane %v5799_v42, %v11741_v15  ;;  %v9782_v56 = vadd.f32 %v8946_v62, %v2900_v40  ;;  %v3608_v24 = vpop.f32.mrb[81].mxu1  ;;  %v5044_v11 = vpop.xlane.xlu1 %5043  ;;  %v5221_v15 = vadd.f32 %v5220_v57, %v4928_v48  ;;  %v5225_v44 = vadd.f32 %v4931_v41, %v4930_v23 }
 0x313   : > { %v9774_v2 = vrot.slane %v5799_v42, %v11742_v27  ;;  %11743 = vst [vmem:[#allocation140_spill] sm:$0xff] %v9779_v61  ;;  %v9785_v54 = vadd.f32 %v8958_v3, %v3602_v6  ;;  %8338 = vrsqrt.f32 %v5416_v59  ;;  %v5353_v43 = vmul.f32 0.001953125, %v5044_v11  ;;  %v2902_v42 = vpop.f32.mrb[81].mxu0  ;;  %v3610_v27 = vpop.f32.mrb[82].mxu1 }
 0x314   : > { %11744 = vst [vmem:[#allocation141_spill] sm:$0xff] %v9782_v56  ;;  %v4934_v55 = vmul.f32 %v9782_v56, %v9782_v56  ;;  %v9790_v53 = vadd.f32 %v8950_v63, %v3606_v28  ;;  %v9793_v40 = vadd.f32 %v8958_v3, %v3608_v24  ;;  %v9796_v16 = vadd.f32 %v8954_v0, %v2902_v42  ;;  %v2904_v41 = vpop.f32.mrb[82].mxu0  ;;  %v3612_v23 = vpop.f32.mrb[83].mxu1 }
 0x315   : > { %11745 = vst [vmem:[#allocation142_spill] sm:$0xff] %v9785_v54  ;;  %v5417_v6 = vadd.f32 1e-06, %v5353_v43  ;;  %v9799_v59 = vadd.f32 %v8946_v62, %v2904_v41  ;;  %v9802_v11 = vadd.f32 %v8950_v63, %v3610_v27  ;;  %v2906_v48 = vpop.f32.mrb[83].mxu0  ;;  %v9805_v57 = vadd.f32 %v8958_v3, %v3612_v23 }
 0x316   : > { %11746 = vst [vmem:[#allocation143_spill] sm:$0xff] %v9790_v53  ;;  %11747 = vst [vmem:[#allocation144_spill] sm:$0xff] %v9793_v40  ;;  %v4932_v28 = vmul.f32 %v9779_v61, %v9779_v61  ;;  %v4935_v24 = vmul.f32 %v9796_v16, %v9796_v16  ;;  %v9812_v42 = vadd.f32 %v8954_v0, %v2906_v48  ;;  %v5049_v56 = vpop.xlane.xlu1 %5048 }
 0x317   : > { %11748 = vst [vmem:[#allocation145_spill] sm:$0xff] %v9796_v16  ;;  %11749 = vst [vmem:[#allocation146_spill] sm:$0xff] %v9799_v59  ;;  %v5222_v43 = vadd.f32 %v5221_v15, %v4929_v22  ;;  %v4933_v41 = vmul.f32 %v9785_v54, %v9785_v54  ;;  %8340 = vrsqrt.f32 %v5417_v6  ;;  %v4938_v27 = vmul.f32 %v9799_v59, %v9799_v59 }
 0x318   : > { %11750 = vst [vmem:[#allocation147_spill] sm:$0xff] %v9802_v11  ;;  %11751 = vst [vmem:[#allocation148_spill] sm:$0xff] %v9805_v57  ;;  %v5354_v23 = vmul.f32 0.001953125, %v5049_v56  ;;  %v9820_v17 = vmul.f32 %v9790_v53, %v9790_v53  ;;  %v9824_v16 = vmul.f32 %v9793_v40, %v9793_v40  ;;  %v4939_v22 = vmul.f32 %v9812_v42, %v9812_v42 }
 0x319   : > { %11752 = vst [vmem:[#allocation149_spill] sm:$0xff] %v9812_v42  ;;  %5223 = vadd.xlane.f32.xlu0 %v5222_v43  ;;  %v5226_v15 = vadd.f32 %v5225_v44, %v4932_v28  ;;  %v8337_v48 = vpop.eup %8336  ;;  %v9828_v54 = vadd.f32 %v4935_v24, %v4934_v55  ;;  %v9832_v6 = vmul.f32 %v9802_v11, %v9802_v11  ;;  %v2910_v53 = vpop.f32.mrb[84].mxu0 }
 0x31a   : > { %v9836_v56 = vmul.f32 %v9805_v57, %v9805_v57  ;;  %v5418_v59 = vadd.f32 1e-06, %v5354_v23  ;;  %v3616_v40 = vpop.f32.mrb[84].mxu1  ;;  %v5543_v61 = vmul.f32 %v8337_v48, %v8961_v4  ;;  %v5544_v42 = vmul.f32 %v8337_v48, %v8968_v9  ;;  %v5054_v24 = vpop.xlane.xlu0 %5053 }
 0x31b   : > { %v5545_v44 = vmul.f32 %v8337_v48, %v8965_v8  ;;  %v5546_v55 = vmul.f32 %v8337_v48, %v8979_v18  ;;  %v3618_v28 = vpop.f32.mrb[85].mxu1  ;;  %v9842_v43 = vadd.f32 %v4939_v22, %v4938_v27  ;;  %v5227_v11 = vadd.f32 %v5226_v15, %v4933_v41  ;;  %v2912_v23 = vpop.f32.mrb[85].mxu0 }
 0x31c   : > { %8342 = vrsqrt.f32 %v5418_v59  ;;  %v9845_v57 = vadd.f32 %v8946_v62, %v2910_v53  ;;  %v3620_v5 = vpop.f32.mrb[86].mxu1  ;;  %v5821_v47 = vmul.f32 %v9758_v52, %v5543_v61  ;;  %v5822_v4 = vmul.f32 %v9766_v29, %v5544_v42  ;;  %v2914_v18 = vpop.f32.mrb[86].mxu0 }
 0x31d   : > { %v5823_v9 = vmul.f32 %v9770_v58, %v5545_v44  ;;  %v5824_v8 = vmul.f32 %v9774_v2, %v5546_v55  ;;  %v3622_v48 = vpop.f32.mrb[87].mxu1  ;;  %v8339_v27 = vpop.eup %8338  ;;  %5228 = vadd.xlane.f32.xlu1 %v5227_v11  ;;  %v9854_v53 = vadd.f32 %v8950_v63, %v3616_v40  ;;  %v9857_v41 = vadd.f32 %v8958_v3, %v3618_v28 }
 0x31e   : > { %11753 = vst [vmem:[#allocation150_spill] sm:$0xff] %v9845_v57  ;;  %v4942_v59 = vmul.f32 %v9845_v57, %v9845_v57  ;;  %v5355_v61 = vmul.f32 0.001953125, %v5054_v24  ;;  %v2916_v42 = vpop.f32.mrb[87].mxu0  ;;  %v7489_v22 = vpack.c.bf16 %v5822_v4, %v5821_v47  ;;  %v5547_v44 = vmul.f32 %v8339_v27, %v8974_v14 }
 0x31f   : > { %11754 = vst [vmem:[#allocation151_spill] sm:$0xff] %v9854_v53  ;;  %11755 = vst [vmem:[#allocation152_spill] sm:$0xff] %v9857_v41  ;;  %v7490_v15 = vpack.c.bf16 %v5824_v8, %v5823_v9  ;;  %v5548_v55 = vmul.f32 %v8339_v27, %v8985_v20  ;;  %v5549_v34 = vmul.f32 %v8339_v27, %v8982_v19 }
 0x320   : > { %v5550_v11 = vmul.f32 %v8339_v27, %v8994_v25  ;;  %v9865_v57 = vmul.f32 %v9854_v53, %v9854_v53  ;;  %v9869_v40 = vmul.f32 %v9857_v41, %v9857_v41  ;;  %6845 = vst [vmem:[%s9873_s21] sm:$0xff] %v7489_v22  ;;  %v5825_v14 = vmul.f32 %v9758_v52, %v5547_v44  ;;  %v5059_v44 = vpop.xlane.xlu1 %5058 }
 0x321   : > { %6846 = vst [vmem:[%s9873_s21 + $0x8] sm:$0xff] %v7490_v15  ;;  %v5826_v19 = vmul.f32 %v9766_v29, %v5548_v55  ;;  %v5419_v20 = vadd.f32 1e-06, %v5355_v61  ;;  %v9880_v25 = vadd.f32 %v8954_v0, %v2912_v23  ;;  %v8341_v47 = vpop.eup %8340  ;;  %v5827_v28 = vmul.f32 %v9770_v58, %v5549_v34  ;;  %v2920_v8 = vpop.f32.mrb[88].mxu0 }
 0x322   : > { %v5828_v24 = vmul.f32 %v9774_v2, %v5550_v11  ;;  %v9885_v4 = vadd.f32 %v8946_v62, %v2914_v18  ;;  %v9888_v9 = vadd.f32 %v8950_v63, %v3620_v5  ;;  %v3626_v27 = vpop.f32.mrb[88].mxu1  ;;  %v5551_v61 = vmul.f32 %v8341_v47, %v9001_v32  ;;  %v2922_v11 = vpop.f32.mrb[89].mxu0 }
 0x323   : > { %11756 = vst [vmem:[#allocation153_spill] sm:$0xff] %v9880_v25  ;;  %v7491_v22 = vpack.c.bf16 %v5826_v19, %v5825_v14  ;;  %v5552_v23 = vmul.f32 %v8341_v47, %v9008_v37  ;;  %v5553_v15 = vmul.f32 %v8341_v47, %v9004_v33  ;;  %v3628_v34 = vpop.f32.mrb[89].mxu1  ;;  %v5554_v18 = vmul.f32 %v8341_v47, %v9021_v49  ;;  %v2924_v19 = vpop.f32.mrb[90].mxu0 }
 0x324   : > { %11757 = vst [vmem:[#allocation154_spill] sm:$0xff] %v9885_v4  ;;  %11758 = vst [vmem:[#allocation155_spill] sm:$0xff] %v9888_v9  ;;  %v7492_v55 = vpack.c.bf16 %v5828_v24, %v5827_v28  ;;  %8344 = vrsqrt.f32 %v5419_v20  ;;  %v4943_v5 = vmul.f32 %v9880_v25, %v9880_v25  ;;  %v3630_v41 = vpop.f32.mrb[90].mxu1  ;;  %v5829_v14 = vmul.f32 %v9758_v52, %v5551_v61  ;;  %v9915_v61 = vpop.f32.mrb[91].mxu0  ;;  %v11831_v25 = vld [vmem:[#allocation35_spill] sm:$0xff] }
 0x325   : > { %6847 = vst [vmem:[%s9873_s21 + $0x10] sm:$0xff] %v7491_v22  ;;  %v5830_v32 = vmul.f32 %v9766_v29, %v5552_v23  ;;  %v5831_v37 = vmul.f32 %v9770_v58, %v5553_v15  ;;  %v4946_v33 = vmul.f32 %v9885_v4, %v9885_v4  ;;  %v9902_v28 = vpop.f32.mrb[91].mxu1  ;;  %v5832_v20 = vmul.f32 %v9774_v2, %v5554_v18 }
 0x326   : > { %v8343_v49 = vpop.eup %8342  ;;  %6848 = vst [vmem:[%s9873_s21 + $0x18] sm:$0xff] %v7492_v55  ;;  %v9906_v47 = vadd.f32 %v4943_v5, %v4942_v59  ;;  %v9910_v24 = vmul.f32 %v9888_v9, %v9888_v9  ;;  %v9913_v22 = vadd.f32 %v8958_v3, %v3622_v48  ;;  %v5356_v9 = vmul.f32 0.001953125, %v5059_v44 }
 0x327   : > { %v7493_v23 = vpack.c.bf16 %v5830_v32, %v5829_v14  ;;  %v5555_v15 = vmul.f32 %v8343_v49, %v9016_v45  ;;  %v5556_v4 = vmul.f32 %v8343_v49, %v9027_v51  ;;  %v5557_v55 = vmul.f32 %v8343_v49, %v9024_v50 }
 0x328   : > { %11759 = vst [vmem:[#allocation156_spill] sm:$0xff] %v9913_v22  ;;  %v7494_v18 = vpack.c.bf16 %v5832_v20, %v5831_v37  ;;  %v5558_v59 = vmul.f32 %v8343_v49, %v9036_v1  ;;  %v9923_v5 = vmul.f32 %v9913_v22, %v9913_v22  ;;  %v9930_v45 = vadd.f32 %v8954_v0, %v2916_v42 }
 0x329   : > { %6849 = vst [vmem:[%s9873_s21 + $0x20] sm:$0xff] %v7493_v23  ;;  %v5833_v48 = vmul.f32 %v9758_v52, %v5555_v15  ;;  %v5834_v53 = vmul.f32 %v9766_v29, %v5556_v4  ;;  %v5835_v14 = vmul.f32 %v9770_v58, %v5557_v55  ;;  %v5420_v51 = vadd.f32 1e-06, %v5356_v9  ;;  %v2930_v32 = vpop.f32.mrb[92].mxu0  ;;  %v9938_v37 = vpop.f32.mrb[92].mxu1 }
 0x32a   : > { %11760 = vst [vmem:[#allocation157_spill] sm:$0xff] %v9930_v45  ;;  %6850 = vst [vmem:[%s9873_s21 + $0x28] sm:$0xff] %v7494_v18  ;;  %v5836_v50 = vmul.f32 %v9774_v2, %v5558_v59  ;;  %v5231_v1 = vadd.f32 %v9828_v54, %v9820_v17  ;;  %v5236_v44 = vadd.f32 %v9842_v43, %v9832_v6  ;;  %v5064_v9 = vpop.xlane.xlu0 %5063  ;;  %v3638_v17 = vpop.f32.mrb[93].mxu1 }
 0x32b   : > { %v7495_v4 = vpack.c.bf16 %v5834_v53, %v5833_v48  ;;  %v4947_v49 = vmul.f32 %v9930_v45, %v9930_v45  ;;  %v9943_v42 = vadd.f32 %v8946_v62, %v2920_v8  ;;  %v9946_v20 = vadd.f32 %v8950_v63, %v3626_v27  ;;  %v9950_v23 = vpop.f32.mrb[93].mxu0  ;;  %v9952_v53 = vpop.f32.mrb[94].mxu1 }
 0x32c   : > { %v7496_v54 = vpack.c.bf16 %v5836_v50, %v5835_v14  ;;  %8346 = vrsqrt.f32 %v5420_v51  ;;  %v5232_v6 = vadd.f32 %v5231_v1, %v9824_v16  ;;  %v5237_v43 = vadd.f32 %v5236_v44, %v9836_v56  ;;  %v9964_v18 = vpop.f32.mrb[94].mxu0  ;;  %v9966_v16 = vpop.f32.mrb[95].mxu1 }
 0x32d   : > { %11761 = vst [vmem:[#allocation158_spill] sm:$0xff] %v9943_v42  ;;  %11762 = vst [vmem:[#allocation159_spill] sm:$0xff] %v9946_v20  ;;  %v5245_v15 = vadd.f32 %v4947_v49, %v4946_v33  ;;  %v4950_v8 = vmul.f32 %v9943_v42, %v9943_v42  ;;  %v9959_v27 = vmul.f32 %v9946_v20, %v9946_v20  ;;  %v5357_v59 = vmul.f32 0.001953125, %v5064_v9  ;;  %v5069_v49 = vpop.xlane.xlu1 %5068 }
 0x32e   : > { %6851 = vst [vmem:[%s9873_s21 + $0x30] sm:$0xff] %v7495_v4  ;;  %v9962_v55 = vadd.f32 %v8958_v3, %v3628_v34  ;;  %v8345_v56 = vpop.eup %8344  ;;  %6852 = vst [vmem:[%s9873_s21 + $0x38] sm:$0xff] %v7496_v54  ;;  %5233 = vadd.xlane.f32.xlu0 %v5232_v6  ;;  %5238 = vadd.xlane.f32.xlu1 %v5237_v43  ;;  %v9970_v33 = vadd.f32 %v8954_v0, %v2922_v11  ;;  %v9978_v34 = vpop.f32.mrb[95].mxu0 }
 0x32f   : > { %v9973_v48 = vadd.f32 %v8946_v62, %v2924_v19  ;;  %v9976_v14 = vadd.f32 %v8950_v63, %v3630_v41  ;;  %v5559_v50 = vmul.f32 %v8345_v56, %v9046_v13  ;;  %v5560_v51 = vmul.f32 %v8345_v56, %v9050_v21 }
 0x330   : > { %11763 = vst [vmem:[#allocation160_spill] sm:$0xff] %v9962_v55  ;;  %11764 = vst [vmem:[#allocation161_spill] sm:$0xff] %v9970_v33  ;;  %v5561_v1 = vmul.f32 %v8345_v56, %v9043_v12  ;;  %v5562_v44 = vmul.f32 %v8345_v56, %v9063_v36  ;;  %v9986_v11 = vmul.f32 %v9962_v55, %v9962_v55  ;;  %v5421_v4 = vadd.f32 1e-06, %v5357_v59 }
 0x331   : > { %11765 = vst [vmem:[#allocation162_spill] sm:$0xff] %v9973_v48  ;;  %11766 = vst [vmem:[#allocation163_spill] sm:$0xff] %v9976_v14  ;;  %v4951_v19 = vmul.f32 %v9970_v33, %v9970_v33  ;;  %v4954_v41 = vmul.f32 %v9973_v48, %v9973_v48  ;;  %v5837_v13 = vmul.f32 %v9758_v52, %v5559_v50  ;;  %v10006_v43 = vpop.f32.mrb[96].mxu0  ;;  %v10008_v56 = vpop.f32.mrb[96].mxu1 }
 0x332   : > { %v5838_v21 = vmul.f32 %v9766_v29, %v5560_v51  ;;  %v5839_v12 = vmul.f32 %v9770_v58, %v5561_v1  ;;  %v5840_v36 = vmul.f32 %v9774_v2, %v5562_v44  ;;  %8348 = vrsqrt.f32 %v5421_v4  ;;  %v5074_v1 = vpop.xlane.xlu0 %5073  ;;  %v10014_v44 = vpop.f32.mrb[97].mxu1 }
 0x333   : > { %v9996_v9 = vadd.f32 %v4951_v19, %v4950_v8  ;;  %v10000_v54 = vmul.f32 %v9976_v14, %v9976_v14  ;;  %v10004_v6 = vadd.f32 %v8958_v3, %v9902_v28  ;;  %v5358_v51 = vmul.f32 0.001953125, %v5069_v49  ;;  %v10026_v49 = vpop.f32.mrb[97].mxu0 }
 0x334   : > { %v7497_v59 = vpack.c.bf16 %v5838_v21, %v5837_v13  ;;  %v7498_v50 = vpack.c.bf16 %v5840_v36, %v5839_v12  ;;  %v10012_v8 = vadd.f32 %v8954_v0, %v9915_v61  ;;  %v5241_v28 = vadd.f32 %v9906_v47, %v9865_v57  ;;  %v10028_v21 = vpop.f32.mrb[98].mxu1  ;;  %v10041_v47 = vpop.f32.mrb[98].mxu0 }
 0x335   : > { %11767 = vst [vmem:[#allocation164_spill] sm:$0xff] %v10004_v6  ;;  %v10018_v4 = vmul.f32 %v10004_v6, %v10004_v6  ;;  %v5246_v19 = vadd.f32 %v5245_v15, %v9910_v24  ;;  %v10024_v13 = vadd.f32 %v8946_v62, %v2930_v32  ;;  %v5422_v61 = vadd.f32 1e-06, %v5358_v51  ;;  %v10043_v24 = vpop.f32.mrb[99].mxu1  ;;  %v10049_v6 = vpop.f32.mrb[99].mxu0 }
 0x336   : > { %11768 = vst [vmem:[#allocation165_spill] sm:$0xff] %v10012_v8  ;;  %6853 = vst [vmem:[%s9873_s21 + $0x40] sm:$0xff] %v7497_v59  ;;  %v4955_v12 = vmul.f32 %v10012_v8, %v10012_v8  ;;  %v10036_v36 = vadd.f32 %v8950_v63, %v9938_v37  ;;  %v10039_v57 = vadd.f32 %v8958_v3, %v3638_v17  ;;  %v8347_v32 = vpop.eup %8346  ;;  %v5359_v51 = vmul.f32 0.001953125, %v5074_v1  ;;  %v5079_v1 = vpop.xlane.xlu1 %5078 }
 0x337   : > { %11769 = vst [vmem:[#allocation166_spill] sm:$0xff] %v10024_v13  ;;  %6854 = vst [vmem:[%s9873_s21 + $0x48] sm:$0xff] %v7498_v50  ;;  %v5242_v15 = vadd.f32 %v5241_v28, %v9869_v40  ;;  %v5247_v59 = vadd.f32 %v5246_v19, %v9923_v5  ;;  %v4958_v50 = vmul.f32 %v10024_v13, %v10024_v13  ;;  %8350 = vrsqrt.f32 %v5422_v61 }
 0x338   : > { %11770 = vst [vmem:[#allocation167_spill] sm:$0xff] %v10036_v36  ;;  %11771 = vst [vmem:[#allocation168_spill] sm:$0xff] %v10039_v57  ;;  %v5563_v37 = vmul.f32 %v8347_v32, %v9058_v30  ;;  %v5564_v17 = vmul.f32 %v8347_v32, %v9069_v39  ;;  %v5565_v14 = vmul.f32 %v8347_v32, %v9066_v38 }
 0x339   : > { %v5566_v8 = vmul.f32 %v8347_v32, %v9078_v46  ;;  %v5255_v48 = vadd.f32 %v4955_v12, %v4954_v41  ;;  %5243 = vadd.xlane.f32.xlu0 %v5242_v15  ;;  %5248 = vadd.xlane.f32.xlu1 %v5247_v59  ;;  %v10057_v40 = vmul.f32 %v10036_v36, %v10036_v36  ;;  %v5423_v41 = vadd.f32 1e-06, %v5359_v51  ;;  %v10079_v12 = vpop.f32.mrb[100].mxu0 }
 0x33a   : > { %v10061_v5 = vmul.f32 %v10039_v57, %v10039_v57  ;;  %v5841_v30 = vmul.f32 %v9758_v52, %v5563_v37  ;;  %v5842_v39 = vmul.f32 %v9766_v29, %v5564_v17  ;;  %v5843_v38 = vmul.f32 %v9770_v58, %v5565_v14  ;;  %v10081_v14 = vpop.f32.mrb[100].mxu1  ;;  %v10097_v17 = vpop.f32.mrb[101].mxu0  ;;  %v11787_v57 = vld [vmem:[#allocation15_spill] sm:$0xff] }
 0x33b   : > { %v5844_v46 = vmul.f32 %v9774_v2, %v5566_v8  ;;  %v10069_v28 = vadd.f32 %v8954_v0, %v9950_v23  ;;  %v10073_v19 = vadd.f32 %v8946_v62, %v9964_v18  ;;  %v10077_v61 = vadd.f32 %v8950_v63, %v9952_v53  ;;  %v10087_v59 = vpop.f32.mrb[101].mxu1 }
 0x33c   : > { %v7499_v8 = vpack.c.bf16 %v5842_v39, %v5841_v30  ;;  %v10085_v23 = vadd.f32 %v8958_v3, %v9966_v16  ;;  %v5360_v15 = vmul.f32 0.001953125, %v5079_v1  ;;  %v8349_v18 = vpop.eup %8348  ;;  %8352 = vrsqrt.f32 %v5423_v41  ;;  %v10099_v30 = vpop.f32.mrb[102].mxu1 }
 0x33d   : > { %11772 = vst [vmem:[#allocation169_spill] sm:$0xff] %v10069_v28  ;;  %11773 = vst [vmem:[#allocation170_spill] sm:$0xff] %v10073_v19  ;;  %v7500_v32 = vpack.c.bf16 %v5844_v46, %v5843_v38  ;;  %v4959_v53 = vmul.f32 %v10069_v28, %v10069_v28  ;;  %v4962_v51 = vmul.f32 %v10073_v19, %v10073_v19  ;;  %v10107_v46 = vpop.f32.mrb[102].mxu0  ;;  %v10109_v41 = vpop.f32.mrb[103].mxu1 }
 0x33e   : > { %11774 = vst [vmem:[#allocation171_spill] sm:$0xff] %v10077_v61  ;;  %11775 = vst [vmem:[#allocation172_spill] sm:$0xff] %v10085_v23  ;;  %v10095_v37 = vmul.f32 %v10077_v61, %v10077_v61  ;;  %v5567_v16 = vmul.f32 %v8349_v18, %v9085_v60  ;;  %v5568_v1 = vmul.f32 %v8349_v18, %v9092_v10  ;;  %v10121_v10 = vpop.f32.mrb[103].mxu0 }
 0x33f   : > { %6855 = vst [vmem:[%s9873_s21 + $0x50] sm:$0xff] %v7499_v8  ;;  %6856 = vst [vmem:[%s9873_s21 + $0x58] sm:$0xff] %v7500_v32  ;;  %v5569_v39 = vmul.f32 %v8349_v18, %v9089_v7  ;;  %v5570_v38 = vmul.f32 %v8349_v18, %v9105_v31  ;;  %v10111_v61 = vadd.f32 %v4959_v53, %v4958_v50  ;;  %v5424_v8 = vadd.f32 1e-06, %v5360_v15 }
 0x340   : > { %v10115_v19 = vmul.f32 %v10085_v23, %v10085_v23  ;;  %v10119_v60 = vadd.f32 %v8954_v0, %v9978_v34  ;;  %v5845_v7 = vmul.f32 %v9758_v52, %v5567_v16  ;;  %v5846_v31 = vmul.f32 %v9766_v29, %v5568_v1 }
 0x341   : > { %v5847_v32 = vmul.f32 %v9770_v58, %v5569_v39  ;;  %v5848_v50 = vmul.f32 %v9774_v2, %v5570_v38  ;;  %8354 = vrsqrt.f32 %v5424_v8  ;;  %v5251_v34 = vadd.f32 %v9996_v9, %v9959_v27  ;;  %v5084_v39 = vpop.xlane.xlu0 %5083  ;;  %v8351_v38 = vpop.eup %8350 }
 0x342   : > { %11776 = vst [vmem:[#allocation173_spill] sm:$0xff] %v10119_v60  ;;  %v4963_v18 = vmul.f32 %v10119_v60, %v10119_v60  ;;  %v5256_v15 = vadd.f32 %v5255_v48, %v10000_v54  ;;  %v7501_v53 = vpack.c.bf16 %v5846_v31, %v5845_v7  ;;  %v10134_v16 = vadd.f32 %v8946_v62, %v10006_v43  ;;  %v10148_v9 = vpop.f32.mrb[104].mxu0  ;;  %v10150_v54 = vpop.f32.mrb[104].mxu1  ;;  %v11781_v31 = vld [vmem:[#allocation13_spill] sm:$0xff] }
 0x343   : > { %v7502_v23 = vpack.c.bf16 %v5848_v50, %v5847_v32  ;;  %v10138_v1 = vadd.f32 %v8950_v63, %v10008_v56  ;;  %v5252_v60 = vadd.f32 %v5251_v34, %v9986_v11  ;;  %v10146_v48 = vadd.f32 %v8958_v3, %v10014_v44  ;;  %v10158_v32 = vpop.f32.mrb[105].mxu1 }
 0x344   : > { %11777 = vst [vmem:[#allocation174_spill] sm:$0xff] %v10134_v16  ;;  %v10140_v8 = vadd.f32 %v4963_v18, %v4962_v51  ;;  %v5257_v27 = vadd.f32 %v5256_v15, %v10018_v4  ;;  %6857 = vst [vmem:[%s9873_s21 + $0x60] sm:$0xff] %v7501_v53  ;;  %v5571_v43 = vmul.f32 %v8351_v38, %v9100_v26  ;;  %v11780_v51 = vld [vmem:[#allocation12_spill] sm:$0xff]  ;;  %v10172_v50 = vpop.f32.mrb[106].mxu1 }
 0x345   : > { %11778 = vst [vmem:[#allocation175_spill] sm:$0xff] %v10138_v1  ;;  %11779 = vst [vmem:[#allocation176_spill] sm:$0xff] %v10146_v48  ;;  %v5572_v56 = vmul.f32 %v8351_v38, %v9111_v35  ;;  %v5573_v7 = vmul.f32 %v8351_v38, %v11780_v51  ;;  %v5574_v11 = vmul.f32 %v8351_v38, %v11781_v31  ;;  %5253 = vadd.xlane.f32.xlu0 %v5252_v60  ;;  %v10180_v38 = vpop.f32.mrb[107].mxu1 }
 0x346   : > { %6858 = vst [vmem:[%s9873_s21 + $0x68] sm:$0xff] %v7502_v23  ;;  %5258 = vadd.xlane.f32.xlu1 %v5257_v27  ;;  %v4966_v44 = vmul.f32 %v10134_v16, %v10134_v16  ;;  %v10164_v4 = vmul.f32 %v10138_v1, %v10138_v1  ;;  %v10168_v26 = vmul.f32 %v10146_v48, %v10146_v48  ;;  %v5361_v35 = vmul.f32 0.001953125, %v5084_v39  ;;  %v10170_v23 = vpop.f32.mrb[105].mxu0  ;;  %v8353_v27 = vpop.eup %8352  ;;  %v11785_v48 = vld [vmem:[#allocation14_spill] sm:$0xff]  ;;  %v11786_v16 = vld [vmem:[#allocation16_spill] sm:$0xff] }
 0x347   : > { %v5849_v18 = vmul.f32 %v9758_v52, %v5571_v43  ;;  %v5850_v60 = vmul.f32 %v9766_v29, %v5572_v56  ;;  %v5851_v34 = vmul.f32 %v9770_v58, %v5573_v7  ;;  %v5852_v15 = vmul.f32 %v9774_v2, %v5574_v11  ;;  %v10178_v53 = vpop.f32.mrb[106].mxu0 }
 0x348   : > { %v5425_v39 = vadd.f32 1e-06, %v5361_v35  ;;  %v10184_v51 = vadd.f32 %v8954_v0, %v10026_v49  ;;  %v10188_v43 = vadd.f32 %v8946_v62, %v10041_v47  ;;  %v10192_v56 = vadd.f32 %v8950_v63, %v10028_v21  ;;  %v10194_v7 = vpop.f32.mrb[107].mxu0  ;;  %v11788_v49 = vld [vmem:[#allocation18_spill] sm:$0xff] }
 0x349   : > { %v7503_v31 = vpack.c.bf16 %v5850_v60, %v5849_v18  ;;  %v7504_v11 = vpack.c.bf16 %v5852_v15, %v5851_v34  ;;  %v5575_v1 = vmul.f32 %v8353_v27, %v11785_v48  ;;  %v5576_v35 = vmul.f32 %v8353_v27, %v11786_v16 }
 0x34a   : > { %11782 = vst [vmem:[#allocation12_spill] sm:$0xff] %v10184_v51  ;;  %11783 = vst [vmem:[#allocation13_spill] sm:$0xff] %v10188_v43  ;;  %v5577_v36 = vmul.f32 %v8353_v27, %v11787_v57  ;;  %v5578_v28 = vmul.f32 %v8353_v27, %v11788_v49  ;;  %8356 = vrsqrt.f32 %v5425_v39  ;;  %v4967_v47 = vmul.f32 %v10184_v51, %v10184_v51  ;;  %v5089_v57 = vpop.xlane.xlu1 %5088  ;;  %v10220_v27 = vpop.f32.mrb[108].mxu0  ;;  %v11791_v49 = vld [vmem:[#allocation20_spill] sm:$0xff] }
 0x34b   : > { %11784 = vst [vmem:[#allocation177_spill] sm:$0xff] %v10192_v56  ;;  %6859 = vst [vmem:[%s9873_s21 + $0x70] sm:$0xff] %v7503_v31  ;;  %v5853_v21 = vmul.f32 %v9758_v52, %v5575_v1  ;;  %v5854_v13 = vmul.f32 %v9766_v29, %v5576_v35  ;;  %v4970_v18 = vmul.f32 %v10188_v43, %v10188_v43  ;;  %v8355_v48 = vpop.eup %8354  ;;  %v10222_v39 = vpop.f32.mrb[108].mxu1  ;;  %v11792_v43 = vld [vmem:[#allocation19_spill] sm:$0xff]  ;;  %v5362_v55 = vmul.f32 0.001953125, %v5089_v57 }
 0x34c   : > { %6860 = vst [vmem:[%s9873_s21 + $0x78] sm:$0xff] %v7504_v11  ;;  %v10210_v16 = vmul.f32 %v10192_v56, %v10192_v56  ;;  %v5855_v60 = vmul.f32 %v9770_v58, %v5577_v36  ;;  %v5856_v34 = vmul.f32 %v9774_v2, %v5578_v28  ;;  %v10214_v15 = vadd.f32 %v4967_v47, %v4966_v44  ;;  %v11790_v11 = vld [vmem:[#allocation17_spill] sm:$0xff]  ;;  %v10227_v28 = vpop.f32.mrb[109].mxu1  ;;  %v10234_v20 = vpop.f32.mrb[109].mxu0 }
 0x34d   : > { %v10218_v1 = vadd.f32 %v8958_v3, %v10043_v24  ;;  %v7505_v31 = vpack.c.bf16 %v5854_v13, %v5853_v21  ;;  %v5579_v35 = vmul.f32 %v8355_v48, %v11790_v11  ;;  %v5580_v56 = vmul.f32 %v8355_v48, %v11791_v49  ;;  %v11793_v47 = vld [vmem:[#allocation21_spill] sm:$0xff]  ;;  %v10236_v13 = vpop.f32.mrb[110].mxu1 }
 0x34e   : > { %v5581_v36 = vmul.f32 %v8355_v48, %v11792_v43  ;;  %v7506_v44 = vpack.c.bf16 %v5856_v34, %v5855_v60  ;;  %v5582_v51 = vmul.f32 %v8355_v48, %v11793_v47  ;;  %v10244_v60 = vadd.f32 %v8954_v0, %v10049_v6  ;;  %v10246_v48 = vpop.f32.mrb[110].mxu0  ;;  %v10248_v34 = vpop.f32.mrb[111].mxu1 }
 0x34f   : > { %11789 = vst [vmem:[#allocation14_spill] sm:$0xff] %v10218_v1  ;;  %v10232_v24 = vmul.f32 %v10218_v1, %v10218_v1  ;;  %6861 = vst [vmem:[%s9873_s21 + $0x80] sm:$0xff] %v7505_v31  ;;  %v5857_v21 = vmul.f32 %v9758_v52, %v5579_v35  ;;  %v5858_v11 = vmul.f32 %v9766_v29, %v5580_v56  ;;  %v5426_v49 = vadd.f32 1e-06, %v5362_v55  ;;  %v10256_v35 = vpop.f32.mrb[111].mxu0 }
 0x350   : > { %v5859_v43 = vmul.f32 %v9770_v58, %v5581_v36  ;;  %11794 = vst [vmem:[#allocation16_spill] sm:$0xff] %v10244_v60  ;;  %6862 = vst [vmem:[%s9873_s21 + $0x88] sm:$0xff] %v7506_v44  ;;  %v5860_v57 = vmul.f32 %v9774_v2, %v5582_v51  ;;  %v5261_v31 = vadd.f32 %v10111_v61, %v10057_v40  ;;  %v5094_v51 = vpop.xlane.xlu0 %5093 }
 0x351   : > { %v5266_v56 = vadd.f32 %v10140_v8, %v10095_v37  ;;  %v7507_v6 = vpack.c.bf16 %v5858_v11, %v5857_v21  ;;  %v4971_v36 = vmul.f32 %v10244_v60, %v10244_v60  ;;  %v10262_v47 = vadd.f32 %v8946_v62, %v10079_v12 }
 0x352   : > { %v10266_v55 = vadd.f32 %v8950_v63, %v10081_v14  ;;  %v7508_v40 = vpack.c.bf16 %v5860_v57, %v5859_v43  ;;  %8358 = vrsqrt.f32 %v5426_v49  ;;  %v5262_v61 = vadd.f32 %v5261_v31, %v10061_v5  ;;  %v10294_v43 = vpop.f32.mrb[112].mxu0  ;;  %v11801_v57 = vld [vmem:[#allocation22_spill] sm:$0xff]  ;;  %v11802_v31 = vld [vmem:[#allocation24_spill] sm:$0xff] }
 0x353   : > { %11795 = vst [vmem:[#allocation15_spill] sm:$0xff] %v10262_v47  ;;  %v5267_v37 = vadd.f32 %v5266_v56, %v10115_v19  ;;  %6863 = vst [vmem:[%s9873_s21 + $0x90] sm:$0xff] %v7507_v6  ;;  %v5275_v8 = vadd.f32 %v4971_v36, %v4970_v18  ;;  %v4974_v44 = vmul.f32 %v10262_v47, %v10262_v47  ;;  %v5363_v5 = vmul.f32 0.001953125, %v5094_v51  ;;  %v11803_v6 = vld [vmem:[#allocation23_spill] sm:$0xff] }
 0x354   : > { %11796 = vst [vmem:[#allocation18_spill] sm:$0xff] %v10266_v55  ;;  %v10275_v12 = vmul.f32 %v10266_v55, %v10266_v55  ;;  %v10279_v14 = vadd.f32 %v8958_v3, %v10087_v59  ;;  %v8357_v21 = vpop.eup %8356  ;;  %6864 = vst [vmem:[%s9873_s21 + $0x98] sm:$0xff] %v7508_v40  ;;  %5263 = vadd.xlane.f32.xlu0 %v5262_v61  ;;  %v10284_v19 = vadd.f32 %v8954_v0, %v10097_v17  ;;  %v10296_v59 = vpop.f32.mrb[112].mxu1  ;;  %v11804_v17 = vld [vmem:[#allocation26_spill] sm:$0xff] }
 0x355   : > { %5268 = vadd.xlane.f32.xlu1 %v5267_v37  ;;  %v10288_v18 = vadd.f32 %v8946_v62, %v10107_v46  ;;  %v10292_v11 = vadd.f32 %v8950_v63, %v10099_v30  ;;  %v5583_v49 = vmul.f32 %v8357_v21, %v11801_v57  ;;  %v5584_v56 = vmul.f32 %v8357_v21, %v11802_v31  ;;  %v5099_v40 = vpop.xlane.xlu1 %5098  ;;  %v10302_v61 = vpop.f32.mrb[113].mxu1 }
 0x356   : > { %11797 = vst [vmem:[#allocation17_spill] sm:$0xff] %v10279_v14  ;;  %11798 = vst [vmem:[#allocation20_spill] sm:$0xff] %v10284_v19  ;;  %v5585_v36 = vmul.f32 %v8357_v21, %v11803_v6  ;;  %v5586_v51 = vmul.f32 %v8357_v21, %v11804_v17  ;;  %v10306_v46 = vmul.f32 %v10279_v14, %v10279_v14  ;;  %v5427_v30 = vadd.f32 1e-06, %v5363_v5  ;;  %v10312_v55 = vpop.f32.mrb[113].mxu0  ;;  %v10314_v31 = vpop.f32.mrb[114].mxu1 }
 0x357   : > { %11799 = vst [vmem:[#allocation19_spill] sm:$0xff] %v10288_v18  ;;  %11800 = vst [vmem:[#allocation21_spill] sm:$0xff] %v10292_v11  ;;  %v4975_v37 = vmul.f32 %v10284_v19, %v10284_v19  ;;  %v4978_v57 = vmul.f32 %v10288_v18, %v10288_v18  ;;  %v5861_v21 = vmul.f32 %v9758_v52, %v5583_v49  ;;  %v10320_v47 = vpop.f32.mrb[114].mxu0  ;;  %v10322_v5 = vpop.f32.mrb[115].mxu1  ;;  %v5364_v1 = vmul.f32 0.001953125, %v5099_v40 }
 0x358   : > { %v5862_v6 = vmul.f32 %v9766_v29, %v5584_v56  ;;  %v5863_v17 = vmul.f32 %v9770_v58, %v5585_v36  ;;  %v5864_v14 = vmul.f32 %v9774_v2, %v5586_v51  ;;  %8360 = vrsqrt.f32 %v5427_v30  ;;  %v10334_v56 = vpop.f32.mrb[115].mxu0  ;;  %v5104_v30 = vpop.xlane.xlu0 %5103 }
 0x359   : > { %v10324_v18 = vadd.f32 %v4975_v37, %v4974_v44  ;;  %v10328_v19 = vmul.f32 %v10292_v11, %v10292_v11  ;;  %v10332_v49 = vadd.f32 %v8958_v3, %v10109_v41  ;;  %v10338_v60 = vadd.f32 %v8954_v0, %v10121_v10  ;;  %v5109_v42 = vpop.xlane.xlu1 %5108 }
 0x35a   : > { %v7509_v36 = vpack.c.bf16 %v5862_v6, %v5861_v21  ;;  %v7510_v51 = vpack.c.bf16 %v5864_v14, %v5863_v17  ;;  %v5271_v37 = vadd.f32 %v10214_v15, %v10164_v4  ;;  %v5276_v41 = vadd.f32 %v5275_v8, %v10210_v16  ;;  %v10367_v8 = vpop.f32.mrb[116].mxu0  ;;  %v10369_v6 = vpop.f32.mrb[116].mxu1  ;;  %v11810_v17 = vld [vmem:[#allocation25_spill] sm:$0xff] }
 0x35b   : > { %11805 = vst [vmem:[#allocation22_spill] sm:$0xff] %v10332_v49  ;;  %11806 = vst [vmem:[#allocation24_spill] sm:$0xff] %v10338_v60  ;;  %v10342_v44 = vmul.f32 %v10332_v49, %v10332_v49  ;;  %v10349_v11 = vadd.f32 %v8946_v62, %v10148_v9  ;;  %v5428_v14 = vadd.f32 1e-06, %v5364_v1  ;;  %v4979_v10 = vmul.f32 %v10338_v60, %v10338_v60  ;;  %v11812_v49 = vld [vmem:[#allocation27_spill] sm:$0xff]  ;;  %v11813_v60 = vld [vmem:[#allocation29_spill] sm:$0xff] }
 0x35c   : > { %6865 = vst [vmem:[%s9873_s21 + $0xa0] sm:$0xff] %v7509_v36  ;;  %6866 = vst [vmem:[%s9873_s21 + $0xa8] sm:$0xff] %v7510_v51  ;;  %v10357_v40 = vadd.f32 %v8950_v63, %v10150_v54  ;;  %v10361_v21 = vadd.f32 %v8958_v3, %v10158_v32  ;;  %v8359_v4 = vpop.eup %8358  ;;  %v5272_v16 = vadd.f32 %v5271_v37, %v10168_v26  ;;  %v5365_v1 = vmul.f32 0.001953125, %v5104_v30  ;;  %v11811_v36 = vld [vmem:[#allocation28_spill] sm:$0xff]  ;;  %v10375_v26 = vpop.f32.mrb[117].mxu1 }
 0x35d   : > { %11807 = vst [vmem:[#allocation23_spill] sm:$0xff] %v10349_v11  ;;  %v5277_v9 = vadd.f32 %v5276_v41, %v10232_v24  ;;  %v4982_v15 = vmul.f32 %v10349_v11, %v10349_v11  ;;  %v5587_v54 = vmul.f32 %v8359_v4, %v11810_v17  ;;  %v5588_v51 = vmul.f32 %v8359_v4, %v11811_v36  ;;  %v10385_v41 = vpop.f32.mrb[117].mxu0  ;;  %v11821_v11 = vld [vmem:[#allocation34_spill] sm:$0xff] }
 0x35e   : > { %11808 = vst [vmem:[#allocation26_spill] sm:$0xff] %v10357_v40  ;;  %11809 = vst [vmem:[#allocation178_spill] sm:$0xff] %v10361_v21  ;;  %v5589_v32 = vmul.f32 %v8359_v4, %v11812_v49  ;;  %v5590_v33 = vmul.f32 %v8359_v4, %v11813_v60  ;;  %8362 = vrsqrt.f32 %v5428_v14  ;;  %v5285_v24 = vadd.f32 %v4979_v10, %v4978_v57  ;;  %v10387_v49 = vpop.f32.mrb[118].mxu1  ;;  %v10393_v10 = vpop.f32.mrb[118].mxu0 }
 0x35f   : > { %5273 = vadd.xlane.f32.xlu0 %v5272_v16  ;;  %5278 = vadd.xlane.f32.xlu1 %v5277_v9  ;;  %v10379_v30 = vmul.f32 %v10357_v40, %v10357_v40  ;;  %v10383_v37 = vmul.f32 %v10361_v21, %v10361_v21  ;;  %v5865_v60 = vmul.f32 %v9758_v52, %v5587_v54  ;;  %v10395_v16 = vpop.f32.mrb[119].mxu1  ;;  %v5429_v9 = vadd.f32 1e-06, %v5365_v1 }
 0x360   : > { %v5866_v4 = vmul.f32 %v9766_v29, %v5588_v51  ;;  %v5867_v57 = vmul.f32 %v9770_v58, %v5589_v32  ;;  %v5868_v14 = vmul.f32 %v9774_v2, %v5590_v33  ;;  %v10399_v17 = vadd.f32 %v8954_v0, %v10170_v23  ;;  %v10409_v33 = vpop.f32.mrb[119].mxu0 }
 0x361   : > { %v10403_v54 = vadd.f32 %v8946_v62, %v10178_v53  ;;  %v10407_v36 = vadd.f32 %v8950_v63, %v10172_v50  ;;  %v10413_v21 = vadd.f32 %v8958_v3, %v10180_v38  ;;  %v5366_v1 = vmul.f32 0.001953125, %v5109_v42 }
 0x362   : > { %11814 = vst [vmem:[#allocation25_spill] sm:$0xff] %v10399_v17  ;;  %v7511_v51 = vpack.c.bf16 %v5866_v4, %v5865_v60  ;;  %v7512_v32 = vpack.c.bf16 %v5868_v14, %v5867_v57  ;;  %v8361_v40 = vpop.eup %8360  ;;  %8364 = vrsqrt.f32 %v5429_v9  ;;  %v4983_v23 = vmul.f32 %v10399_v17, %v10399_v17  ;;  %v11818_v60 = vld [vmem:[#allocation30_spill] sm:$0xff]  ;;  %v11819_v57 = vld [vmem:[#allocation32_spill] sm:$0xff]  ;;  %v11820_v14 = vld [vmem:[#allocation31_spill] sm:$0xff] }
 0x363   : > { %11815 = vst [vmem:[#allocation28_spill] sm:$0xff] %v10403_v54  ;;  %11816 = vst [vmem:[#allocation27_spill] sm:$0xff] %v10407_v36  ;;  %v4986_v53 = vmul.f32 %v10403_v54, %v10403_v54  ;;  %v10421_v50 = vmul.f32 %v10407_v36, %v10407_v36  ;;  %v5591_v4 = vmul.f32 %v8361_v40, %v11818_v60  ;;  %v5430_v54 = vadd.f32 1e-06, %v5366_v1 }
 0x364   : > { %11817 = vst [vmem:[#allocation29_spill] sm:$0xff] %v10413_v21  ;;  %6867 = vst [vmem:[%s9873_s21 + $0xb0] sm:$0xff] %v7511_v51  ;;  %v5592_v38 = vmul.f32 %v8361_v40, %v11819_v57  ;;  %v5593_v42 = vmul.f32 %v8361_v40, %v11820_v14  ;;  %v5594_v9 = vmul.f32 %v8361_v40, %v11821_v11  ;;  %v10439_v51 = vpop.f32.mrb[120].mxu0 }
 0x365   : > { %6868 = vst [vmem:[%s9873_s21 + $0xb8] sm:$0xff] %v7512_v32  ;;  %v10429_v22 = vadd.f32 %v4983_v23, %v4982_v15  ;;  %v10433_v17 = vmul.f32 %v10413_v21, %v10413_v21  ;;  %v10437_v36 = vadd.f32 %v8954_v0, %v10194_v7  ;;  %v10441_v32 = vpop.f32.mrb[120].mxu1  ;;  %v5869_v60 = vmul.f32 %v9758_v52, %v5591_v4  ;;  %v5114_v15 = vpop.xlane.xlu0 %5113 }
 0x366   : > { %v5870_v57 = vmul.f32 %v9766_v29, %v5592_v38  ;;  %v5871_v11 = vmul.f32 %v9770_v58, %v5593_v42  ;;  %v5872_v40 = vmul.f32 %v9774_v2, %v5594_v9  ;;  %v10447_v23 = vpop.f32.mrb[121].mxu1  ;;  %8366 = vrsqrt.f32 %v5430_v54  ;;  %v10454_v4 = vpop.f32.mrb[121].mxu0 }
 0x367   : > { %11822 = vst [vmem:[#allocation30_spill] sm:$0xff] %v10437_v36  ;;  %v4987_v7 = vmul.f32 %v10437_v36, %v10437_v36  ;;  %v5281_v1 = vadd.f32 %v10324_v18, %v10275_v12  ;;  %v5286_v14 = vadd.f32 %v5285_v24, %v10328_v19  ;;  %v10456_v38 = vpop.f32.mrb[122].mxu1  ;;  %v10460_v21 = vadd.f32 %v8946_v62, %v10220_v27  ;;  %v10466_v36 = vpop.f32.mrb[122].mxu0 }
 0x368   : > { %11823 = vst [vmem:[#allocation32_spill] sm:$0xff] %v10456_v38  ;;  %v7513_v42 = vpack.c.bf16 %v5870_v57, %v5869_v60  ;;  %v7514_v9 = vpack.c.bf16 %v5872_v40, %v5871_v11  ;;  %v10464_v54 = vadd.f32 %v8950_v63, %v10222_v39  ;;  %v10468_v12 = vpop.f32.mrb[123].mxu1  ;;  %v8363_v19 = vpop.eup %8362  ;;  %v10476_v57 = vadd.f32 %v8958_v3, %v10227_v28  ;;  %v11829_v39 = vld [vmem:[#allocation33_spill] sm:$0xff]  ;;  %v11830_v40 = vld [vmem:[#allocation36_spill] sm:$0xff] }
 0x369   : > { %11824 = vst [vmem:[#allocation31_spill] sm:$0xff] %v10460_v21  ;;  %11826 = vst [vmem:[#allocation179_spill] sm:$0xff] %v10468_v12  ;;  %v10470_v18 = vadd.f32 %v4987_v7, %v4986_v53  ;;  %v5282_v24 = vadd.f32 %v5281_v1, %v10306_v46  ;;  %v5287_v60 = vadd.f32 %v5286_v14, %v10342_v44  ;;  %v10478_v27 = vpop.f32.mrb[123].mxu0  ;;  %v11832_v53 = vld [vmem:[#allocation37_spill] sm:$0xff]  ;;  %v5367_v1 = vmul.f32 0.001953125, %v5114_v15 }
 0x36a   : > { %11825 = vst [vmem:[#allocation34_spill] sm:$0xff] %v10464_v54  ;;  %11827 = vst [vmem:[#allocation180_spill] sm:$0xff] %v10476_v57  ;;  %v5595_v11 = vmul.f32 %v8363_v19, %v11829_v39  ;;  %v5596_v45 = vmul.f32 %v8363_v19, %v11830_v40  ;;  %v5597_v12 = vmul.f32 %v8363_v19, %v11831_v25 }
 0x36b   : > { %11828 = vst [vmem:[#allocation181_spill] sm:$0xff] %v10478_v27  ;;  %6869 = vst [vmem:[%s9873_s21 + $0xc0] sm:$0xff] %v7513_v42  ;;  %v5598_v7 = vmul.f32 %v8363_v19, %v11832_v53  ;;  %5283 = vadd.xlane.f32.xlu0 %v5282_v24  ;;  %5288 = vadd.xlane.f32.xlu1 %v5287_v60  ;;  %v4990_v46 = vmul.f32 %v10460_v21, %v10460_v21  ;;  %v5431_v24 = vadd.f32 1e-06, %v5367_v1  ;;  %v11838_v53 = vld [vmem:[#allocation38_spill] sm:$0xff] }
 0x36c   : > { %6870 = vst [vmem:[%s9873_s21 + $0xc8] sm:$0xff] %v7514_v9  ;;  %v10490_v28 = vmul.f32 %v10464_v54, %v10464_v54  ;;  %v10494_v44 = vmul.f32 %v10476_v57, %v10476_v57  ;;  %v5873_v14 = vmul.f32 %v9758_v52, %v5595_v11  ;;  %v5874_v25 = vmul.f32 %v9766_v29, %v5596_v45  ;;  %v8365_v19 = vpop.eup %8364  ;;  %v10512_v45 = vpop.f32.mrb[124].mxu0  ;;  %v11841_v27 = vld [vmem:[#allocation42_spill] sm:$0xff] }
 0x36d   : > { %v5875_v42 = vmul.f32 %v9770_v58, %v5597_v12  ;;  %v5876_v9 = vmul.f32 %v9774_v2, %v5598_v7  ;;  %v10502_v60 = vadd.f32 %v8954_v0, %v10234_v20  ;;  %v10506_v39 = vadd.f32 %v8946_v62, %v10246_v48  ;;  %11836 = vst [vmem:[#allocation37_spill] sm:$0xff] %v10512_v45  ;;  %v10514_v12 = vpop.f32.mrb[124].mxu1  ;;  %v11839_v20 = vld [vmem:[#allocation40_spill] sm:$0xff]  ;;  %v5119_v57 = vpop.xlane.xlu1 %5118  ;;  %v11840_v48 = vld [vmem:[#allocation39_spill] sm:$0xff] }
 0x36e   : > { %v10510_v15 = vadd.f32 %v8950_v63, %v10236_v13  ;;  %11837 = vst [vmem:[#allocation182_spill] sm:$0xff] %v10514_v12  ;;  %v7515_v11 = vpack.c.bf16 %v5874_v25, %v5873_v14  ;;  %v5599_v7 = vmul.f32 %v8365_v19, %v11838_v53  ;;  %v5600_v1 = vmul.f32 %v8365_v19, %v11839_v20  ;;  %v10518_v54 = vpop.f32.mrb[125].mxu1  ;;  %v10524_v45 = vpop.f32.mrb[125].mxu0 }
 0x36f   : > { %11833 = vst [vmem:[#allocation33_spill] sm:$0xff] %v10502_v60  ;;  %11834 = vst [vmem:[#allocation36_spill] sm:$0xff] %v10506_v39  ;;  %v7516_v40 = vpack.c.bf16 %v5876_v9, %v5875_v42  ;;  %v5601_v21 = vmul.f32 %v8365_v19, %v11840_v48  ;;  %v5602_v38 = vmul.f32 %v8365_v19, %v11841_v27  ;;  %8368 = vrsqrt.f32 %v5431_v24  ;;  %v10526_v12 = vpop.f32.mrb[126].mxu1  ;;  %v10538_v9 = vpop.f32.mrb[126].mxu0  ;;  %v11846_v48 = vld [vmem:[#allocation41_spill] sm:$0xff] }
 0x370   : > { %11835 = vst [vmem:[#allocation35_spill] sm:$0xff] %v10510_v15  ;;  %v4991_v13 = vmul.f32 %v10502_v60, %v10502_v60  ;;  %11842 = vst [vmem:[#allocation38_spill] sm:$0xff] %v10524_v45  ;;  %v5877_v14 = vmul.f32 %v9758_v52, %v5599_v7  ;;  %v5878_v25 = vmul.f32 %v9766_v29, %v5600_v1  ;;  %v10540_v19 = vpop.f32.mrb[127].mxu1  ;;  %v8367_v24 = vpop.eup %8366 }
 0x371   : > { %11843 = vst [vmem:[#allocation40_spill] sm:$0xff] %v10526_v12  ;;  %6871 = vst [vmem:[%s9873_s21 + $0xd0] sm:$0xff] %v7515_v11  ;;  %v4994_v42 = vmul.f32 %v10506_v39, %v10506_v39  ;;  %v10536_v27 = vmul.f32 %v10510_v15, %v10510_v15  ;;  %v5879_v11 = vmul.f32 %v9770_v58, %v5601_v21  ;;  %v10550_v20 = vpop.f32.mrb[127].mxu0  ;;  %v11847_v39 = vld [vmem:[#allocation44_spill] sm:$0xff]  ;;  %v11849_v21 = vld [vmem:[#allocation45_spill] sm:$0xff] }
 0x372   : > { %6872 = vst [vmem:[%s9873_s21 + $0xd8] sm:$0xff] %v7516_v40  ;;  %11844 = vst [vmem:[#allocation39_spill] sm:$0xff] %v10538_v9  ;;  %v5880_v40 = vmul.f32 %v9774_v2, %v5602_v38  ;;  %v10544_v53 = vadd.f32 %v4991_v13, %v4990_v46  ;;  %v10548_v7 = vadd.f32 %v8958_v3, %v10248_v34  ;;  %v5368_v46 = vmul.f32 0.001953125, %v5119_v57 }
 0x373   : > { %11845 = vst [vmem:[#allocation42_spill] sm:$0xff] %v10540_v19  ;;  %v7517_v1 = vpack.c.bf16 %v5878_v25, %v5877_v14  ;;  %v5603_v15 = vmul.f32 %v8367_v24, %v11846_v48  ;;  %v5604_v60 = vmul.f32 %v8367_v24, %v11847_v39  ;;  %v11848_v19 = vld [vmem:[#allocation43_spill] sm:$0xff]  ;;  %v5606_v45 = vmul.f32 %v8367_v24, %v11849_v21  ;;  %v11851_v48 = vld [vmem:[#allocation48_spill] sm:$0xff] }
 0x374   : > { %v5605_v12 = vmul.f32 %v8367_v24, %v11848_v19  ;;  %v7518_v9 = vpack.c.bf16 %v5880_v40, %v5879_v11  ;;  %v10558_v38 = vmul.f32 %v10548_v7, %v10548_v7  ;;  %v10566_v39 = vadd.f32 %v8954_v0, %v10256_v35 }
 0x375   : > { %6873 = vst [vmem:[%s9873_s21 + $0xe0] sm:$0xff] %v7517_v1  ;;  %v5881_v34 = vmul.f32 %v9758_v52, %v5603_v15  ;;  %v5882_v13 = vmul.f32 %v9766_v29, %v5604_v60  ;;  %v5884_v25 = vmul.f32 %v9774_v2, %v5606_v45  ;;  %v5432_v19 = vadd.f32 1e-06, %v5368_v46  ;;  %v5124_v45 = vpop.xlane.xlu0 %5123  ;;  %v11850_v1 = vld [vmem:[#allocation46_spill] sm:$0xff]  ;;  %v11852_v46 = vld [vmem:[#allocation47_spill] sm:$0xff] }
 0x376   : > { %v5883_v14 = vmul.f32 %v9770_v58, %v5605_v12  ;;  %6874 = vst [vmem:[%s9873_s21 + $0xe8] sm:$0xff] %v7518_v9  ;;  %v5291_v24 = vadd.f32 %v10429_v22, %v10379_v30  ;;  %v5296_v57 = vadd.f32 %v10470_v18, %v10421_v50  ;;  %v4995_v60 = vmul.f32 %v10566_v39, %v10566_v39 }
 0x377   : > { %v7519_v15 = vpack.c.bf16 %v5882_v13, %v5881_v34  ;;  %v10578_v12 = vadd.f32 %v8946_v62, %v10294_v43  ;;  %v10582_v35 = vadd.f32 %v8950_v63, %v10296_v59  ;;  %8370 = vrsqrt.f32 %v5432_v19  ;;  %v11853_v13 = vld [vmem:[#allocation50_spill] sm:$0xff]  ;;  %v5129_v19 = vpop.xlane.xlu1 %5128 }
 0x378   : > { %v7520_v9 = vpack.c.bf16 %v5884_v25, %v5883_v14  ;;  %v5292_v22 = vadd.f32 %v5291_v24, %v10383_v37  ;;  %v5297_v30 = vadd.f32 %v5296_v57, %v10433_v17  ;;  %v5305_v50 = vadd.f32 %v4995_v60, %v4994_v42 }
 0x379   : > { %6875 = vst [vmem:[%s9873_s21 + $0xf0] sm:$0xff] %v7519_v15  ;;  %v4998_v18 = vmul.f32 %v10578_v12, %v10578_v12  ;;  %v10591_v43 = vmul.f32 %v10582_v35, %v10582_v35  ;;  %v10595_v59 = vadd.f32 %v8958_v3, %v10302_v61  ;;  %v8369_v11 = vpop.eup %8368  ;;  %v5369_v37 = vmul.f32 0.001953125, %v5124_v45 }
 0x37a   : > { %6876 = vst [vmem:[%s9873_s21 + $0xf8] sm:$0xff] %v7520_v9  ;;  %5293 = vadd.xlane.f32.xlu0 %v5292_v22  ;;  %5298 = vadd.xlane.f32.xlu1 %v5297_v30  ;;  %v10600_v17 = vadd.f32 %v8954_v0, %v10312_v55  ;;  %v10604_v42 = vadd.f32 %v8946_v62, %v10320_v47 }
 0x37b   : > { %v10608_v40 = vadd.f32 %v8950_v63, %v10314_v31  ;;  %v5607_v61 = vmul.f32 %v8369_v11, %v11850_v1  ;;  %v5608_v21 = vmul.f32 %v8369_v11, %v11851_v48  ;;  %v5609_v34 = vmul.f32 %v8369_v11, %v11852_v46 }
 0x37c   : > { %v5610_v14 = vmul.f32 %v8369_v11, %v11853_v13  ;;  %v10616_v55 = vmul.f32 %v10595_v59, %v10595_v59  ;;  %v5433_v25 = vadd.f32 1e-06, %v5369_v37  ;;  %v4999_v47 = vmul.f32 %v10600_v17, %v10600_v17 }
 0x37d   : > { %v5002_v31 = vmul.f32 %v10604_v42, %v10604_v42  ;;  %v5885_v24 = vmul.f32 %v9758_v52, %v5607_v61  ;;  %v5886_v57 = vmul.f32 %v9766_v29, %v5608_v21  ;;  %v5887_v15 = vmul.f32 %v9770_v58, %v5609_v34  ;;  %v5134_v61 = vpop.xlane.xlu0 %5133 }
 0x37e   : > { %v5888_v60 = vmul.f32 %v9774_v2, %v5610_v14  ;;  %8372 = vrsqrt.f32 %v5433_v25  ;;  %v10626_v45 = vadd.f32 %v4999_v47, %v4998_v18  ;;  %v10630_v9 = vmul.f32 %v10608_v40, %v10608_v40  ;;  %v11854_v14 = vld [vmem:[#allocation49_spill] sm:$0xff]  ;;  %v11855_v47 = vld [vmem:[#allocation52_spill] sm:$0xff] }
 0x37f   : > { %v10634_v22 = vadd.f32 %v8958_v3, %v10322_v5  ;;  %v7521_v30 = vpack.c.bf16 %v5886_v57, %v5885_v24  ;;  %v5370_v37 = vmul.f32 0.001953125, %v5129_v19  ;;  %v10638_v1 = vadd.f32 %v8954_v0, %v10334_v56  ;;  %v11856_v24 = vld [vmem:[#allocation51_spill] sm:$0xff]  ;;  %v11857_v57 = vld [vmem:[#allocation53_spill] sm:$0xff] }
 0x380   : > { %v7522_v11 = vpack.c.bf16 %v5888_v60, %v5887_v15  ;;  %v5301_v48 = vadd.f32 %v10544_v53, %v10490_v28  ;;  %v5306_v21 = vadd.f32 %v5305_v50, %v10536_v27  ;;  %v10649_v5 = vadd.f32 %v8946_v62, %v10367_v8  ;;  %v5139_v60 = vpop.xlane.xlu1 %5138 }
 0x381   : > { %v10642_v18 = vmul.f32 %v10634_v22, %v10634_v22  ;;  %6877 = vst [vmem:[%s9873_s21 + $0x100] sm:$0xff] %v7521_v30  ;;  %v5434_v46 = vadd.f32 1e-06, %v5370_v37  ;;  %v5003_v56 = vmul.f32 %v10638_v1, %v10638_v1  ;;  %v10657_v34 = vadd.f32 %v8950_v63, %v10369_v6  ;;  %v8371_v28 = vpop.eup %8370 }
 0x382   : > { %6878 = vst [vmem:[%s9873_s21 + $0x108] sm:$0xff] %v7522_v11  ;;  %v10661_v13 = vadd.f32 %v8958_v3, %v10375_v26  ;;  %v5302_v27 = vadd.f32 %v5301_v48, %v10494_v44  ;;  %v5307_v8 = vadd.f32 %v5306_v21, %v10558_v38  ;;  %v5006_v53 = vmul.f32 %v10649_v5, %v10649_v5 }
 0x383   : > { %v5371_v50 = vmul.f32 0.001953125, %v5134_v61  ;;  %v5611_v25 = vmul.f32 %v8371_v28, %v11854_v14  ;;  %v5612_v19 = vmul.f32 %v8371_v28, %v11855_v47  ;;  %v5613_v6 = vmul.f32 %v8371_v28, %v11856_v24  ;;  %v11859_v47 = vld [vmem:[#allocation56_spill] sm:$0xff] }
 0x384   : > { %v5614_v15 = vmul.f32 %v8371_v28, %v11857_v57  ;;  %8374 = vrsqrt.f32 %v5434_v46  ;;  %v5315_v26 = vadd.f32 %v5003_v56, %v5002_v31  ;;  %5303 = vadd.xlane.f32.xlu0 %v5302_v27  ;;  %5308 = vadd.xlane.f32.xlu1 %v5307_v8  ;;  %v10673_v44 = vmul.f32 %v10657_v34, %v10657_v34 }
 0x385   : > { %v10677_v38 = vmul.f32 %v10661_v13, %v10661_v13  ;;  %v5889_v30 = vmul.f32 %v9758_v52, %v5611_v25  ;;  %v5890_v11 = vmul.f32 %v9766_v29, %v5612_v19  ;;  %v5891_v37 = vmul.f32 %v9770_v58, %v5613_v6  ;;  %v11860_v19 = vld [vmem:[#allocation55_spill] sm:$0xff]  ;;  %v11861_v6 = vld [vmem:[#allocation58_spill] sm:$0xff] }
 0x386   : > { %v5892_v31 = vmul.f32 %v9774_v2, %v5614_v15  ;;  %v5435_v61 = vadd.f32 1e-06, %v5371_v50  ;;  %v10685_v48 = vadd.f32 %v8954_v0, %v10385_v41  ;;  %v10689_v21 = vadd.f32 %v8946_v62, %v10393_v10 }
 0x387   : > { %v10693_v46 = vadd.f32 %v8950_v63, %v10387_v49  ;;  %v7523_v56 = vpack.c.bf16 %v5890_v11, %v5889_v30  ;;  %v10697_v27 = vadd.f32 %v8958_v3, %v10395_v16  ;;  %v5372_v8 = vmul.f32 0.001953125, %v5139_v60  ;;  %v11858_v49 = vld [vmem:[#allocation54_spill] sm:$0xff] }
 0x388   : > { %v7524_v28 = vpack.c.bf16 %v5892_v31, %v5891_v37  ;;  %v8373_v50 = vpop.eup %8372  ;;  %8376 = vrsqrt.f32 %v5435_v61  ;;  %v5007_v41 = vmul.f32 %v10685_v48, %v10685_v48  ;;  %v5010_v10 = vmul.f32 %v10689_v21, %v10689_v21 }
 0x389   : > { %v10705_v14 = vmul.f32 %v10693_v46, %v10693_v46  ;;  %6879 = vst [vmem:[%s9873_s21 + $0x110] sm:$0xff] %v7523_v56  ;;  %v5615_v25 = vmul.f32 %v8373_v50, %v11858_v49  ;;  %v5616_v16 = vmul.f32 %v8373_v50, %v11859_v47  ;;  %v5617_v24 = vmul.f32 %v8373_v50, %v11860_v19 }
 0x38a   : > { %6880 = vst [vmem:[%s9873_s21 + $0x118] sm:$0xff] %v7524_v28  ;;  %v5618_v57 = vmul.f32 %v8373_v50, %v11861_v6  ;;  %v10713_v15 = vadd.f32 %v5007_v41, %v5006_v53  ;;  %v10717_v60 = vmul.f32 %v10697_v27, %v10697_v27  ;;  %v5436_v30 = vadd.f32 1e-06, %v5372_v8 }
 0x38b   : > { %v10721_v11 = vadd.f32 %v8954_v0, %v10409_v33  ;;  %v5893_v37 = vmul.f32 %v9758_v52, %v5615_v25  ;;  %v5894_v31 = vmul.f32 %v9766_v29, %v5616_v16  ;;  %v5895_v61 = vmul.f32 %v9770_v58, %v5617_v24  ;;  %v5144_v25 = vpop.xlane.xlu0 %5143 }
 0x38c   : > { %v5896_v56 = vmul.f32 %v9774_v2, %v5618_v57  ;;  %8378 = vrsqrt.f32 %v5436_v30  ;;  %v5311_v28 = vadd.f32 %v10626_v45, %v10591_v43  ;;  %v5316_v33 = vadd.f32 %v5315_v26, %v10630_v9  ;;  %v11864_v26 = vld [vmem:[#allocation60_spill] sm:$0xff]  ;;  %v11866_v57 = vld [vmem:[#allocation61_spill] sm:$0xff] }
 0x38d   : > { %v5011_v53 = vmul.f32 %v10721_v11, %v10721_v11  ;;  %v7525_v8 = vpack.c.bf16 %v5894_v31, %v5893_v37  ;;  %v10734_v41 = vadd.f32 %v8946_v62, %v10439_v51  ;;  %v10738_v49 = vadd.f32 %v8950_v63, %v10441_v32  ;;  %v11863_v51 = vld [vmem:[#allocation57_spill] sm:$0xff]  ;;  %v11865_v32 = vld [vmem:[#allocation59_spill] sm:$0xff] }
 0x38e   : > { %v7526_v50 = vpack.c.bf16 %v5896_v56, %v5895_v61  ;;  %v8375_v47 = vpop.eup %8374  ;;  %v5312_v19 = vadd.f32 %v5311_v28, %v10616_v55  ;;  %v5317_v43 = vadd.f32 %v5316_v33, %v10642_v18  ;;  %v10746_v45 = vadd.f32 %v8958_v3, %v10447_v23 }
 0x38f   : > { %v10740_v16 = vadd.f32 %v5011_v53, %v5010_v10  ;;  %6881 = vst [vmem:[%s9873_s21 + $0x120] sm:$0xff] %v7525_v8  ;;  %v5619_v9 = vmul.f32 %v8375_v47, %v11863_v51  ;;  %v5620_v24 = vmul.f32 %v8375_v47, %v11864_v26  ;;  %v5621_v6 = vmul.f32 %v8375_v47, %v11865_v32 }
 0x390   : > { %11862 = vst [vmem:[#allocation41_spill] sm:$0xff] %v10746_v45  ;;  %6882 = vst [vmem:[%s9873_s21 + $0x128] sm:$0xff] %v7526_v50  ;;  %v5622_v30 = vmul.f32 %v8375_v47, %v11866_v57  ;;  %5313 = vadd.xlane.f32.xlu0 %v5312_v19  ;;  %5318 = vadd.xlane.f32.xlu1 %v5317_v43  ;;  %v5014_v55 = vmul.f32 %v10734_v41, %v10734_v41  ;;  %v5373_v10 = vmul.f32 0.001953125, %v5144_v25  ;;  %v11868_v50 = vld [vmem:[#allocation32_spill] sm:$0xff]  ;;  %v11870_v43 = vld [vmem:[#allocation62_spill] sm:$0xff] }
 0x391   : > { %v10758_v18 = vmul.f32 %v10738_v49, %v10738_v49  ;;  %v10762_v23 = vmul.f32 %v10746_v45, %v10746_v45  ;;  %v5897_v37 = vmul.f32 %v9758_v52, %v5619_v9  ;;  %v5898_v31 = vmul.f32 %v9766_v29, %v5620_v24  ;;  %v11871_v9 = vld [vmem:[#allocation64_spill] sm:$0xff]  ;;  %v11872_v24 = vld [vmem:[#allocation63_spill] sm:$0xff]  ;;  %v11878_v45 = vld [vmem:[#allocation69_spill] sm:$0xff] }
 0x392   : > { %v5899_v61 = vmul.f32 %v9770_v58, %v5621_v6  ;;  %v5900_v56 = vmul.f32 %v9774_v2, %v5622_v30  ;;  %v8377_v53 = vpop.eup %8376  ;;  %v5437_v28 = vadd.f32 1e-06, %v5373_v10  ;;  %v10770_v33 = vadd.f32 %v8954_v0, %v10454_v4  ;;  %v11873_v6 = vld [vmem:[#allocation66_spill] sm:$0xff] }
 0x393   : > { %v10774_v8 = vadd.f32 %v8946_v62, %v10466_v36  ;;  %v10778_v25 = vadd.f32 %v8950_v63, %v11868_v50  ;;  %v7527_v47 = vpack.c.bf16 %v5898_v31, %v5897_v37  ;;  %v5623_v51 = vmul.f32 %v8377_v53, %v11870_v43  ;;  %v5149_v31 = vpop.xlane.xlu1 %5148  ;;  %v11874_v50 = vld [vmem:[#allocation179_spill] sm:$0xff]  ;;  %v11875_v43 = vld [vmem:[#allocation65_spill] sm:$0xff] }
 0x394   : > { %v7528_v19 = vpack.c.bf16 %v5900_v56, %v5899_v61  ;;  %v5624_v26 = vmul.f32 %v8377_v53, %v11871_v9  ;;  %v5625_v32 = vmul.f32 %v8377_v53, %v11872_v24  ;;  %v5626_v57 = vmul.f32 %v8377_v53, %v11873_v6  ;;  %v11876_v9 = vld [vmem:[#allocation68_spill] sm:$0xff]  ;;  %v11877_v24 = vld [vmem:[#allocation67_spill] sm:$0xff] }
 0x395   : > { %11867 = vst [vmem:[#allocation44_spill] sm:$0xff] %v10774_v8  ;;  %11869 = vst [vmem:[#allocation43_spill] sm:$0xff] %v10778_v25  ;;  %8380 = vrsqrt.f32 %v5437_v28  ;;  %v5015_v4 = vmul.f32 %v10770_v33, %v10770_v33  ;;  %v5901_v36 = vmul.f32 %v9758_v52, %v5623_v51  ;;  %v5018_v10 = vmul.f32 %v10774_v8, %v10774_v8 }
 0x396   : > { %6883 = vst [vmem:[%s9873_s21 + $0x130] sm:$0xff] %v7527_v47  ;;  %6884 = vst [vmem:[%s9873_s21 + $0x138] sm:$0xff] %v7528_v19  ;;  %v5902_v30 = vmul.f32 %v9766_v29, %v5624_v26  ;;  %v10794_v37 = vmul.f32 %v10778_v25, %v10778_v25  ;;  %v8379_v61 = vpop.eup %8378  ;;  %v5903_v56 = vmul.f32 %v9770_v58, %v5625_v32  ;;  %v5154_v25 = vpop.xlane.xlu0 %5153 }
 0x397   : > { %v5904_v53 = vmul.f32 %v9774_v2, %v5626_v57  ;;  %v10798_v28 = vadd.f32 %v5015_v4, %v5014_v55  ;;  %v10802_v47 = vadd.f32 %v8958_v3, %v11874_v50  ;;  %v5627_v51 = vmul.f32 %v8379_v61, %v11875_v43  ;;  %v11879_v50 = vld [vmem:[#allocation181_spill] sm:$0xff] }
 0x398   : > { %v7529_v19 = vpack.c.bf16 %v5902_v30, %v5901_v36  ;;  %v5628_v26 = vmul.f32 %v8379_v61, %v11876_v9  ;;  %v5629_v6 = vmul.f32 %v8379_v61, %v11877_v24  ;;  %v5630_v32 = vmul.f32 %v8379_v61, %v11878_v45  ;;  %v11880_v9 = vld [vmem:[#allocation37_spill] sm:$0xff]  ;;  %v11881_v24 = vld [vmem:[#allocation182_spill] sm:$0xff] }
 0x399   : > { %v7530_v8 = vpack.c.bf16 %v5904_v53, %v5903_v56  ;;  %v10810_v55 = vmul.f32 %v10802_v47, %v10802_v47  ;;  %v5374_v57 = vmul.f32 0.001953125, %v5149_v31  ;;  %v5905_v4 = vmul.f32 %v9758_v52, %v5627_v51  ;;  %v5159_v56 = vpop.xlane.xlu1 %5158 }
 0x39a   : > { %6885 = vst [vmem:[%s9873_s21 + $0x140] sm:$0xff] %v7529_v19  ;;  %v5906_v36 = vmul.f32 %v9766_v29, %v5628_v26  ;;  %v5907_v30 = vmul.f32 %v9770_v58, %v5629_v6  ;;  %v10818_v43 = vadd.f32 %v8954_v0, %v11879_v50  ;;  %v5908_v45 = vmul.f32 %v9774_v2, %v5630_v32  ;;  %v5164_v6 = vpop.xlane.xlu0 %5163 }
 0x39b   : > { %6886 = vst [vmem:[%s9873_s21 + $0x148] sm:$0xff] %v7530_v8  ;;  %v5438_v61 = vadd.f32 1e-06, %v5374_v57  ;;  %v5321_v31 = vadd.f32 %v10713_v15, %v10673_v44  ;;  %v5326_v53 = vadd.f32 %v10740_v16, %v10705_v14  ;;  %v10830_v26 = vadd.f32 %v8946_v62, %v11880_v9  ;;  %v11891_v9 = vld [vmem:[#allocation71_spill] sm:$0xff] }
 0x39c   : > { %v7531_v19 = vpack.c.bf16 %v5906_v36, %v5905_v4  ;;  %v5019_v51 = vmul.f32 %v10818_v43, %v10818_v43  ;;  %v10834_v8 = vadd.f32 %v8950_v63, %v11881_v24  ;;  %v7532_v32 = vpack.c.bf16 %v5908_v45, %v5907_v30  ;;  %v11884_v30 = vld [vmem:[#allocation38_spill] sm:$0xff] }
 0x39d   : > { %8382 = vrsqrt.f32 %v5438_v61  ;;  %v5322_v44 = vadd.f32 %v5321_v31, %v10677_v38  ;;  %v5327_v14 = vadd.f32 %v5326_v53, %v10717_v60  ;;  %v5022_v16 = vmul.f32 %v10830_v26, %v10830_v26  ;;  %v5169_v36 = vpop.xlane.xlu1 %5168  ;;  %v11887_v61 = vld [vmem:[#allocation40_spill] sm:$0xff] }
 0x39e   : > { %11882 = vst [vmem:[#allocation45_spill] sm:$0xff] %v10834_v8  ;;  %6887 = vst [vmem:[%s9873_s21 + $0x150] sm:$0xff] %v7531_v19  ;;  %v5335_v15 = vadd.f32 %v5019_v51, %v5018_v10  ;;  %v5024_v57 = vmul.f32 %v10834_v8, %v10834_v8  ;;  %v10845_v4 = vadd.f32 %v8958_v3, %v10518_v54  ;;  %v5375_v38 = vmul.f32 0.001953125, %v5154_v25  ;;  %v11885_v10 = vld [vmem:[#allocation39_spill] sm:$0xff]  ;;  %v11889_v54 = vld [vmem:[#allocation70_spill] sm:$0xff] }
 0x39f   : > { %v8381_v50 = vpop.eup %8380  ;;  %6888 = vst [vmem:[%s9873_s21 + $0x158] sm:$0xff] %v7532_v32  ;;  %5323 = vadd.xlane.f32.xlu0 %v5322_v44  ;;  %5328 = vadd.xlane.f32.xlu1 %v5327_v14  ;;  %v10850_v60 = vadd.f32 %v8954_v0, %v11884_v30  ;;  %v10854_v45 = vadd.f32 %v8946_v62, %v11885_v10  ;;  %v11890_v19 = vld [vmem:[#allocation72_spill] sm:$0xff]  ;;  %v11892_v32 = vld [vmem:[#allocation74_spill] sm:$0xff]  ;;  %v5174_v44 = vpop.xlane.xlu0 %5173  ;;  %v5376_v8 = vmul.f32 0.001953125, %v5159_v56 }
 0x3a0   : > { %11883 = vst [vmem:[#allocation46_spill] sm:$0xff] %v10845_v4  ;;  %v10858_v31 = vadd.f32 %v8950_v63, %v11887_v61  ;;  %v5631_v53 = vmul.f32 %v8381_v50, %v11889_v54  ;;  %v5632_v51 = vmul.f32 %v8381_v50, %v11890_v19  ;;  %v5633_v24 = vmul.f32 %v8381_v50, %v11891_v9 }
 0x3a1   : > { %11886 = vst [vmem:[#allocation48_spill] sm:$0xff] %v10854_v45  ;;  %v5634_v25 = vmul.f32 %v8381_v50, %v11892_v32  ;;  %v5025_v14 = vmul.f32 %v10845_v4, %v10845_v4  ;;  %v5439_v30 = vadd.f32 1e-06, %v5375_v38  ;;  %v5023_v62 = vmul.f32 %v10850_v60, %v10850_v60  ;;  %v5179_v19 = vpop.xlane.xlu1 %5178  ;;  %v11893_v32 = vld [vmem:[#allocation42_spill] sm:$0xff] }
 0x3a2   : > { %11888 = vst [vmem:[#allocation47_spill] sm:$0xff] %v10858_v31  ;;  %v5026_v63 = vmul.f32 %v10854_v45, %v10854_v45  ;;  %v5909_v10 = vmul.f32 %v9758_v52, %v5631_v53  ;;  %v5910_v61 = vmul.f32 %v9766_v29, %v5632_v51  ;;  %v5911_v54 = vmul.f32 %v9770_v58, %v5633_v24 }
 0x3a3   : > { %v5912_v50 = vmul.f32 %v9774_v2, %v5634_v25  ;;  %8384 = vrsqrt.f32 %v5439_v30  ;;  %v5340_v9 = vadd.f32 %v5023_v62, %v5022_v16  ;;  %v5028_v38 = vmul.f32 %v10858_v31, %v10858_v31  ;;  %v5184_v24 = vpop.xlane.xlu0 %5183 }
 0x3a4   : > { %v10878_v4 = vadd.f32 %v8958_v3, %v11893_v32  ;;  %v7533_v45 = vpack.c.bf16 %v5910_v61, %v5909_v10  ;;  %v10882_v51 = vadd.f32 %v8954_v0, %v10550_v20  ;;  %v5331_v16 = vadd.f32 %v10798_v28, %v10758_v18  ;;  %v11895_v18 = vld [vmem:[#allocation73_spill] sm:$0xff] }
 0x3a5   : > { %v7534_v53 = vpack.c.bf16 %v5912_v50, %v5911_v54  ;;  %v5336_v30 = vadd.f32 %v5335_v15, %v10794_v37  ;;  %v5377_v62 = vmul.f32 0.001953125, %v5164_v6  ;;  %v5440_v3 = vadd.f32 1e-06, %v5376_v8  ;;  %v5189_v0 = vpop.xlane.xlu1 %5188  ;;  %v11896_v37 = vld [vmem:[#allocation76_spill] sm:$0xff]  ;;  %v11897_v15 = vld [vmem:[#allocation75_spill] sm:$0xff]  ;;  %v11898_v8 = vld [vmem:[#allocation77_spill] sm:$0xff] }
 0x3a6   : > { %11894 = vst [vmem:[#allocation50_spill] sm:$0xff] %v10878_v4  ;;  %v5029_v25 = vmul.f32 %v10878_v4, %v10878_v4  ;;  %6889 = vst [vmem:[%s9873_s21 + $0x160] sm:$0xff] %v7533_v45  ;;  %v5027_v56 = vmul.f32 %v10882_v51, %v10882_v51  ;;  %v5378_v10 = vmul.f32 0.001953125, %v5169_v36  ;;  %v5341_v61 = vadd.f32 %v5340_v9, %v5024_v57 }
 0x3a7   : > { %6890 = vst [vmem:[%s9873_s21 + $0x168] sm:$0xff] %v7534_v53  ;;  %v8383_v20 = vpop.eup %8382  ;;  %v5332_v54 = vadd.f32 %v5331_v16, %v10762_v23  ;;  %v5337_v50 = vadd.f32 %v5336_v30, %v10810_v55  ;;  %v5441_v32 = vadd.f32 1e-06, %v5377_v62  ;;  %v5379_v4 = vmul.f32 0.001953125, %v5174_v44  ;;  %v5194_v31 = vpop.xlane.xlu0 %5193 }
 0x3a8   : > { %v5635_v28 = vmul.f32 %v8383_v20, %v11895_v18  ;;  %v5636_v6 = vmul.f32 %v8383_v20, %v11896_v37  ;;  %v5637_v45 = vmul.f32 %v8383_v20, %v11897_v15  ;;  %v5638_v53 = vmul.f32 %v8383_v20, %v11898_v8 }
 0x3a9   : > { %8386 = vrsqrt.f32 %v5440_v3  ;;  %v5345_v36 = vadd.f32 %v5027_v56, %v5026_v63  ;;  %5333 = vadd.xlane.f32.xlu0 %v5332_v54  ;;  %5338 = vadd.xlane.f32.xlu1 %v5337_v50  ;;  %v5442_v57 = vadd.f32 1e-06, %v5378_v10  ;;  %v5342_v9 = vadd.f32 %v5341_v61, %v5025_v14  ;;  %v5199_v30 = vpop.xlane.xlu1 %5198 }
 0x3aa   : > { %v5913_v23 = vmul.f32 %v9758_v52, %v5635_v28  ;;  %v5914_v55 = vmul.f32 %v9766_v29, %v5636_v6  ;;  %v5915_v44 = vmul.f32 %v9770_v58, %v5637_v45  ;;  %v5916_v16 = vmul.f32 %v9774_v2, %v5638_v53  ;;  %v11899_v28 = vld [vmem:[#allocation78_spill] sm:$0xff] }
 0x3ab   : > { %8388 = vrsqrt.f32 %v5441_v32  ;;  %v5346_v62 = vadd.f32 %v5345_v36, %v5028_v38  ;;  %v5443_v20 = vadd.f32 1e-06, %v5379_v4  ;;  %v5380_v3 = vmul.f32 0.001953125, %v5179_v19  ;;  %v5204_v14 = vpop.xlane.xlu0 %5203  ;;  %v11900_v32 = vld [vmem:[#allocation80_spill] sm:$0xff]  ;;  %v11901_v38 = vld [vmem:[#allocation79_spill] sm:$0xff]  ;;  %v11902_v19 = vld [vmem:[#allocation82_spill] sm:$0xff] }
 0x3ac   : > { %v7535_v63 = vpack.c.bf16 %v5914_v55, %v5913_v23  ;;  %v7536_v56 = vpack.c.bf16 %v5916_v16, %v5915_v44  ;;  %8390 = vrsqrt.f32 %v5442_v57  ;;  %v5381_v10 = vmul.f32 0.001953125, %v5184_v24 }
 0x3ad   : > { %v8385_v61 = vpop.eup %8384  ;;  %5343 = vadd.xlane.f32.xlu0 %v5342_v9  ;;  %v5347_v54 = vadd.f32 %v5346_v62, %v5029_v25  ;;  %8392 = vrsqrt.f32 %v5443_v20  ;;  %v5444_v50 = vadd.f32 1e-06, %v5380_v3  ;;  %v5382_v18 = vmul.f32 0.001953125, %v5189_v0  ;;  %v5209_v45 = vpop.xlane.xlu1 %5208 }
 0x3ae   : > { %6891 = vst [vmem:[%s9873_s21 + $0x170] sm:$0xff] %v7535_v63  ;;  %6892 = vst [vmem:[%s9873_s21 + $0x178] sm:$0xff] %v7536_v56  ;;  %v5639_v37 = vmul.f32 %v8385_v61, %v11899_v28  ;;  %v5640_v6 = vmul.f32 %v8385_v61, %v11900_v32  ;;  %v5641_v4 = vmul.f32 %v8385_v61, %v11901_v38  ;;  %v5445_v24 = vadd.f32 1e-06, %v5381_v10  ;;  %v11905_v28 = vld [vmem:[#allocation83_spill] sm:$0xff] }
 0x3af   : > { %v5642_v15 = vmul.f32 %v8385_v61, %v11902_v19  ;;  %5348 = vadd.xlane.f32.xlu1 %v5347_v54  ;;  %8394 = vrsqrt.f32 %v5444_v50  ;;  %v5446_v8 = vadd.f32 1e-06, %v5382_v18  ;;  %v5383_v53 = vmul.f32 0.001953125, %v5194_v31  ;;  %v5214_v9 = vpop.xlane.xlu0 %5213  ;;  %v11903_v61 = vld [vmem:[#allocation81_spill] sm:$0xff]  ;;  %v11904_v50 = vld [vmem:[#allocation84_spill] sm:$0xff] }
 0x3b0   : > { %v5917_v25 = vmul.f32 %v9758_v52, %v5639_v37  ;;  %v5918_v0 = vmul.f32 %v9766_v29, %v5640_v6  ;;  %v5919_v36 = vmul.f32 %v9770_v58, %v5641_v4  ;;  %8396 = vrsqrt.f32 %v5445_v24 }
 0x3b1   : > { %v5920_v57 = vmul.f32 %v9774_v2, %v5642_v15  ;;  %v5447_v23 = vadd.f32 1e-06, %v5383_v53  ;;  %v5384_v55 = vmul.f32 0.001953125, %v5199_v30  ;;  %v5385_v44 = vmul.f32 0.001953125, %v5204_v14  ;;  %v5219_v31 = vpop.xlane.xlu1 %5218  ;;  %v11906_v14 = vld [vmem:[#allocation85_spill] sm:$0xff] }
 0x3b2   : > { %v7537_v16 = vpack.c.bf16 %v5918_v0, %v5917_v25  ;;  %8398 = vrsqrt.f32 %v5446_v8  ;;  %v5386_v20 = vmul.f32 0.001953125, %v5209_v45  ;;  %v5387_v10 = vmul.f32 0.001953125, %v5214_v9  ;;  %v11907_v25 = vld [vmem:[#allocation86_spill] sm:$0xff]  ;;  %v11909_v9 = vld [vmem:[#allocation87_spill] sm:$0xff] }
 0x3b3   : > { %v7538_v62 = vpack.c.bf16 %v5920_v57, %v5919_v36  ;;  %v8387_v3 = vpop.eup %8386  ;;  %8400 = vrsqrt.f32 %v5447_v23  ;;  %v5448_v63 = vadd.f32 1e-06, %v5384_v55  ;;  %v10913_v56 = vadd.f32 1e-06, %v5385_v44  ;;  %v11908_v36 = vld [vmem:[#allocation88_spill] sm:$0xff]  ;;  %v11910_v55 = vld [vmem:[#allocation90_spill] sm:$0xff] }
 0x3b4   : > { %6893 = vst [vmem:[%s9873_s21 + $0x180] sm:$0xff] %v7537_v16  ;;  %v5643_v54 = vmul.f32 %v8387_v3, %v11903_v61  ;;  %v5644_v18 = vmul.f32 %v8387_v3, %v11904_v50  ;;  %v5645_v30 = vmul.f32 %v8387_v3, %v11905_v28  ;;  %v5646_v37 = vmul.f32 %v8387_v3, %v11906_v14  ;;  %v11912_v3 = vld [vmem:[#allocation92_spill] sm:$0xff]  ;;  %v11913_v28 = vld [vmem:[#allocation91_spill] sm:$0xff]  ;;  %v11914_v14 = vld [vmem:[#allocation93_spill] sm:$0xff] }
 0x3b5   : > { %6894 = vst [vmem:[%s9873_s21 + $0x188] sm:$0xff] %v7538_v62  ;;  %v8389_v32 = vpop.eup %8388  ;;  %8402 = vrsqrt.f32 %v5448_v63  ;;  %v10921_v6 = vadd.f32 1e-06, %v5386_v20  ;;  %v10923_v38 = vadd.f32 1e-06, %v5387_v10  ;;  %v10925_v4 = vmul.f32 0.001953125, %v5219_v31 }
 0x3b6   : > { %v8391_v19 = vpop.eup %8390  ;;  %v5921_v15 = vmul.f32 %v9758_v52, %v5643_v54  ;;  %v5922_v45 = vmul.f32 %v9766_v29, %v5644_v18  ;;  %v5923_v24 = vmul.f32 %v9770_v58, %v5645_v30  ;;  %v5924_v8 = vmul.f32 %v9774_v2, %v5646_v37  ;;  %v11911_v20 = vld [vmem:[#allocation89_spill] sm:$0xff] }
 0x3b7   : > { %v8393_v53 = vpop.eup %8392  ;;  %v5647_v0 = vmul.f32 %v8389_v32, %v11907_v25  ;;  %v5648_v57 = vmul.f32 %v8389_v32, %v11908_v36  ;;  %v5649_v23 = vmul.f32 %v8389_v32, %v11909_v9  ;;  %v5650_v44 = vmul.f32 %v8389_v32, %v11910_v55  ;;  %v11915_v25 = vld [vmem:[#allocation94_spill] sm:$0xff]  ;;  %v11916_v36 = vld [vmem:[#allocation96_spill] sm:$0xff] }
 0x3b8   : > { %v7539_v16 = vpack.c.bf16 %v5922_v45, %v5921_v15  ;;  %v7540_v62 = vpack.c.bf16 %v5924_v8, %v5923_v24  ;;  %v5651_v31 = vmul.f32 %v8391_v19, %v11911_v20  ;;  %v5652_v63 = vmul.f32 %v8391_v19, %v11912_v3  ;;  %v11918_v20 = vld [vmem:[#allocation98_spill] sm:$0xff] }
 0x3b9   : > { %v8395_v10 = vpop.eup %8394  ;;  %v5925_v61 = vmul.f32 %v9758_v52, %v5647_v0  ;;  %v5926_v54 = vmul.f32 %v9766_v29, %v5648_v57  ;;  %v5927_v50 = vmul.f32 %v9770_v58, %v5649_v23  ;;  %v5928_v18 = vmul.f32 %v9774_v2, %v5650_v44 }
 0x3ba   : > { %6895 = vst [vmem:[%s9873_s21 + $0x190] sm:$0xff] %v7539_v16  ;;  %6896 = vst [vmem:[%s9873_s21 + $0x198] sm:$0xff] %v7540_v62  ;;  %v5653_v30 = vmul.f32 %v8391_v19, %v11913_v28  ;;  %v5654_v37 = vmul.f32 %v8391_v19, %v11914_v14  ;;  %v5929_v32 = vmul.f32 %v9758_v52, %v5651_v31  ;;  %v8397_v45 = vpop.eup %8396  ;;  %v11917_v16 = vld [vmem:[#allocation95_spill] sm:$0xff]  ;;  %v11920_v28 = vld [vmem:[#allocation100_spill] sm:$0xff]  ;;  %8404 = vrsqrt.f32 %v10913_v56 }
 0x3bb   : > { %v5930_v15 = vmul.f32 %v9766_v29, %v5652_v63  ;;  %v7541_v24 = vpack.c.bf16 %v5926_v54, %v5925_v61  ;;  %v7542_v8 = vpack.c.bf16 %v5928_v18, %v5927_v50  ;;  %v5655_v0 = vmul.f32 %v8393_v53, %v11915_v25  ;;  %v11919_v61 = vld [vmem:[#allocation97_spill] sm:$0xff]  ;;  %v11921_v14 = vld [vmem:[#allocation99_spill] sm:$0xff] }
 0x3bc   : > { %v5656_v57 = vmul.f32 %v8393_v53, %v11916_v36  ;;  %v8399_v9 = vpop.eup %8398  ;;  %v5931_v23 = vmul.f32 %v9770_v58, %v5653_v30  ;;  %v5932_v55 = vmul.f32 %v9774_v2, %v5654_v37  ;;  %v5657_v19 = vmul.f32 %v8393_v53, %v11917_v16 }
 0x3bd   : > { %v7543_v44 = vpack.c.bf16 %v5930_v15, %v5929_v32  ;;  %v8401_v62 = vpop.eup %8400  ;;  %6897 = vst [vmem:[%s9873_s21 + $0x1a0] sm:$0xff] %v7541_v24  ;;  %6898 = vst [vmem:[%s9873_s21 + $0x1a8] sm:$0xff] %v7542_v8  ;;  %v5658_v31 = vmul.f32 %v8393_v53, %v11918_v20  ;;  %v5933_v3 = vmul.f32 %v9758_v52, %v5655_v0  ;;  %v11922_v53 = vld [vmem:[#allocation101_spill] sm:$0xff]  ;;  %v11925_v20 = vld [vmem:[#allocation103_spill] sm:$0xff]  ;;  %8406 = vrsqrt.f32 %v10921_v6 }
 0x3be   : > { %v5934_v63 = vmul.f32 %v9766_v29, %v5656_v57  ;;  %v5659_v54 = vmul.f32 %v8395_v10, %v11919_v61  ;;  %v7544_v50 = vpack.c.bf16 %v5932_v55, %v5931_v23  ;;  %v5935_v18 = vmul.f32 %v9770_v58, %v5657_v19  ;;  %v11923_v57 = vld [vmem:[#allocation102_spill] sm:$0xff]  ;;  %v11924_v55 = vld [vmem:[#allocation104_spill] sm:$0xff] }
 0x3bf   : > { %6899 = vst [vmem:[%s9873_s21 + $0x1b0] sm:$0xff] %v7543_v44  ;;  %v5660_v30 = vmul.f32 %v8395_v10, %v11920_v28  ;;  %v5661_v37 = vmul.f32 %v8395_v10, %v11921_v14  ;;  %v8403_v32 = vpop.eup %8402  ;;  %v5936_v15 = vmul.f32 %v9774_v2, %v5658_v31  ;;  %v5662_v8 = vmul.f32 %v8395_v10, %v11922_v53  ;;  %v11926_v10 = vld [vmem:[#allocation106_spill] sm:$0xff]  ;;  %v5229_v53 = vpop.xlane.xlu1 %5228 }
 0x3c0   : > { %v7545_v24 = vpack.c.bf16 %v5934_v63, %v5933_v3  ;;  %v5937_v25 = vmul.f32 %v9758_v52, %v5659_v54  ;;  %6900 = vst [vmem:[%s9873_s21 + $0x1b8] sm:$0xff] %v7544_v50  ;;  %v5663_v23 = vmul.f32 %v8397_v45, %v11923_v57  ;;  %v5664_v44 = vmul.f32 %v8397_v45, %v11924_v55  ;;  %v11927_v50 = vld [vmem:[#allocation105_spill] sm:$0xff] }
 0x3c1   : > { %v5938_v0 = vmul.f32 %v9766_v29, %v5660_v30  ;;  %v5939_v36 = vmul.f32 %v9770_v58, %v5661_v37  ;;  %v7546_v16 = vpack.c.bf16 %v5936_v15, %v5935_v18  ;;  %v5940_v19 = vmul.f32 %v9774_v2, %v5662_v8  ;;  %v11928_v37 = vld [vmem:[#allocation108_spill] sm:$0xff]  ;;  %v11929_v8 = vld [vmem:[#allocation107_spill] sm:$0xff] }
 0x3c2   : > { %6901 = vst [vmem:[%s9873_s21 + $0x1c0] sm:$0xff] %v7545_v24  ;;  %v5665_v31 = vmul.f32 %v8397_v45, %v11925_v20  ;;  %v5666_v3 = vmul.f32 %v8397_v45, %v11926_v10  ;;  %v5941_v61 = vmul.f32 %v9758_v52, %v5663_v23  ;;  %v5942_v54 = vmul.f32 %v9766_v29, %v5664_v44  ;;  %v5224_v24 = vpop.xlane.xlu0 %5223  ;;  %v11931_v44 = vld [vmem:[#allocation110_spill] sm:$0xff] }
 0x3c3   : > { %v7547_v63 = vpack.c.bf16 %v5938_v0, %v5937_v25  ;;  %v5667_v28 = vmul.f32 %v8399_v9, %v11927_v50  ;;  %6902 = vst [vmem:[%s9873_s21 + $0x1c8] sm:$0xff] %v7546_v16  ;;  %v7548_v30 = vpack.c.bf16 %v5940_v19, %v5939_v36  ;;  %v5668_v15 = vmul.f32 %v8399_v9, %v11928_v37  ;;  %v11930_v0 = vld [vmem:[#allocation109_spill] sm:$0xff]  ;;  %v11932_v19 = vld [vmem:[#allocation112_spill] sm:$0xff]  ;;  %v5239_v37 = vpop.xlane.xlu1 %5238 }
 0x3c4   : > { %v5943_v18 = vmul.f32 %v9770_v58, %v5665_v31  ;;  %v5944_v14 = vmul.f32 %v9774_v2, %v5666_v3  ;;  %v7549_v45 = vpack.c.bf16 %v5942_v54, %v5941_v61  ;;  %v5669_v25 = vmul.f32 %v8399_v9, %v11929_v8  ;;  %v11933_v3 = vld [vmem:[#allocation111_spill] sm:$0xff]  ;;  %v11934_v61 = vld [vmem:[#allocation114_spill] sm:$0xff] }
 0x3c5   : > { %6903 = vst [vmem:[%s9873_s21 + $0x1d0] sm:$0xff] %v7547_v63  ;;  %v5670_v57 = vmul.f32 %v8399_v9, %v11930_v0  ;;  %v5945_v23 = vmul.f32 %v9758_v52, %v5667_v28  ;;  %6904 = vst [vmem:[%s9873_s21 + $0x1d8] sm:$0xff] %v7548_v30  ;;  %v5946_v55 = vmul.f32 %v9766_v29, %v5668_v15  ;;  %v11935_v30 = vld [vmem:[#allocation113_spill] sm:$0xff]  ;;  %8408 = vrsqrt.f32 %v10923_v38  ;;  %v8405_v38 = vpop.eup %8404 }
 0x3c6   : > { %v7550_v36 = vpack.c.bf16 %v5944_v14, %v5943_v18  ;;  %v5671_v16 = vmul.f32 %v8401_v62, %v11931_v44  ;;  %v5672_v20 = vmul.f32 %v8401_v62, %v11932_v19  ;;  %6905 = vst [vmem:[%s9873_s21 + $0x1e0] sm:$0xff] %v7549_v45  ;;  %v5947_v31 = vmul.f32 %v9770_v58, %v5669_v25  ;;  %v5234_v14 = vpop.xlane.xlu0 %5233  ;;  %v11936_v25 = vld [vmem:[#allocation116_spill] sm:$0xff] }
 0x3c7   : > { %v5948_v10 = vmul.f32 %v9774_v2, %v5670_v57  ;;  %v5673_v63 = vmul.f32 %v8401_v62, %v11933_v3  ;;  %v5674_v9 = vmul.f32 %v8401_v62, %v11934_v61  ;;  %v7551_v54 = vpack.c.bf16 %v5946_v55, %v5945_v23  ;;  %v11937_v57 = vld [vmem:[#allocation115_spill] sm:$0xff] }
 0x3c8   : > { %6906 = vst [vmem:[%s9873_s21 + $0x1e8] sm:$0xff] %v7550_v36  ;;  %v5949_v50 = vmul.f32 %v9758_v52, %v5671_v16  ;;  %v5950_v28 = vmul.f32 %v9766_v29, %v5672_v20  ;;  %v5675_v18 = vmul.f32 %v8403_v32, %v11935_v30  ;;  %v5676_v0 = vmul.f32 %v8403_v32, %v11936_v25  ;;  %v11938_v36 = vld [vmem:[#allocation117_spill] sm:$0xff] }
 0x3c9   : > { %v7552_v15 = vpack.c.bf16 %v5948_v10, %v5947_v31  ;;  %v5951_v45 = vmul.f32 %v9770_v58, %v5673_v63  ;;  %v5952_v8 = vmul.f32 %v9774_v2, %v5674_v9  ;;  %6907 = vst [vmem:[%s9873_s21 + $0x1f0] sm:$0xff] %v7551_v54  ;;  %v5677_v23 = vmul.f32 %v8403_v32, %v11937_v57  ;;  %v5249_v63 = vpop.xlane.xlu1 %5248  ;;  %v11942_v57 = vld [vmem:[#allocation122_spill] sm:$0xff] }
 0x3ca   : > { %v7553_v62 = vpack.c.bf16 %v5950_v28, %v5949_v50  ;;  %v5678_v55 = vmul.f32 %v8403_v32, %v11938_v36  ;;  %v5953_v44 = vmul.f32 %v9758_v52, %v5675_v18  ;;  %v5954_v19 = vmul.f32 %v9766_v29, %v5676_v0  ;;  %v5244_v32 = vpop.xlane.xlu0 %5243  ;;  %v11941_v0 = vld [vmem:[#allocation119_spill] sm:$0xff] }
 0x3cb   : > { %6908 = vst [vmem:[%s9873_s21 + $0x1f8] sm:$0xff] %v7552_v15  ;;  %v7554_v16 = vpack.c.bf16 %v5952_v8, %v5951_v45  ;;  %v5452_v20 = vadd.f32 1e-06, %v10925_v4  ;;  %v5955_v31 = vmul.f32 %v9770_v58, %v5677_v23  ;;  %v5389_v3 = vmul.f32 0.001953125, %v5224_v24 }
 0x3cc   : > { %6909 = vst [vmem:[%s9873_s21 + $0x200] sm:$0xff] %v7553_v62  ;;  %v5956_v10 = vmul.f32 %v9774_v2, %v5678_v55  ;;  %v7555_v61 = vpack.c.bf16 %v5954_v19, %v5953_v44  ;;  %v5390_v9 = vmul.f32 0.001953125, %v5229_v53  ;;  %v5391_v56 = vmul.f32 0.001953125, %v5234_v14  ;;  %v8407_v53 = vpop.eup %8406  ;;  %v11939_v14 = vld [vmem:[#allocation118_spill] sm:$0xff]  ;;  %v11943_v55 = vld [vmem:[#allocation121_spill] sm:$0xff] }
 0x3cd   : > { %6910 = vst [vmem:[%s9873_s21 + $0x208] sm:$0xff] %v7554_v16  ;;  %8410 = vrsqrt.f32 %v5452_v20  ;;  %v5453_v4 = vadd.f32 1e-06, %v5389_v3  ;;  %v5392_v50 = vmul.f32 0.001953125, %v5239_v37  ;;  %v5393_v18 = vmul.f32 0.001953125, %v5244_v32  ;;  %v11940_v37 = vld [vmem:[#allocation120_spill] sm:$0xff] }
 0x3ce   : > { %v7556_v54 = vpack.c.bf16 %v5956_v10, %v5955_v31  ;;  %6911 = vst [vmem:[%s9873_s21 + $0x210] sm:$0xff] %v7555_v61  ;;  %v5454_v28 = vadd.f32 1e-06, %v5390_v9  ;;  %v5455_v30 = vadd.f32 1e-06, %v5391_v56  ;;  %v5394_v15 = vmul.f32 0.001953125, %v5249_v63 }
 0x3cf   : > { %8412 = vrsqrt.f32 %v5453_v4  ;;  %v5456_v6 = vadd.f32 1e-06, %v5392_v50  ;;  %v5457_v24 = vadd.f32 1e-06, %v5393_v18  ;;  %v5679_v8 = vmul.f32 %v8405_v38, %v11939_v14  ;;  %v8409_v36 = vpop.eup %8408  ;;  %v11944_v16 = vld [vmem:[#allocation124_spill] sm:$0xff]  ;;  %v11945_v20 = vld [vmem:[#allocation123_spill] sm:$0xff] }
 0x3d0   : > { %6912 = vst [vmem:[%s9873_s21 + $0x218] sm:$0xff] %v7556_v54  ;;  %8414 = vrsqrt.f32 %v5454_v28  ;;  %v5458_v45 = vadd.f32 1e-06, %v5394_v15  ;;  %v5680_v25 = vmul.f32 %v8405_v38, %v11940_v37  ;;  %v5681_v62 = vmul.f32 %v8405_v38, %v11941_v0  ;;  %v11946_v10 = vld [vmem:[#allocation125_spill] sm:$0xff]  ;;  %v11949_v37 = vld [vmem:[#allocation127_spill] sm:$0xff]  ;;  %v11950_v0 = vld [vmem:[#allocation130_spill] sm:$0xff] }
 0x3d1   : > { %8416 = vrsqrt.f32 %v5455_v30  ;;  %v5682_v23 = vmul.f32 %v8405_v38, %v11942_v57  ;;  %v5683_v44 = vmul.f32 %v8407_v53, %v11943_v55  ;;  %v5684_v19 = vmul.f32 %v8407_v53, %v11944_v16 }
 0x3d2   : > { %8418 = vrsqrt.f32 %v5456_v6  ;;  %v5685_v31 = vmul.f32 %v8407_v53, %v11945_v20  ;;  %v5686_v3 = vmul.f32 %v8407_v53, %v11946_v10  ;;  %v5957_v63 = vmul.f32 %v9758_v52, %v5679_v8  ;;  %v11947_v6 = vld [vmem:[#allocation126_spill] sm:$0xff] }
 0x3d3   : > { %8420 = vrsqrt.f32 %v5457_v24  ;;  %v5958_v61 = vmul.f32 %v9766_v29, %v5680_v25  ;;  %v5959_v9 = vmul.f32 %v9770_v58, %v5681_v62  ;;  %v5960_v56 = vmul.f32 %v9774_v2, %v5682_v23 }
 0x3d4   : > { %8422 = vrsqrt.f32 %v5458_v45  ;;  %v5961_v54 = vmul.f32 %v9758_v52, %v5683_v44  ;;  %v5962_v4 = vmul.f32 %v9766_v29, %v5684_v19  ;;  %v5963_v50 = vmul.f32 %v9770_v58, %v5685_v31  ;;  %v11948_v45 = vld [vmem:[#allocation128_spill] sm:$0xff]  ;;  %v11951_v44 = vld [vmem:[#allocation129_spill] sm:$0xff] }
 0x3d5   : > { %v5964_v28 = vmul.f32 %v9774_v2, %v5686_v3  ;;  %v7557_v18 = vpack.c.bf16 %v5958_v61, %v5957_v63  ;;  %v7558_v15 = vpack.c.bf16 %v5960_v56, %v5959_v9  ;;  %v5687_v24 = vmul.f32 %v8409_v36, %v11947_v6  ;;  %v11952_v19 = vld [vmem:[#allocation132_spill] sm:$0xff]  ;;  %v11954_v61 = vld [vmem:[#allocation133_spill] sm:$0xff] }
 0x3d6   : > { %v5688_v38 = vmul.f32 %v8409_v36, %v11948_v45  ;;  %v7559_v14 = vpack.c.bf16 %v5962_v4, %v5961_v54  ;;  %v5689_v25 = vmul.f32 %v8409_v36, %v11949_v37  ;;  %v5690_v62 = vmul.f32 %v8409_v36, %v11950_v0  ;;  %v11953_v36 = vld [vmem:[#allocation131_spill] sm:$0xff] }
 0x3d7   : > { %v8411_v32 = vpop.eup %8410  ;;  %v7560_v8 = vpack.c.bf16 %v5964_v28, %v5963_v50  ;;  %6913 = vst [vmem:[%s9873_s21 + $0x220] sm:$0xff] %v7557_v18  ;;  %6914 = vst [vmem:[%s9873_s21 + $0x228] sm:$0xff] %v7558_v15  ;;  %v5965_v23 = vmul.f32 %v9758_v52, %v5687_v24  ;;  %v11955_v28 = vld [vmem:[#allocation134_spill] sm:$0xff] }
 0x3d8   : > { %v5966_v55 = vmul.f32 %v9766_v29, %v5688_v38  ;;  %v5691_v16 = vmul.f32 %v8411_v32, %v11951_v44  ;;  %v5692_v20 = vmul.f32 %v8411_v32, %v11952_v19  ;;  %6915 = vst [vmem:[%s9873_s21 + $0x230] sm:$0xff] %v7559_v14  ;;  %v5967_v10 = vmul.f32 %v9770_v58, %v5689_v25  ;;  %v11956_v38 = vld [vmem:[#allocation136_spill] sm:$0xff]  ;;  %v11958_v25 = vld [vmem:[#allocation138_spill] sm:$0xff]  ;;  %v11959_v44 = vld [vmem:[#allocation137_spill] sm:$0xff] }
 0x3d9   : > { %v8413_v30 = vpop.eup %8412  ;;  %6916 = vst [vmem:[%s9873_s21 + $0x238] sm:$0xff] %v7560_v8  ;;  %v5968_v3 = vmul.f32 %v9774_v2, %v5690_v62  ;;  %v5693_v63 = vmul.f32 %v8411_v32, %v11953_v36  ;;  %v5694_v9 = vmul.f32 %v8411_v32, %v11954_v61  ;;  %v11957_v8 = vld [vmem:[#allocation135_spill] sm:$0xff]  ;;  %v11961_v36 = vld [vmem:[#allocation140_spill] sm:$0xff]  ;;  %v11962_v61 = vld [vmem:[#allocation142_spill] sm:$0xff] }
 0x3da   : > { %v8415_v53 = vpop.eup %8414  ;;  %v7561_v54 = vpack.c.bf16 %v5966_v55, %v5965_v23  ;;  %v5969_v4 = vmul.f32 %v9758_v52, %v5691_v16  ;;  %v5970_v50 = vmul.f32 %v9766_v29, %v5692_v20  ;;  %v5695_v18 = vmul.f32 %v8413_v30, %v11955_v28  ;;  %v11960_v19 = vld [vmem:[#allocation139_spill] sm:$0xff] }
 0x3db   : > { %v8417_v57 = vpop.eup %8416  ;;  %v7562_v6 = vpack.c.bf16 %v5968_v3, %v5967_v10  ;;  %v5971_v24 = vmul.f32 %v9770_v58, %v5693_v63  ;;  %v5972_v45 = vmul.f32 %v9774_v2, %v5694_v9  ;;  %v5696_v32 = vmul.f32 %v8413_v30, %v11956_v38 }
 0x3dc   : > { %v8419_v31 = vpop.eup %8418  ;;  %6917 = vst [vmem:[%s9873_s21 + $0x240] sm:$0xff] %v7561_v54  ;;  %v7563_v14 = vpack.c.bf16 %v5970_v50, %v5969_v4  ;;  %v5697_v37 = vmul.f32 %v8413_v30, %v11957_v8  ;;  %v5698_v0 = vmul.f32 %v8413_v30, %v11958_v25  ;;  %v5973_v62 = vmul.f32 %v9758_v52, %v5695_v18  ;;  %v11963_v50 = vld [vmem:[#allocation141_spill] sm:$0xff]  ;;  %v11966_v8 = vld [vmem:[#allocation144_spill] sm:$0xff] }
 0x3dd   : > { %v11049_v56 = vpop.eup %8420  ;;  %6918 = vst [vmem:[%s9873_s21 + $0x248] sm:$0xff] %v7562_v6  ;;  %v7564_v23 = vpack.c.bf16 %v5972_v45, %v5971_v24  ;;  %v5974_v55 = vmul.f32 %v9766_v29, %v5696_v32  ;;  %v5699_v16 = vmul.f32 %v8415_v53, %v11959_v44  ;;  %v5700_v20 = vmul.f32 %v8415_v53, %v11960_v19  ;;  %v11964_v45 = vld [vmem:[#allocation145_spill] sm:$0xff] }
 0x3de   : > { %v11054_v15 = vpop.eup %8422  ;;  %6919 = vst [vmem:[%s9873_s21 + $0x250] sm:$0xff] %v7563_v14  ;;  %v5975_v10 = vmul.f32 %v9770_v58, %v5697_v37  ;;  %v5976_v3 = vmul.f32 %v9774_v2, %v5698_v0  ;;  %v5701_v63 = vmul.f32 %v8415_v53, %v11961_v36  ;;  %v5702_v30 = vmul.f32 %v8415_v53, %v11962_v61  ;;  %v11965_v14 = vld [vmem:[#allocation143_spill] sm:$0xff]  ;;  %v11968_v44 = vld [vmem:[#allocation149_spill] sm:$0xff]  ;;  %v11970_v36 = vld [vmem:[#allocation148_spill] sm:$0xff]  ;;  %v5259_v61 = vpop.xlane.xlu1 %5258 }
 0x3df   : > { %6920 = vst [vmem:[%s9873_s21 + $0x258] sm:$0xff] %v7564_v23  ;;  %v7565_v9 = vpack.c.bf16 %v5974_v55, %v5973_v62  ;;  %v5977_v54 = vmul.f32 %v9758_v52, %v5699_v16  ;;  %v5978_v4 = vmul.f32 %v9766_v29, %v5700_v20  ;;  %v5703_v28 = vmul.f32 %v8417_v57, %v11963_v50  ;;  %v11967_v23 = vld [vmem:[#allocation146_spill] sm:$0xff] }
 0x3e0   : > { %v7566_v18 = vpack.c.bf16 %v5976_v3, %v5975_v10  ;;  %v5979_v6 = vmul.f32 %v9770_v58, %v5701_v63  ;;  %v5980_v24 = vmul.f32 %v9774_v2, %v5702_v30  ;;  %v5704_v38 = vmul.f32 %v8417_v57, %v11964_v45  ;;  %v11969_v10 = vld [vmem:[#allocation147_spill] sm:$0xff]  ;;  %v5254_v63 = vpop.xlane.xlu0 %5253 }
 0x3e1   : > { %6921 = vst [vmem:[%s9873_s21 + $0x260] sm:$0xff] %v7565_v9  ;;  %v7567_v32 = vpack.c.bf16 %v5978_v4, %v5977_v54  ;;  %v5705_v53 = vmul.f32 %v8417_v57, %v11965_v14  ;;  %v5706_v37 = vmul.f32 %v8417_v57, %v11966_v8  ;;  %v5981_v25 = vmul.f32 %v9758_v52, %v5703_v28  ;;  %v11971_v4 = vld [vmem:[#allocation150_spill] sm:$0xff]  ;;  %v11974_v14 = vld [vmem:[#allocation152_spill] sm:$0xff] }
 0x3e2   : > { %6922 = vst [vmem:[%s9873_s21 + $0x268] sm:$0xff] %v7566_v18  ;;  %v7568_v0 = vpack.c.bf16 %v5980_v24, %v5979_v6  ;;  %v5982_v62 = vmul.f32 %v9766_v29, %v5704_v38  ;;  %v5707_v55 = vmul.f32 %v8419_v31, %v11967_v23  ;;  %v5708_v16 = vmul.f32 %v8419_v31, %v11968_v44  ;;  %v11972_v24 = vld [vmem:[#allocation153_spill] sm:$0xff]  ;;  %v11973_v38 = vld [vmem:[#allocation151_spill] sm:$0xff] }
 0x3e3   : > { %6923 = vst [vmem:[%s9873_s21 + $0x270] sm:$0xff] %v7567_v32  ;;  %v5983_v19 = vmul.f32 %v9770_v58, %v5705_v53  ;;  %v5984_v20 = vmul.f32 %v9774_v2, %v5706_v37  ;;  %v5709_v3 = vmul.f32 %v8419_v31, %v11969_v10  ;;  %v5710_v57 = vmul.f32 %v8419_v31, %v11970_v36  ;;  %v11976_v23 = vld [vmem:[#allocation157_spill] sm:$0xff] }
 0x3e4   : > { %6924 = vst [vmem:[%s9873_s21 + $0x278] sm:$0xff] %v7568_v0  ;;  %v7569_v30 = vpack.c.bf16 %v5982_v62, %v5981_v25  ;;  %v5985_v9 = vmul.f32 %v9758_v52, %v5707_v55  ;;  %v5986_v54 = vmul.f32 %v9766_v29, %v5708_v16  ;;  %v5711_v50 = vmul.f32 %v11049_v56, %v11971_v4  ;;  %v11975_v0 = vld [vmem:[#allocation154_spill] sm:$0xff]  ;;  %v5264_v44 = vpop.xlane.xlu0 %5263  ;;  %v5269_v16 = vpop.xlane.xlu1 %5268 }
 0x3e5   : > { %v7570_v28 = vpack.c.bf16 %v5984_v20, %v5983_v19  ;;  %v5987_v18 = vmul.f32 %v9770_v58, %v5709_v3  ;;  %v5988_v6 = vmul.f32 %v9774_v2, %v5710_v57  ;;  %v5712_v31 = vmul.f32 %v11049_v56, %v11972_v24  ;;  %v11977_v20 = vld [vmem:[#allocation155_spill] sm:$0xff]  ;;  %v11978_v3 = vld [vmem:[#allocation156_spill] sm:$0xff] }
 0x3e6   : > { %6925 = vst [vmem:[%s9873_s21 + $0x280] sm:$0xff] %v7569_v30  ;;  %v7571_v45 = vpack.c.bf16 %v5986_v54, %v5985_v9  ;;  %v5713_v32 = vmul.f32 %v11049_v56, %v11973_v38  ;;  %v5714_v53 = vmul.f32 %v11049_v56, %v11974_v14  ;;  %v5989_v8 = vmul.f32 %v9758_v52, %v5711_v50 }
 0x3e7   : > { %6926 = vst [vmem:[%s9873_s21 + $0x288] sm:$0xff] %v7570_v28  ;;  %v7572_v37 = vpack.c.bf16 %v5988_v6, %v5987_v18  ;;  %v5990_v25 = vmul.f32 %v9766_v29, %v5712_v31  ;;  %v5715_v62 = vmul.f32 %v11054_v15, %v11975_v0  ;;  %v5716_v55 = vmul.f32 %v11054_v15, %v11976_v23  ;;  %v11979_v23 = vld [vmem:[#allocation158_spill] sm:$0xff] }
 0x3e8   : > { %6927 = vst [vmem:[%s9873_s21 + $0x290] sm:$0xff] %v7571_v45  ;;  %v5991_v19 = vmul.f32 %v9770_v58, %v5713_v32  ;;  %v5992_v56 = vmul.f32 %v9774_v2, %v5714_v53  ;;  %v5717_v10 = vmul.f32 %v11054_v15, %v11977_v20  ;;  %v5718_v36 = vmul.f32 %v11054_v15, %v11978_v3  ;;  %v11982_v20 = vld [vmem:[#allocation160_spill] sm:$0xff] }
 0x3e9   : > { %6928 = vst [vmem:[%s9873_s21 + $0x298] sm:$0xff] %v7572_v37  ;;  %v7573_v57 = vpack.c.bf16 %v5990_v25, %v5989_v8  ;;  %v5993_v30 = vmul.f32 %v9758_v52, %v5715_v62  ;;  %v5994_v9 = vmul.f32 %v9766_v29, %v5716_v55  ;;  %v5395_v54 = vmul.f32 0.001953125, %v5254_v63 }
 0x3ea   : > { %v7574_v4 = vpack.c.bf16 %v5992_v56, %v5991_v19  ;;  %v5995_v50 = vmul.f32 %v9770_v58, %v5717_v10  ;;  %v5996_v28 = vmul.f32 %v9774_v2, %v5718_v36  ;;  %v5396_v18 = vmul.f32 0.001953125, %v5259_v61  ;;  %v11981_v19 = vld [vmem:[#allocation159_spill] sm:$0xff]  ;;  %v11983_v36 = vld [vmem:[#allocation162_spill] sm:$0xff] }
 0x3eb   : > { %6929 = vst [vmem:[%s9873_s21 + $0x2a0] sm:$0xff] %v7573_v57  ;;  %v7575_v6 = vpack.c.bf16 %v5994_v9, %v5993_v30  ;;  %v5459_v24 = vadd.f32 1e-06, %v5395_v54  ;;  %v5397_v15 = vmul.f32 0.001953125, %v5264_v44  ;;  %v5398_v31 = vmul.f32 0.001953125, %v5269_v16  ;;  %v11980_v44 = vld [vmem:[#allocation161_spill] sm:$0xff] }
 0x3ec   : > { %v5274_v45 = vpop.xlane.xlu0 %5273  ;;  %v5279_v38 = vpop.xlane.xlu1 %5278  ;;  %6930 = vst [vmem:[%s9873_s21 + $0x2a8] sm:$0xff] %v7574_v4  ;;  %v7576_v32 = vpack.c.bf16 %v5996_v28, %v5995_v50  ;;  %v5460_v14 = vadd.f32 1e-06, %v5396_v18  ;;  %v11984_v30 = vld [vmem:[#allocation165_spill] sm:$0xff]  ;;  %v11985_v54 = vld [vmem:[#allocation163_spill] sm:$0xff]  ;;  %v11986_v50 = vld [vmem:[#allocation164_spill] sm:$0xff] }
 0x3ed   : > { %v5399_v53 = vmul.f32 0.001953125, %v5274_v45  ;;  %6931 = vst [vmem:[%s9873_s21 + $0x2b0] sm:$0xff] %v7575_v6  ;;  %8424 = vrsqrt.f32 %v5459_v24  ;;  %v5461_v63 = vadd.f32 1e-06, %v5397_v15  ;;  %v5462_v8 = vadd.f32 1e-06, %v5398_v31 }
 0x3ee   : > { %6932 = vst [vmem:[%s9873_s21 + $0x2b8] sm:$0xff] %v7576_v32  ;;  %8426 = vrsqrt.f32 %v5460_v14  ;;  %v5400_v37 = vmul.f32 0.001953125, %v5279_v38 }
 0x3ef   : > { %8428 = vrsqrt.f32 %v5461_v63  ;;  %v5463_v61 = vadd.f32 1e-06, %v5399_v53 }
 0x3f0   : > { %8430 = vrsqrt.f32 %v5462_v8  ;;  %v5464_v25 = vadd.f32 1e-06, %v5400_v37  ;;  %v11987_v8 = vld [vmem:[#allocation166_spill] sm:$0xff] }
 0x3f1   : > { %8432 = vrsqrt.f32 %v5463_v61  ;;  %v11988_v61 = vld [vmem:[#allocation169_spill] sm:$0xff] }
 0x3f2   : > { %8434 = vrsqrt.f32 %v5464_v25 }
 0x3f7   : > { %v8425_v0 = vpop.eup %8424 }
 0x3f8   : > { %v8427_v62 = vpop.eup %8426  ;;  %v5719_v55 = vmul.f32 %v8425_v0, %v11979_v23  ;;  %v5720_v16 = vmul.f32 %v8425_v0, %v11980_v44  ;;  %v5721_v56 = vmul.f32 %v8425_v0, %v11981_v19  ;;  %v5722_v10 = vmul.f32 %v8425_v0, %v11982_v20 }
 0x3f9   : > { %v8429_v3 = vpop.eup %8428  ;;  %v5723_v57 = vmul.f32 %v8427_v62, %v11983_v36  ;;  %v5724_v9 = vmul.f32 %v8427_v62, %v11984_v30  ;;  %v5725_v4 = vmul.f32 %v8427_v62, %v11985_v54  ;;  %v5726_v28 = vmul.f32 %v8427_v62, %v11986_v50 }
 0x3fa   : > { %v5997_v18 = vmul.f32 %v9758_v52, %v5719_v55  ;;  %v5998_v6 = vmul.f32 %v9766_v29, %v5720_v16  ;;  %v5999_v24 = vmul.f32 %v9770_v58, %v5721_v56  ;;  %v6000_v15 = vmul.f32 %v9774_v2, %v5722_v10  ;;  %v8431_v31 = vpop.eup %8430  ;;  %v11989_v55 = vld [vmem:[#allocation167_spill] sm:$0xff]  ;;  %v11990_v16 = vld [vmem:[#allocation168_spill] sm:$0xff]  ;;  %v11991_v10 = vld [vmem:[#allocation170_spill] sm:$0xff] }
 0x3fb   : > { %v6001_v45 = vmul.f32 %v9758_v52, %v5723_v57  ;;  %v6002_v38 = vmul.f32 %v9766_v29, %v5724_v9  ;;  %v6003_v32 = vmul.f32 %v9770_v58, %v5725_v4  ;;  %v6004_v14 = vmul.f32 %v9774_v2, %v5726_v28  ;;  %v8433_v0 = vpop.eup %8432  ;;  %v11992_v57 = vld [vmem:[#allocation173_spill] sm:$0xff]  ;;  %v11993_v4 = vld [vmem:[#allocation171_spill] sm:$0xff] }
 0x3fc   : > { %v7577_v53 = vpack.c.bf16 %v5998_v6, %v5997_v18  ;;  %v7578_v63 = vpack.c.bf16 %v6000_v15, %v5999_v24  ;;  %v5727_v37 = vmul.f32 %v8429_v3, %v11987_v8  ;;  %v5728_v25 = vmul.f32 %v8429_v3, %v11988_v61  ;;  %v8435_v18 = vpop.eup %8434  ;;  %v5289_v61 = vpop.xlane.xlu1 %5288 }
 0x3fd   : > { %v7579_v62 = vpack.c.bf16 %v6002_v38, %v6001_v45  ;;  %v7580_v23 = vpack.c.bf16 %v6004_v14, %v6003_v32  ;;  %v5729_v44 = vmul.f32 %v8429_v3, %v11989_v55  ;;  %v5730_v19 = vmul.f32 %v8429_v3, %v11990_v16  ;;  %v11994_v3 = vld [vmem:[#allocation172_spill] sm:$0xff]  ;;  %v11995_v45 = vld [vmem:[#allocation174_spill] sm:$0xff] }
 0x3fe   : > { %6933 = vst [vmem:[%s9873_s21 + $0x2c0] sm:$0xff] %v7577_v53  ;;  %6934 = vst [vmem:[%s9873_s21 + $0x2c8] sm:$0xff] %v7578_v63  ;;  %v6005_v56 = vmul.f32 %v9758_v52, %v5727_v37  ;;  %v6006_v20 = vmul.f32 %v9766_v29, %v5728_v25  ;;  %v5731_v36 = vmul.f32 %v8431_v31, %v11991_v10  ;;  %v11996_v63 = vld [vmem:[#allocation12_spill] sm:$0xff]  ;;  %v5284_v37 = vpop.xlane.xlu0 %5283  ;;  %v11997_v25 = vld [vmem:[#allocation175_spill] sm:$0xff] }
 0x3ff   : > { %v5732_v30 = vmul.f32 %v8431_v31, %v11992_v57  ;;  %6935 = vst [vmem:[%s9873_s21 + $0x2d0] sm:$0xff] %v7579_v62  ;;  %6936 = vst [vmem:[%s9873_s21 + $0x2d8] sm:$0xff] %v7580_v23  ;;  %v6007_v9 = vmul.f32 %v9770_v58, %v5729_v44  ;;  %v6008_v54 = vmul.f32 %v9774_v2, %v5730_v19  ;;  %v11998_v23 = vld [vmem:[#allocation176_spill] sm:$0xff] }
 0x400   : > { %v5733_v50 = vmul.f32 %v8431_v31, %v11993_v4  ;;  %v5734_v28 = vmul.f32 %v8431_v31, %v11994_v3  ;;  %v7581_v6 = vpack.c.bf16 %v6006_v20, %v6005_v56  ;;  %v6009_v24 = vmul.f32 %v9758_v52, %v5731_v36  ;;  %v11999_v56 = vld [vmem:[#allocation13_spill] sm:$0xff]  ;;  %v12000_v10 = vld [vmem:[#allocation16_spill] sm:$0xff]  ;;  %v12002_v4 = vld [vmem:[#allocation14_spill] sm:$0xff] }
 0x401   : > { %v6010_v15 = vmul.f32 %v9766_v29, %v5732_v30  ;;  %v5735_v38 = vmul.f32 %v8433_v0, %v11995_v45  ;;  %v7582_v32 = vpack.c.bf16 %v6008_v54, %v6007_v9  ;;  %v5736_v8 = vmul.f32 %v8433_v0, %v11996_v63  ;;  %v12001_v9 = vld [vmem:[#allocation177_spill] sm:$0xff] }
 0x402   : > { %v6011_v14 = vmul.f32 %v9770_v58, %v5733_v50  ;;  %v6012_v53 = vmul.f32 %v9774_v2, %v5734_v28  ;;  %6937 = vst [vmem:[%s9873_s21 + $0x2e0] sm:$0xff] %v7581_v6  ;;  %v5737_v62 = vmul.f32 %v8433_v0, %v11997_v25  ;;  %v5738_v55 = vmul.f32 %v8433_v0, %v11998_v23 }
 0x403   : > { %v7583_v31 = vpack.c.bf16 %v6010_v15, %v6009_v24  ;;  %v6013_v44 = vmul.f32 %v9758_v52, %v5735_v38  ;;  %6938 = vst [vmem:[%s9873_s21 + $0x2e8] sm:$0xff] %v7582_v32  ;;  %v6014_v19 = vmul.f32 %v9766_v29, %v5736_v8  ;;  %v5739_v20 = vmul.f32 %v8435_v18, %v11999_v56 }
 0x404   : > { %v7584_v16 = vpack.c.bf16 %v6012_v53, %v6011_v14  ;;  %v5740_v36 = vmul.f32 %v8435_v18, %v12000_v10  ;;  %v6015_v57 = vmul.f32 %v9770_v58, %v5737_v62  ;;  %v6016_v30 = vmul.f32 %v9774_v2, %v5738_v55  ;;  %v12003_v10 = vld [vmem:[#allocation15_spill] sm:$0xff] }
 0x405   : > { %6939 = vst [vmem:[%s9873_s21 + $0x2f0] sm:$0xff] %v7583_v31  ;;  %v5741_v54 = vmul.f32 %v8435_v18, %v12001_v9  ;;  %v5742_v0 = vmul.f32 %v8435_v18, %v12002_v4  ;;  %v7585_v50 = vpack.c.bf16 %v6014_v19, %v6013_v44  ;;  %v6017_v3 = vmul.f32 %v9758_v52, %v5739_v20  ;;  %v12005_v9 = vld [vmem:[#allocation18_spill] sm:$0xff]  ;;  %v12006_v4 = vld [vmem:[#allocation17_spill] sm:$0xff] }
 0x406   : > { %6940 = vst [vmem:[%s9873_s21 + $0x2f8] sm:$0xff] %v7584_v16  ;;  %v6018_v28 = vmul.f32 %v9766_v29, %v5740_v36  ;;  %v5401_v6 = vmul.f32 0.001953125, %v5284_v37  ;;  %v7586_v45 = vpack.c.bf16 %v6016_v30, %v6015_v57  ;;  %v5402_v14 = vmul.f32 0.001953125, %v5289_v61  ;;  %v12004_v57 = vld [vmem:[#allocation20_spill] sm:$0xff] }
 0x407   : > { %v5294_v24 = vpop.xlane.xlu0 %5293  ;;  %v5299_v15 = vpop.xlane.xlu1 %5298  ;;  %v6019_v38 = vmul.f32 %v9770_v58, %v5741_v54  ;;  %v6020_v32 = vmul.f32 %v9774_v2, %v5742_v0  ;;  %6941 = vst [vmem:[%s9873_s21 + $0x300] sm:$0xff] %v7585_v50 }
 0x408   : > { %v7587_v18 = vpack.c.bf16 %v6018_v28, %v6017_v3  ;;  %v5465_v53 = vadd.f32 1e-06, %v5401_v6  ;;  %v5403_v63 = vmul.f32 0.001953125, %v5294_v24  ;;  %v5404_v8 = vmul.f32 0.001953125, %v5299_v15  ;;  %6942 = vst [vmem:[%s9873_s21 + $0x308] sm:$0xff] %v7586_v45  ;;  %v12007_v3 = vld [vmem:[#allocation19_spill] sm:$0xff] }
 0x409   : > { %v7588_v31 = vpack.c.bf16 %v6020_v32, %v6019_v38  ;;  %v5466_v25 = vadd.f32 1e-06, %v5402_v14  ;;  %v12008_v6 = vld [vmem:[#allocation24_spill] sm:$0xff]  ;;  %v12009_v15 = vld [vmem:[#allocation21_spill] sm:$0xff]  ;;  %v12010_v38 = vld [vmem:[#allocation22_spill] sm:$0xff] }
 0x40a   : > { %6943 = vst [vmem:[%s9873_s21 + $0x310] sm:$0xff] %v7587_v18  ;;  %8436 = vrsqrt.f32 %v5465_v53  ;;  %v5467_v37 = vadd.f32 1e-06, %v5403_v63  ;;  %v5468_v62 = vadd.f32 1e-06, %v5404_v8 }
 0x40b   : > { %6944 = vst [vmem:[%s9873_s21 + $0x318] sm:$0xff] %v7588_v31  ;;  %8438 = vrsqrt.f32 %v5466_v25 }
 0x40c   : > { %8440 = vrsqrt.f32 %v5467_v37 }
 0x40d   : > { %8442 = vrsqrt.f32 %v5468_v62 }
 0x411   : > { %v5304_v23 = vpop.xlane.xlu0 %5303  ;;  %v5309_v55 = vpop.xlane.xlu1 %5308 }
 0x412   : > { %v5405_v44 = vmul.f32 0.001953125, %v5304_v23  ;;  %v5406_v61 = vmul.f32 0.001953125, %v5309_v55 }
 0x414   : > { %v8437_v16 = vpop.eup %8436  ;;  %v5469_v19 = vadd.f32 1e-06, %v5405_v44  ;;  %v5470_v56 = vadd.f32 1e-06, %v5406_v61  ;;  %v12011_v44 = vld [vmem:[#allocation23_spill] sm:$0xff] }
 0x415   : > { %v8439_v20 = vpop.eup %8438  ;;  %v5743_v36 = vmul.f32 %v8437_v16, %v12003_v10  ;;  %v5744_v30 = vmul.f32 %v8437_v16, %v12004_v57  ;;  %v5745_v54 = vmul.f32 %v8437_v16, %v12005_v9  ;;  %v5746_v0 = vmul.f32 %v8437_v16, %v12006_v4  ;;  %v12012_v16 = vld [vmem:[#allocation25_spill] sm:$0xff]  ;;  %v12013_v57 = vld [vmem:[#allocation26_spill] sm:$0xff] }
 0x416   : > { %v8441_v50 = vpop.eup %8440  ;;  %v5747_v28 = vmul.f32 %v8439_v20, %v12007_v3  ;;  %v5748_v24 = vmul.f32 %v8439_v20, %v12008_v6  ;;  %v5749_v45 = vmul.f32 %v8439_v20, %v12009_v15  ;;  %v5750_v32 = vmul.f32 %v8439_v20, %v12010_v38  ;;  %v12014_v9 = vld [vmem:[#allocation178_spill] sm:$0xff]  ;;  %v12015_v3 = vld [vmem:[#allocation28_spill] sm:$0xff]  ;;  %v12017_v38 = vld [vmem:[#allocation27_spill] sm:$0xff] }
 0x417   : > { %v6021_v14 = vmul.f32 %v9758_v52, %v5743_v36  ;;  %v6022_v18 = vmul.f32 %v9766_v29, %v5744_v30  ;;  %v6023_v53 = vmul.f32 %v9770_v58, %v5745_v54  ;;  %v6024_v63 = vmul.f32 %v9774_v2, %v5746_v0  ;;  %v8443_v8 = vpop.eup %8442  ;;  %v12016_v6 = vld [vmem:[#allocation30_spill] sm:$0xff] }
 0x418   : > { %v6025_v31 = vmul.f32 %v9758_v52, %v5747_v28  ;;  %v6026_v25 = vmul.f32 %v9766_v29, %v5748_v24  ;;  %v6027_v37 = vmul.f32 %v9770_v58, %v5749_v45  ;;  %v6028_v62 = vmul.f32 %v9774_v2, %v5750_v32 }
 0x419   : > { %v7589_v23 = vpack.c.bf16 %v6022_v18, %v6021_v14  ;;  %v7590_v55 = vpack.c.bf16 %v6024_v63, %v6023_v53  ;;  %v5751_v61 = vmul.f32 %v8441_v50, %v12011_v44  ;;  %v5752_v20 = vmul.f32 %v8441_v50, %v12012_v16 }
 0x41a   : > { %v7591_v10 = vpack.c.bf16 %v6026_v25, %v6025_v31  ;;  %v7592_v36 = vpack.c.bf16 %v6028_v62, %v6027_v37  ;;  %v5753_v30 = vmul.f32 %v8441_v50, %v12013_v57  ;;  %v5754_v54 = vmul.f32 %v8441_v50, %v12014_v9  ;;  %v12018_v50 = vld [vmem:[#allocation29_spill] sm:$0xff] }
 0x41b   : > { %6945 = vst [vmem:[%s9873_s21 + $0x320] sm:$0xff] %v7589_v23  ;;  %6946 = vst [vmem:[%s9873_s21 + $0x328] sm:$0xff] %v7590_v55  ;;  %v6029_v4 = vmul.f32 %v9758_v52, %v5751_v61  ;;  %v6030_v0 = vmul.f32 %v9766_v29, %v5752_v20  ;;  %v5755_v28 = vmul.f32 %v8443_v8, %v12015_v3  ;;  %8444 = vrsqrt.f32 %v5469_v19  ;;  %v12023_v3 = vld [vmem:[#allocation36_spill] sm:$0xff] }
 0x41c   : > { %v5756_v24 = vmul.f32 %v8443_v8, %v12016_v6  ;;  %6947 = vst [vmem:[%s9873_s21 + $0x330] sm:$0xff] %v7591_v10  ;;  %6948 = vst [vmem:[%s9873_s21 + $0x338] sm:$0xff] %v7592_v36  ;;  %v6031_v15 = vmul.f32 %v9770_v58, %v5753_v30  ;;  %v6032_v45 = vmul.f32 %v9774_v2, %v5754_v54  ;;  %8446 = vrsqrt.f32 %v5470_v56  ;;  %v12019_v36 = vld [vmem:[#allocation31_spill] sm:$0xff]  ;;  %v12020_v30 = vld [vmem:[#allocation33_spill] sm:$0xff] }
 0x41d   : > { %v5757_v32 = vmul.f32 %v8443_v8, %v12017_v38  ;;  %v5758_v14 = vmul.f32 %v8443_v8, %v12018_v50  ;;  %v5314_v18 = vpop.xlane.xlu0 %5313  ;;  %v5319_v53 = vpop.xlane.xlu1 %5318  ;;  %v7593_v63 = vpack.c.bf16 %v6030_v0, %v6029_v4  ;;  %v6033_v31 = vmul.f32 %v9758_v52, %v5755_v28  ;;  %v12021_v54 = vld [vmem:[#allocation34_spill] sm:$0xff]  ;;  %v12022_v4 = vld [vmem:[#allocation180_spill] sm:$0xff] }
 0x41e   : > { %v6034_v25 = vmul.f32 %v9766_v29, %v5756_v24  ;;  %v7594_v37 = vpack.c.bf16 %v6032_v45, %v6031_v15  ;;  %v5407_v44 = vmul.f32 0.001953125, %v5314_v18  ;;  %v5408_v8 = vmul.f32 0.001953125, %v5319_v53  ;;  %v12024_v24 = vld [vmem:[#allocation35_spill] sm:$0xff] }
 0x41f   : > { %v6035_v62 = vmul.f32 %v9770_v58, %v5757_v32  ;;  %v6036_v23 = vmul.f32 %v9774_v2, %v5758_v14  ;;  %6949 = vst [vmem:[%s9873_s21 + $0x340] sm:$0xff] %v7593_v63 }
 0x420   : > { %v7595_v55 = vpack.c.bf16 %v6034_v25, %v6033_v31  ;;  %6950 = vst [vmem:[%s9873_s21 + $0x348] sm:$0xff] %v7594_v37  ;;  %v5471_v16 = vadd.f32 1e-06, %v5407_v44  ;;  %v5472_v20 = vadd.f32 1e-06, %v5408_v8 }
 0x421   : > { %v7596_v61 = vpack.c.bf16 %v6036_v23, %v6035_v62 }
 0x422   : > { %6951 = vst [vmem:[%s9873_s21 + $0x350] sm:$0xff] %v7595_v55  ;;  %8448 = vrsqrt.f32 %v5471_v16 }
 0x423   : > { %6952 = vst [vmem:[%s9873_s21 + $0x358] sm:$0xff] %v7596_v61  ;;  %8450 = vrsqrt.f32 %v5472_v20 }
 0x425   : > { %v8445_v10 = vpop.eup %8444 }
 0x426   : > { %v8447_v19 = vpop.eup %8446  ;;  %v5759_v57 = vmul.f32 %v8445_v10, %v12019_v36  ;;  %v5760_v9 = vmul.f32 %v8445_v10, %v12020_v30  ;;  %v5761_v56 = vmul.f32 %v8445_v10, %v12021_v54  ;;  %v5762_v0 = vmul.f32 %v8445_v10, %v12022_v4 }
 0x427   : > { %v5763_v28 = vmul.f32 %v8447_v19, %v12023_v3  ;;  %v5764_v6 = vmul.f32 %v8447_v19, %v10566_v39  ;;  %v5765_v15 = vmul.f32 %v8447_v19, %v12024_v24  ;;  %v5766_v45 = vmul.f32 %v8447_v19, %v10548_v7 }
 0x428   : > { %v6037_v38 = vmul.f32 %v9758_v52, %v5759_v57  ;;  %v6038_v32 = vmul.f32 %v9766_v29, %v5760_v9  ;;  %v6039_v50 = vmul.f32 %v9770_v58, %v5761_v56  ;;  %v6040_v14 = vmul.f32 %v9774_v2, %v5762_v0 }
 0x429   : > { %v6041_v63 = vmul.f32 %v9758_v52, %v5763_v28  ;;  %v6042_v39 = vmul.f32 %v9766_v29, %v5764_v6  ;;  %v6043_v31 = vmul.f32 %v9770_v58, %v5765_v15  ;;  %v6044_v7 = vmul.f32 %v9774_v2, %v5766_v45 }
 0x42a   : > { %v7597_v25 = vpack.c.bf16 %v6038_v32, %v6037_v38  ;;  %v7598_v37 = vpack.c.bf16 %v6040_v14, %v6039_v50 }
 0x42b   : > { %v7599_v23 = vpack.c.bf16 %v6042_v39, %v6041_v63  ;;  %v7600_v55 = vpack.c.bf16 %v6044_v7, %v6043_v31 }
 0x42c   : > { %v5324_v18 = vpop.xlane.xlu0 %5323  ;;  %v5329_v53 = vpop.xlane.xlu1 %5328  ;;  %6953 = vst [vmem:[%s9873_s21 + $0x360] sm:$0xff] %v7597_v25  ;;  %6954 = vst [vmem:[%s9873_s21 + $0x368] sm:$0xff] %v7598_v37 }
 0x42d   : > { %v8449_v62 = vpop.eup %8448  ;;  %v5409_v44 = vmul.f32 0.001953125, %v5324_v18  ;;  %v5410_v8 = vmul.f32 0.001953125, %v5329_v53  ;;  %6955 = vst [vmem:[%s9873_s21 + $0x370] sm:$0xff] %v7599_v23  ;;  %6956 = vst [vmem:[%s9873_s21 + $0x378] sm:$0xff] %v7600_v55 }
 0x42e   : > { %v8451_v61 = vpop.eup %8450  ;;  %v5767_v16 = vmul.f32 %v8449_v62, %v10578_v12  ;;  %v5768_v20 = vmul.f32 %v8449_v62, %v10600_v17  ;;  %v5769_v10 = vmul.f32 %v8449_v62, %v10582_v35  ;;  %v5770_v19 = vmul.f32 %v8449_v62, %v10595_v59 }
 0x42f   : > { %v5771_v36 = vmul.f32 %v8451_v61, %v10604_v42  ;;  %v5772_v57 = vmul.f32 %v8451_v61, %v10638_v1  ;;  %v5773_v30 = vmul.f32 %v8451_v61, %v10608_v40  ;;  %v5774_v9 = vmul.f32 %v8451_v61, %v10634_v22 }
 0x430   : > { %v6045_v12 = vmul.f32 %v9758_v52, %v5767_v16  ;;  %v6046_v17 = vmul.f32 %v9766_v29, %v5768_v20  ;;  %v6047_v35 = vmul.f32 %v9770_v58, %v5769_v10  ;;  %v6048_v59 = vmul.f32 %v9774_v2, %v5770_v19 }
 0x431   : > { %v6049_v54 = vmul.f32 %v9758_v52, %v5771_v36  ;;  %v6050_v42 = vmul.f32 %v9766_v29, %v5772_v57  ;;  %v6051_v40 = vmul.f32 %v9770_v58, %v5773_v30  ;;  %v6052_v1 = vmul.f32 %v9774_v2, %v5774_v9 }
 0x432   : > { %v7601_v22 = vpack.c.bf16 %v6046_v17, %v6045_v12  ;;  %v7602_v56 = vpack.c.bf16 %v6048_v59, %v6047_v35  ;;  %v5473_v4 = vadd.f32 1e-06, %v5409_v44  ;;  %v5474_v0 = vadd.f32 1e-06, %v5410_v8  ;;  %v12025_v17 = vld [vmem:[#allocation41_spill] sm:$0xff]  ;;  %v12026_v59 = vld [vmem:[#allocation44_spill] sm:$0xff] }
 0x433   : > { %v7603_v3 = vpack.c.bf16 %v6050_v42, %v6049_v54  ;;  %v7604_v28 = vpack.c.bf16 %v6052_v1, %v6051_v40 }
 0x434   : > { %6957 = vst [vmem:[%s9873_s21 + $0x380] sm:$0xff] %v7601_v22  ;;  %6958 = vst [vmem:[%s9873_s21 + $0x388] sm:$0xff] %v7602_v56  ;;  %8452 = vrsqrt.f32 %v5473_v4  ;;  %v12027_v22 = vld [vmem:[#allocation43_spill] sm:$0xff] }
 0x435   : > { %6959 = vst [vmem:[%s9873_s21 + $0x390] sm:$0xff] %v7603_v3  ;;  %6960 = vst [vmem:[%s9873_s21 + $0x398] sm:$0xff] %v7604_v28  ;;  %8454 = vrsqrt.f32 %v5474_v0 }
 0x436   : > { %v5334_v6 = vpop.xlane.xlu0 %5333  ;;  %v5339_v24 = vpop.xlane.xlu1 %5338 }
 0x437   : > { %v5411_v15 = vmul.f32 0.001953125, %v5334_v6  ;;  %v5412_v45 = vmul.f32 0.001953125, %v5339_v24 }
 0x439   : > { %v5475_v38 = vadd.f32 1e-06, %v5411_v15  ;;  %v5476_v32 = vadd.f32 1e-06, %v5412_v45 }
 0x43a   : > { %v5344_v50 = vpop.xlane.xlu0 %5343 }
 0x43b   : > { %8456 = vrsqrt.f32 %v5475_v38  ;;  %v5413_v14 = vmul.f32 0.001953125, %v5344_v50  ;;  %v12028_v38 = vld [vmem:[#allocation45_spill] sm:$0xff] }
 0x43c   : > { %8458 = vrsqrt.f32 %v5476_v32  ;;  %v5349_v18 = vpop.xlane.xlu1 %5348 }
 0x43d   : > { %v5477_v53 = vadd.f32 1e-06, %v5413_v14  ;;  %v5414_v63 = vmul.f32 0.001953125, %v5349_v18  ;;  %v12029_v14 = vld [vmem:[#allocation46_spill] sm:$0xff] }
 0x43e   : > { %v8453_v39 = vpop.eup %8452 }
 0x43f   : > { %8460 = vrsqrt.f32 %v5477_v53  ;;  %v5478_v31 = vadd.f32 1e-06, %v5414_v63  ;;  %v8455_v7 = vpop.eup %8454  ;;  %v5775_v25 = vmul.f32 %v8453_v39, %v10649_v5  ;;  %v5776_v37 = vmul.f32 %v8453_v39, %v10685_v48 }
 0x440   : > { %v5777_v62 = vmul.f32 %v8453_v39, %v10657_v34  ;;  %v5778_v23 = vmul.f32 %v8453_v39, %v10661_v13  ;;  %v5779_v55 = vmul.f32 %v8455_v7, %v10689_v21  ;;  %v5780_v44 = vmul.f32 %v8455_v7, %v10721_v11 }
 0x441   : > { %v5781_v8 = vmul.f32 %v8455_v7, %v10693_v46  ;;  %v5782_v61 = vmul.f32 %v8455_v7, %v10697_v27  ;;  %v6053_v16 = vmul.f32 %v9758_v52, %v5775_v25  ;;  %v6054_v20 = vmul.f32 %v9766_v29, %v5776_v37  ;;  %v12030_v25 = vld [vmem:[#allocation48_spill] sm:$0xff] }
 0x442   : > { %v6055_v5 = vmul.f32 %v9770_v58, %v5777_v62  ;;  %v6056_v34 = vmul.f32 %v9774_v2, %v5778_v23  ;;  %v6057_v13 = vmul.f32 %v9758_v52, %v5779_v55  ;;  %v6058_v48 = vmul.f32 %v9766_v29, %v5780_v44  ;;  %v12031_v23 = vld [vmem:[#allocation47_spill] sm:$0xff]  ;;  %v12032_v44 = vld [vmem:[#allocation50_spill] sm:$0xff] }
 0x443   : > { %v6059_v21 = vmul.f32 %v9770_v58, %v5781_v8  ;;  %v6060_v46 = vmul.f32 %v9774_v2, %v5782_v61  ;;  %v7605_v11 = vpack.c.bf16 %v6054_v20, %v6053_v16  ;;  %8462 = vrsqrt.f32 %v5478_v31 }
 0x444   : > { %v7606_v10 = vpack.c.bf16 %v6056_v34, %v6055_v5  ;;  %v7607_v36 = vpack.c.bf16 %v6058_v48, %v6057_v13 }
 0x445   : > { %v8457_v27 = vpop.eup %8456  ;;  %v7608_v57 = vpack.c.bf16 %v6060_v46, %v6059_v21  ;;  %6961 = vst [vmem:[%s9873_s21 + $0x3a0] sm:$0xff] %v7605_v11 }
 0x446   : > { %v8459_v19 = vpop.eup %8458  ;;  %v5783_v30 = vmul.f32 %v8457_v27, %v10734_v41  ;;  %v5784_v9 = vmul.f32 %v8457_v27, %v10770_v33  ;;  %6962 = vst [vmem:[%s9873_s21 + $0x3a8] sm:$0xff] %v7606_v10  ;;  %v5785_v12 = vmul.f32 %v8457_v27, %v10738_v49  ;;  %v5786_v35 = vmul.f32 %v8457_v27, %v12025_v17 }
 0x447   : > { %v5787_v54 = vmul.f32 %v8459_v19, %v12026_v59  ;;  %v5788_v42 = vmul.f32 %v8459_v19, %v10818_v43  ;;  %6963 = vst [vmem:[%s9873_s21 + $0x3b0] sm:$0xff] %v7607_v36  ;;  %6964 = vst [vmem:[%s9873_s21 + $0x3b8] sm:$0xff] %v7608_v57  ;;  %v5789_v41 = vmul.f32 %v8459_v19, %v12027_v22 }
 0x448   : > { %v6061_v40 = vmul.f32 %v9758_v52, %v5783_v30  ;;  %v6062_v1 = vmul.f32 %v9766_v29, %v5784_v9  ;;  %v5790_v33 = vmul.f32 %v8459_v19, %v10802_v47  ;;  %v6063_v49 = vmul.f32 %v9770_v58, %v5785_v12 }
 0x449   : > { %v8461_v56 = vpop.eup %8460  ;;  %v6064_v4 = vmul.f32 %v9774_v2, %v5786_v35  ;;  %v6065_v43 = vmul.f32 %v9758_v52, %v5787_v54  ;;  %v6066_v0 = vmul.f32 %v9766_v29, %v5788_v42  ;;  %v6067_v28 = vmul.f32 %v9770_v58, %v5789_v41 }
 0x44a   : > { %v7609_v3 = vpack.c.bf16 %v6062_v1, %v6061_v40  ;;  %v6068_v6 = vmul.f32 %v9774_v2, %v5790_v33  ;;  %v5791_v24 = vmul.f32 %v8461_v56, %v10830_v26  ;;  %v5792_v45 = vmul.f32 %v8461_v56, %v10850_v60 }
 0x44b   : > { %v7610_v47 = vpack.c.bf16 %v6064_v4, %v6063_v49  ;;  %v7611_v15 = vpack.c.bf16 %v6066_v0, %v6065_v43  ;;  %v5793_v32 = vmul.f32 %v8461_v56, %v12028_v38  ;;  %v5794_v18 = vmul.f32 %v8461_v56, %v12029_v14 }
 0x44c   : > { %6965 = vst [vmem:[%s9873_s21 + $0x3c0] sm:$0xff] %v7609_v3  ;;  %v7612_v50 = vpack.c.bf16 %v6068_v6, %v6067_v28  ;;  %v6069_v53 = vmul.f32 %v9758_v52, %v5791_v24  ;;  %v6070_v26 = vmul.f32 %v9766_v29, %v5792_v45 }
 0x44d   : > { %6966 = vst [vmem:[%s9873_s21 + $0x3c8] sm:$0xff] %v7610_v47  ;;  %6967 = vst [vmem:[%s9873_s21 + $0x3d0] sm:$0xff] %v7611_v15  ;;  %v6071_v63 = vmul.f32 %v9770_v58, %v5793_v32  ;;  %v6072_v60 = vmul.f32 %v9774_v2, %v5794_v18  ;;  %v8463_v39 = vpop.eup %8462 }
 0x44e   : > { %6968 = vst [vmem:[%s9873_s21 + $0x3d8] sm:$0xff] %v7612_v50  ;;  %v7613_v31 = vpack.c.bf16 %v6070_v26, %v6069_v53  ;;  %v5795_v37 = vmul.f32 %v8463_v39, %v12030_v25  ;;  %v5796_v62 = vmul.f32 %v8463_v39, %v10882_v51  ;;  %v5797_v55 = vmul.f32 %v8463_v39, %v12031_v23 }
 0x44f   : > { %v7614_v7 = vpack.c.bf16 %v6072_v60, %v6071_v63  ;;  %v5798_v8 = vmul.f32 %v8463_v39, %v12032_v44 }
 0x450   : > { %6969 = vst [vmem:[%s9873_s21 + $0x3e0] sm:$0xff] %v7613_v31  ;;  %v6073_v61 = vmul.f32 %v9758_v52, %v5795_v37  ;;  %v6074_v16 = vmul.f32 %v9766_v29, %v5796_v62  ;;  %v6075_v20 = vmul.f32 %v9770_v58, %v5797_v55 }
 0x451   : > { %6970 = vst [vmem:[%s9873_s21 + $0x3e8] sm:$0xff] %v7614_v7  ;;  %v6076_v5 = vmul.f32 %v9774_v2, %v5798_v8 }
 0x452   : > { %v7615_v51 = vpack.c.bf16 %v6074_v16, %v6073_v61 }
 0x453   : > { %v7616_v34 = vpack.c.bf16 %v6076_v5, %v6075_v20 }
 0x454   : > { %6971 = vst [vmem:[%s9873_s21 + $0x3f0] sm:$0xff] %v7615_v51 }
 0x455   : > { %6972 = vst [vmem:[%s9873_s21 + $0x3f8] sm:$0xff] %v7616_v34 }
 0x456   : > { %8535 = shalt.err (!%p8532_p5)
}
 0x457   : > { %s8536_s8 = scalar_lea.hbm %s11332_s9, 16384  ;;  %s8540_s27 = scalar_lea.hbm %s11389_s4, 32768 }
 0x458   : > { %p8537_p9 = scmp.ne.s32.totalorder %s11332_s9, %s8536_s8  ;;  %p8541_p3 = scmp.lt.u32.totalorder %s11332_s9, %s11389_s4 }
 0x459   : > { %p8542_p7 = scmp.lt.u32.totalorder %s8540_s27, %s8536_s8  ;;  %p8544_p4 = scmp.lt.u32.totalorder %s8536_s8, %s11332_s9 }
 0x45a   : > { %p8538_p1 = pnand %p8537_p9, %p8741_p10 }
 0x45b   : > { %p8543_p13 = por %p8542_p7, %p8541_p3 }
 0x45c   : > { %p8539_p2 = pneg %p8538_p1 }
 0x45d   : > { %p8545_p6 = por %p8544_p4, %p8543_p13 }
 0x45f   : > { %p8546_p8 = pnand %p8545_p6, %p8539_p2 }
 0x461   : > { %8549 = shalt.err (!%p8546_p8)
}
 0x462   : > { %s8615_s22 = smov 256   ;;  %s8616_s6 = smov 16  }
 0x463   : > { %7881 = dma.vmem_to_hbm [thread:$0]  (%p8741_p10), %s11334_s28, 16384, %s11332_s9, %s6974_s18, %s8615_s22, %s8615_s22, %s8616_s6  }
 0x464 PF: > { %s7003_s29 = sand.u32 1, %s8588_s15   ;;  %p12033_p12 = scmp.ne.s32.totalorder %s11601_s26, 0 }
 0x465   : > { %p12034_p11 = scmp.ge.s32.totalorder %s8608_s20, 2  ;;  %s7004_s11 = scalar_lea.sflag [#allocation5], %s7003_s29 }
 0x467   : > { %p7892_p0 = pnand %p12034_p11, %p12033_p12 }
 0x469   : > { %8583 = dma.done.wait (!%p7892_p0), %s7004_s11, 16384  }
 0x46a   : > { %8585 = vsyncadd (!%p7892_p0), %s7004_s11, 4294950912  ;;  %s21_s20 = sadd.s32 1, %s8608_s20   ;;  %s12035_s15 = smov %s8592_s16 }
 0x46b   : > { %p18_p5 = scmp.ge.s32.totalorder %s21_s20, 4   ;;  %s12036_s16 = smov %s8596_s17 }
 0x46c   : > { %s12037_s17 = smov %s8750_s10  ;;  %s12038_s18 = smov %s8604_s19 }
 0x46d   : > { %s12039_s19 = smov %s12041_s5  ;;  %20 = sbr.rel (!%p18_p5) target bundleno = 7 (0x7), region = 94 }
 0x474   :  { %7009 = vsyncpa [#allocation4], 1 }
 0x475   :  { %7011 = vsyncpa [#allocation4 + $0x1], 1 }
 0x476   :  { %7012 = vsyncpa [#allocation7], 1 }
 0x477   :  { %7013 = vsyncpa [#allocation5], 1 }
 0x478   :  { %7015 = vsyncpa [#allocation5 + $0x1], 1 }

</bundles_post_ra>
